<compile_context>
chip_gen: v7x
topology: tpu7x:2x2x1
jax: 0.10.0
libtpu: 0.0.40
codegen_flags: <defaults>
</compile_context>

<pallas_src>
import jax
import jax.numpy as jnp
from jax.experimental import pallas as pl
from jax.experimental.pallas import tpu as pltpu

LN_EPS = 1e-5               # PyTorch nn.LayerNorm default
_INV_SQRT2 = 0.7071067811865476


def _round_up(n, m):
    return ((n + m - 1) // m) * m


def _usable_vmem_bytes():
    """Per-chip VMEM budget with ~15% headroom for compiler-internal scratch."""
    cap = None
    try:
        cap = int(pltpu.get_tpu_info().vmem_capacity_bytes)
    except Exception:
        cap = None
    if not cap or cap <= 0:
        cap = 64 * 1024 * 1024          # conservative fallback (v7x-sized)
    return max(32 * 1024 * 1024, int(cap * 0.85))


def _ffn_body(x_ref, g_ref, beta_ref, w1_ref, b1_ref, w2_ref, b2_ref,
              o_ref, xn_ref, acc_ref):
    """grid = (row_blocks, h_blocks); h (hidden / K) axis is the reduction axis."""
    h_idx = pl.program_id(1)
    # f32 accumulator: the output block itself when it is f32 (resident across h),
    # otherwise a dedicated f32 VMEM scratch.
    acc = o_ref if acc_ref is None else acc_ref

    # ---- per-row-block init: LayerNorm (f32 stats) + zero the accumulator ----
    @pl.when(h_idx == 0)
    def _():
        x = x_ref[...].astype(jnp.float32)                       # (bm, D)
        mean = jnp.mean(x, axis=-1, keepdims=True)
        var = jnp.mean((x - mean) ** 2, axis=-1, keepdims=True)  # biased, as in LayerNorm
        xn = (x - mean) * jax.lax.rsqrt(var + LN_EPS)
        xn = xn * g_ref[...].astype(jnp.float32) + beta_ref[...].astype(jnp.float32)
        xn_ref[...] = xn.astype(xn_ref.dtype)                    # cached for all H tiles
        acc[...] = jnp.zeros_like(acc)

    # ---- Linear(dim -> hidden tile) + exact GELU, f32 accumulation ----
    hid = jnp.dot(xn_ref[...], w1_ref[...], preferred_element_type=jnp.float32)
    hid = hid + b1_ref[...].astype(jnp.float32)                  # (bm, bh)
    hid = 0.5 * hid * (1.0 + jax.lax.erf(hid * _INV_SQRT2))      # exact GELU (nn.GELU default)

    # ---- partial Linear(hidden tile -> dim), accumulate in f32 ----
    acc[...] += jnp.dot(hid.astype(w2_ref.dtype), w2_ref[...],
                        preferred_element_type=jnp.float32)

    # ---- finalize: add output bias, cast, store (Dropout(p=0) is identity) ----
    @pl.when(h_idx == pl.num_programs(1) - 1)
    def _():
        out = acc[...].astype(jnp.float32) + b2_ref[...].astype(jnp.float32)
        o_ref[...] = out.astype(o_ref.dtype)


def _ffn_kernel_noacc(x_ref, g_ref, beta_ref, w1_ref, b1_ref, w2_ref, b2_ref,
                      o_ref, xn_ref):
    _ffn_body(x_ref, g_ref, beta_ref, w1_ref, b1_ref, w2_ref, b2_ref,
              o_ref, xn_ref, None)


def _ffn_kernel_acc(x_ref, g_ref, beta_ref, w1_ref, b1_ref, w2_ref, b2_ref,
                    o_ref, xn_ref, acc_ref):
    _ffn_body(x_ref, g_ref, beta_ref, w1_ref, b1_ref, w2_ref, b2_ref,
              o_ref, xn_ref, acc_ref)


def feed_forward(x, gamma, beta, w1, b1, w2, b2, *,
                 block_rows=None, block_h=256, compute_dtype=jnp.bfloat16):
    """x: (B, S, D). w1: (D, H), w2: (H, D) in matmul layout.

    compute_dtype: dtype fed to the MXU. bf16 is the performance path on all
    chips (f32 matmul on the v5e MXU is multi-pass and ~3x slower); pass
    jnp.float32 for verification only. LayerNorm statistics and matmul
    accumulation are always f32.
    """
    B, S, D = x.shape
    H = w1.shape[1]
    N = B * S
    out_dtype = x.dtype

    usable_vmem = _usable_vmem_bytes()
    if block_rows is None:
        # Arithmetic intensity per weight byte ~= bm, so aim above the roofline:
        # ~650 FLOP/byte on v6e (128 MiB VMEM -> bm=768), ~620 per-TC on v7x
        # (64 MiB VMEM -> bm=512 with bh=256), v5e only needs ~240.
        block_rows = 768 if usable_vmem >= 90 * 1024 * 1024 else 512
    assert block_rows % 8 == 0 and block_h % 128 == 0

    bm = min(block_rows, _round_up(N, 16))
    bh = min(block_h, _round_up(H, 128))

    isz_c = jnp.dtype(compute_dtype).itemsize
    isz_o = jnp.dtype(out_dtype).itemsize
    need_acc = jnp.dtype(out_dtype) != jnp.dtype(jnp.float32)

    def est(bm_):
        e = (2 * bm_ * D * isz_c        # x blocks (cast to compute dtype)
             + 2 * bm_ * D * isz_o      # output blocks (resident, double-buffered)
             + 2 * D * bh * isz_c       # W1 column tiles
             + 2 * bh * D * isz_c       # W2 row tiles
             + bm_ * D * isz_c          # cached LayerNorm output
             + bm_ * bh * (4 + isz_c)   # live hidden activation (f32 + cast copy)
             + 4 * (2 * bh + 3 * D))    # biases / gamma / beta
        if need_acc:
            e += bm_ * D * 4            # separate f32 accumulator scratch
        return e

    # Auto-fit the row tile under the per-chip VMEM budget.
    while bm > 128 and est(bm) > usable_vmem:
        bm = max(128, bm - 128)

    Np = _round_up(N, bm)
    Hp = _round_up(H, bh)

    x2 = x.reshape(N, D)
    if Np != N:
        x2 = jnp.pad(x2, ((0, Np - N), (0, 0)))   # zero rows -> finite junk, sliced off
    x2 = x2.astype(compute_dtype)                  # halves x VMEM + DMA on the bf16 path

    w1p = w1.astype(compute_dtype)
    w2p = w2.astype(compute_dtype)
    b1p = b1.astype(jnp.float32)
    if Hp != H:
        w1p = jnp.pad(w1p, ((0, 0), (0, Hp - H)))  # zero cols
        b1p = jnp.pad(b1p, ((0, Hp - H),))         # zero bias -> gelu(0)=0 -> no contribution
        w2p = jnp.pad(w2p, ((0, Hp - H), (0, 0)))  # zero rows

    g2 = gamma.reshape(1, D).astype(jnp.float32)
    be2 = beta.reshape(1, D).astype(jnp.float32)
    b1_2 = b1p.reshape(1, Hp)
    b2_2 = b2.reshape(1, D).astype(jnp.float32)

    grid = (Np // bm, Hp // bh)

    scratch = [pltpu.VMEM((bm, D), compute_dtype)]          # cached LayerNorm output
    kernel = _ffn_kernel_noacc
    if need_acc:
        scratch.append(pltpu.VMEM((bm, D), jnp.float32))    # f32 acc for non-f32 output
        kernel = _ffn_kernel_acc

    out = pl.pallas_call(
        kernel,
        out_shape=jax.ShapeDtypeStruct((Np, D), out_dtype),
        grid_spec=pltpu.PrefetchScalarGridSpec(
            num_scalar_prefetch=0,
            grid=grid,
            in_specs=[
                pl.BlockSpec((bm, D), lambda i, h: (i, 0)),    # x rows
                pl.BlockSpec((1, D), lambda i, h: (0, 0)),     # gamma
                pl.BlockSpec((1, D), lambda i, h: (0, 0)),     # beta
                pl.BlockSpec((D, bh), lambda i, h: (0, h)),    # W1 column tile
                pl.BlockSpec((1, bh), lambda i, h: (0, h)),    # b1 tile
                pl.BlockSpec((bh, D), lambda i, h: (h, 0)),    # W2 row tile
                pl.BlockSpec((1, D), lambda i, h: (0, 0)),     # b2
            ],
            out_specs=pl.BlockSpec((bm, D), lambda i, h: (i, 0)),
            scratch_shapes=scratch,
        ),
        compiler_params=pltpu.CompilerParams(
            dimension_semantics=("parallel", "arbitrary"),
            vmem_limit_bytes=int(usable_vmem),
        ),
    )(x2, g2, be2, w1p, b1_2, w2p, b2_2)

    return out[:N].reshape(B, S, D)


def reference(x, gamma, beta, w1, b1, w2, b2):
    xf = x.astype(jnp.float32)
    mean = jnp.mean(xf, axis=-1, keepdims=True)
    var = jnp.mean((xf - mean) ** 2, axis=-1, keepdims=True)
    xn = (xf - mean) * jax.lax.rsqrt(var + LN_EPS) * gamma + beta
    h = xn @ w1 + b1
    h = jax.nn.gelu(h, approximate=False)
    return h @ w2 + b2


if __name__ == "__main__":
    # Small but lane-dense shapes: batch=2, seq=256, dim=128, hidden=256
    # (N = 512 rows -> one row block; H fits one hidden tile).
    B, S, D, H = 2, 256, 128, 256
    key = jax.random.PRNGKey(0)
    kx, kg, kb, kw1, kb1, kw2, kb2 = jax.random.split(key, 7)

    x = jax.random.normal(kx, (B, S, D), dtype=jnp.float32)
    # Deterministic synthetic parameters (the module's init_weights is not reproduced
    # from a checkpoint; shapes follow nn.LayerNorm(dim), nn.Linear(dim, hidden),
    # nn.Linear(hidden, dim)).
    gamma = 1.0 + 0.1 * jax.random.normal(kg, (D,), dtype=jnp.float32)
    beta = 0.1 * jax.random.normal(kb, (D,), dtype=jnp.float32)
    w1 = 0.05 * jax.random.normal(kw1, (D, H), dtype=jnp.float32)
    b1 = 0.05 * jax.random.normal(kb1, (H,), dtype=jnp.float32)
    w2 = 0.05 * jax.random.normal(kw2, (H, D), dtype=jnp.float32)
    b2 = 0.05 * jax.random.normal(kb2, (D,), dtype=jnp.float32)

    ref = reference(x, gamma, beta, w1, b1, w2, b2)

    # f32 compute path: verification-only, strict check against the reference.
    out_f32 = jax.block_until_ready(
        feed_forward(x, gamma, beta, w1, b1, w2, b2, compute_dtype=jnp.float32))
    assert out_f32.shape == (B, S, D)
    assert jnp.allclose(out_f32, ref.astype(out_f32.dtype), atol=1e-4, rtol=1e-4), \
        float(jnp.max(jnp.abs(out_f32 - ref)))

    # bf16 compute path (default performance mode): loose check.
    out_bf16 = jax.block_until_ready(
        feed_forward(x, gamma, beta, w1, b1, w2, b2, compute_dtype=jnp.bfloat16))
    assert out_bf16.shape == (B, S, D)
    assert jnp.allclose(out_bf16.astype(jnp.float32), ref, atol=8e-2, rtol=8e-2), \
        float(jnp.max(jnp.abs(out_bf16.astype(jnp.float32) - ref)))

    # bf16 activations end-to-end (exercises the separate f32 acc-scratch path).
    x_bf16 = x.astype(jnp.bfloat16)
    out_bf16_io = jax.block_until_ready(
        feed_forward(x_bf16, gamma, beta, w1, b1, w2, b2, compute_dtype=jnp.bfloat16))
    assert out_bf16_io.shape == (B, S, D) and out_bf16_io.dtype == jnp.bfloat16
    assert jnp.allclose(out_bf16_io.astype(jnp.float32), ref, atol=1e-1, rtol=1e-1), \
        float(jnp.max(jnp.abs(out_bf16_io.astype(jnp.float32) - ref)))

    print("KERNEL_OK")
</pallas_src>

<mosaic_0001>
module attributes {stable_mosaic.version = 11 : i64} {
  func.func @_ffn_kernel_noacc(%arg0: i32, %arg1: i32, %arg2: memref<512x128xf32, #tpu.memory_space<vmem>>, %arg3: memref<1x128xf32, #tpu.memory_space<vmem>>, %arg4: memref<1x128xf32, #tpu.memory_space<vmem>>, %arg5: memref<128x256xf32, #tpu.memory_space<vmem>>, %arg6: memref<1x256xf32, #tpu.memory_space<vmem>>, %arg7: memref<256x128xf32, #tpu.memory_space<vmem>>, %arg8: memref<1x128xf32, #tpu.memory_space<vmem>>, %arg9: memref<512x128xf32, #tpu.memory_space<vmem>>, %arg10: memref<512x128xf32, #tpu.memory_space<vmem>>) attributes {dimension_semantics = [#tpu.dimension_semantics<parallel>, #tpu.dimension_semantics<arbitrary>], iteration_bounds = array<i64: 1, 1>, scalar_prefetch = 0 : i64, scratch_operands = 1 : i64, tpu.core_type = #tpu.core_type<tc>, window_params = [{transform_indices = @transform_0, window_bounds = array<i64: 512, 128>}, {pipeline_mode = #tpu.pipeline_mode<synchronous>, transform_indices = @transform_1, window_bounds = array<i64: 1, 128>}, {pipeline_mode = #tpu.pipeline_mode<synchronous>, transform_indices = @transform_2, window_bounds = array<i64: 1, 128>}, {transform_indices = @transform_3, window_bounds = array<i64: 128, 256>}, {transform_indices = @transform_4, window_bounds = array<i64: 1, 256>}, {transform_indices = @transform_5, window_bounds = array<i64: 256, 128>}, {pipeline_mode = #tpu.pipeline_mode<synchronous>, transform_indices = @transform_6, window_bounds = array<i64: 1, 128>}, {transform_indices = @transform_7, window_bounds = array<i64: 512, 128>}]} {
    %c0_i32 = arith.constant 0 : i32
    %0 = arith.cmpi eq, %arg1, %c0_i32 : i32
    %1 = arith.extui %0 : i1 to i32
    %c0_i32_0 = arith.constant 0 : i32
    %2 = arith.cmpi ne, %1, %c0_i32_0 : i32
    scf.if %2 {
      %c0_18 = arith.constant 0 : index
      %c0_19 = arith.constant 0 : index
      %25 = vector.load %arg2[%c0_18, %c0_19] : memref<512x128xf32, #tpu.memory_space<vmem>>, vector<512x128xf32>
      %cst_20 = arith.constant dense<0.000000e+00> : vector<512xf32>
      %26 = vector.multi_reduction <add>, %25, %cst_20 [1] : vector<512x128xf32> to vector<512xf32>
      %27 = vector.shape_cast %26 : vector<512xf32> to vector<512x1xf32>
      %cst_21 = arith.constant 1.280000e+02 : f32
      %28 = vector.broadcast %cst_21 : f32 to vector<512x1xf32>
      %29 = arith.divf %27, %28 : vector<512x1xf32>
      %30 = vector.broadcast %29 : vector<512x1xf32> to vector<512x128xf32>
      %31 = arith.subf %25, %30 : vector<512x128xf32>
      %32 = arith.mulf %31, %31 : vector<512x128xf32>
      %cst_22 = arith.constant dense<0.000000e+00> : vector<512xf32>
      %33 = vector.multi_reduction <add>, %32, %cst_22 [1] : vector<512x128xf32> to vector<512xf32>
      %34 = vector.shape_cast %33 : vector<512xf32> to vector<512x1xf32>
      %cst_23 = arith.constant 1.280000e+02 : f32
      %35 = vector.broadcast %cst_23 : f32 to vector<512x1xf32>
      %36 = arith.divf %34, %35 : vector<512x1xf32>
      %37 = vector.broadcast %29 : vector<512x1xf32> to vector<512x128xf32>
      %38 = arith.subf %25, %37 : vector<512x128xf32>
      %cst_24 = arith.constant 9.99999974E-6 : f32
      %39 = vector.broadcast %cst_24 : f32 to vector<512x1xf32>
      %40 = arith.addf %36, %39 : vector<512x1xf32>
      %41 = math.rsqrt %40 : vector<512x1xf32>
      %42 = vector.broadcast %41 : vector<512x1xf32> to vector<512x128xf32>
      %43 = arith.mulf %38, %42 : vector<512x128xf32>
      %c0_25 = arith.constant 0 : index
      %c0_26 = arith.constant 0 : index
      %44 = vector.load %arg3[%c0_25, %c0_26] : memref<1x128xf32, #tpu.memory_space<vmem>>, vector<1x128xf32>
      %45 = vector.broadcast %44 : vector<1x128xf32> to vector<512x128xf32>
      %46 = arith.mulf %43, %45 : vector<512x128xf32>
      %c0_27 = arith.constant 0 : index
      %c0_28 = arith.constant 0 : index
      %47 = vector.load %arg4[%c0_27, %c0_28] : memref<1x128xf32, #tpu.memory_space<vmem>>, vector<1x128xf32>
      %48 = vector.broadcast %47 : vector<1x128xf32> to vector<512x128xf32>
      %49 = arith.addf %46, %48 : vector<512x128xf32>
      %c0_29 = arith.constant 0 : index
      %c0_30 = arith.constant 0 : index
      %50 = vector.load %arg10[%c0_29, %c0_30] : memref<512x128xf32, #tpu.memory_space<vmem>>, vector<512x128xf32>
      tpu.vector_store %arg10[%c0_29, %c0_30], %49 {strides = array<i32>} : memref<512x128xf32, #tpu.memory_space<vmem>>, vector<512x128xf32>,
      %cst_31 = arith.constant 0.000000e+00 : f32
      %51 = vector.broadcast %cst_31 : f32 to vector<512x128xf32>
      %c0_32 = arith.constant 0 : index
      %c0_33 = arith.constant 0 : index
      %52 = vector.load %arg9[%c0_32, %c0_33] : memref<512x128xf32, #tpu.memory_space<vmem>>, vector<512x128xf32>
      tpu.vector_store %arg9[%c0_32, %c0_33], %51 {strides = array<i32>} : memref<512x128xf32, #tpu.memory_space<vmem>>, vector<512x128xf32>,
    } else {
    }
    %c0 = arith.constant 0 : index
    %c0_1 = arith.constant 0 : index
    %3 = vector.load %arg10[%c0, %c0_1] : memref<512x128xf32, #tpu.memory_space<vmem>>, vector<512x128xf32>
    %c0_2 = arith.constant 0 : index
    %c0_3 = arith.constant 0 : index
    %4 = vector.load %arg5[%c0_2, %c0_3] : memref<128x256xf32, #tpu.memory_space<vmem>>, vector<128x256xf32>
    %cst = arith.constant dense<0.000000e+00> : vector<512x256xf32>
    %5 = tpu.matmul %3, %4, %cst {dimension_numbers = #tpu.dot_dimension_numbers<[1], [0], [0], [1], [0, 0, 1, 1], [], []>} : vector<512x128xf32>, vector<128x256xf32>, vector<512x256xf32> -> vector<512x256xf32>
    %c0_4 = arith.constant 0 : index
    %c0_5 = arith.constant 0 : index
    %6 = vector.load %arg6[%c0_4, %c0_5] : memref<1x256xf32, #tpu.memory_space<vmem>>, vector<1x256xf32>
    %7 = vector.broadcast %6 : vector<1x256xf32> to vector<512x256xf32>
    %8 = arith.addf %5, %7 : vector<512x256xf32>
    %cst_6 = arith.constant 5.000000e-01 : f32
    %9 = vector.broadcast %cst_6 : f32 to vector<512x256xf32>
    %10 = arith.mulf %9, %8 : vector<512x256xf32>
    %cst_7 = arith.constant 0.707106769 : f32
    %11 = vector.broadcast %cst_7 : f32 to vector<512x256xf32>
    %12 = arith.mulf %8, %11 : vector<512x256xf32>
    %13 = math.erf %12 : vector<512x256xf32>
    %cst_8 = arith.constant 1.000000e+00 : f32
    %14 = vector.broadcast %cst_8 : f32 to vector<512x256xf32>
    %15 = arith.addf %14, %13 : vector<512x256xf32>
    %16 = arith.mulf %10, %15 : vector<512x256xf32>
    %c0_9 = arith.constant 0 : index
    %c0_10 = arith.constant 0 : index
    %17 = vector.load %arg9[%c0_9, %c0_10] : memref<512x128xf32, #tpu.memory_space<vmem>>, vector<512x128xf32>
    %c0_11 = arith.constant 0 : index
    %c0_12 = arith.constant 0 : index
    %18 = vector.load %arg7[%c0_11, %c0_12] : memref<256x128xf32, #tpu.memory_space<vmem>>, vector<256x128xf32>
    %cst_13 = arith.constant dense<0.000000e+00> : vector<512x128xf32>
    %19 = tpu.matmul %16, %18, %cst_13 {dimension_numbers = #tpu.dot_dimension_numbers<[1], [0], [0], [1], [0, 0, 1, 1], [], []>} : vector<512x256xf32>, vector<256x128xf32>, vector<512x128xf32> -> vector<512x128xf32>
    %20 = arith.addf %17, %19 : vector<512x128xf32>
    %c0_14 = arith.constant 0 : index
    %c0_15 = arith.constant 0 : index
    %21 = vector.load %arg9[%c0_14, %c0_15] : memref<512x128xf32, #tpu.memory_space<vmem>>, vector<512x128xf32>
    tpu.vector_store %arg9[%c0_14, %c0_15], %20 {strides = array<i32>} : memref<512x128xf32, #tpu.memory_space<vmem>>, vector<512x128xf32>,
    %c0_i32_16 = arith.constant 0 : i32
    %22 = arith.cmpi eq, %arg1, %c0_i32_16 : i32
    %23 = arith.extui %22 : i1 to i32
    %c0_i32_17 = arith.constant 0 : i32
    %24 = arith.cmpi ne, %23, %c0_i32_17 : i32
    scf.if %24 {
      %c0_18 = arith.constant 0 : index
      %c0_19 = arith.constant 0 : index
      %25 = vector.load %arg9[%c0_18, %c0_19] : memref<512x128xf32, #tpu.memory_space<vmem>>, vector<512x128xf32>
      %c0_20 = arith.constant 0 : index
      %c0_21 = arith.constant 0 : index
      %26 = vector.load %arg8[%c0_20, %c0_21] : memref<1x128xf32, #tpu.memory_space<vmem>>, vector<1x128xf32>
      %27 = vector.broadcast %26 : vector<1x128xf32> to vector<512x128xf32>
      %28 = arith.addf %25, %27 : vector<512x128xf32>
      %c0_22 = arith.constant 0 : index
      %c0_23 = arith.constant 0 : index
      %29 = vector.load %arg9[%c0_22, %c0_23] : memref<512x128xf32, #tpu.memory_space<vmem>>, vector<512x128xf32>
      tpu.vector_store %arg9[%c0_22, %c0_23], %28 {strides = array<i32>} : memref<512x128xf32, #tpu.memory_space<vmem>>, vector<512x128xf32>,
    } else {
    }
    return
  }
  func.func @transform_0(%arg0: i32, %arg1: i32) -> (i32, i32) {
    %c0_i32 = arith.constant 0 : i32
    %c0_i32_0 = arith.constant 0 : i32
    return %arg0, %c0_i32 : i32, i32
  }
  func.func @transform_1(%arg0: i32, %arg1: i32) -> (i32, i32) {
    %c0_i32 = arith.constant 0 : i32
    %c0_i32_0 = arith.constant 0 : i32
    %c0_i32_1 = arith.constant 0 : i32
    return %c0_i32, %c0_i32_0 : i32, i32
  }
  func.func @transform_2(%arg0: i32, %arg1: i32) -> (i32, i32) {
    %c0_i32 = arith.constant 0 : i32
    %c0_i32_0 = arith.constant 0 : i32
    %c0_i32_1 = arith.constant 0 : i32
    return %c0_i32, %c0_i32_0 : i32, i32
  }
  func.func @transform_3(%arg0: i32, %arg1: i32) -> (i32, i32) {
    %c0_i32 = arith.constant 0 : i32
    %c0_i32_0 = arith.constant 0 : i32
    return %c0_i32, %arg1 : i32, i32
  }
  func.func @transform_4(%arg0: i32, %arg1: i32) -> (i32, i32) {
    %c0_i32 = arith.constant 0 : i32
    %c0_i32_0 = arith.constant 0 : i32
    return %c0_i32, %arg1 : i32, i32
  }
  func.func @transform_5(%arg0: i32, %arg1: i32) -> (i32, i32) {
    %c0_i32 = arith.constant 0 : i32
    %c0_i32_0 = arith.constant 0 : i32
    return %arg1, %c0_i32 : i32, i32
  }
  func.func @transform_6(%arg0: i32, %arg1: i32) -> (i32, i32) {
    %c0_i32 = arith.constant 0 : i32
    %c0_i32_0 = arith.constant 0 : i32
    %c0_i32_1 = arith.constant 0 : i32
    return %c0_i32, %c0_i32_0 : i32, i32
  }
  func.func @transform_7(%arg0: i32, %arg1: i32) -> (i32, i32) {
    %c0_i32 = arith.constant 0 : i32
    %c0_i32_0 = arith.constant 0 : i32
    return %arg0, %c0_i32 : i32, i32
  }
}

</mosaic_0001>

<bundles_post_ra>
// kernel: tpu_custom_call.1
= control target key start
LH: loop header
LB: loop body
LE: loop exit
PB: predicated region body
PF: predicated region fallthrough
CT: control target
= control target key end

     0   :  { %12 = vsyncpa [#allocation4], 0  ;;  %s5406_s0 = inlined_call_operand.hbm [shape: f32[512,128], index: 0, kind: input, shape index: {}]   ;;  %s5407_s1 = inlined_call_operand.vmem [shape: f32[1,128], index: 1, kind: input, shape index: {}]   ;;  %s5408_s2 = inlined_call_operand.vmem [shape: f32[1,128], index: 2, kind: input, shape index: {}]   ;;  %s5409_s3 = inlined_call_operand.hbm [shape: f32[128,256], index: 3, kind: input, shape index: {}]   ;;  %s5410_s4 = inlined_call_operand.vmem [shape: f32[1,256], index: 4, kind: input, shape index: {}]   ;;  %s5411_s5 = inlined_call_operand.hbm [shape: f32[256,128], index: 5, kind: input, shape index: {}]   ;;  %s5412_s6 = inlined_call_operand.vmem [shape: f32[1,128], index: 6, kind: input, shape index: {}]   ;;  %s5413_s7 = inlined_call_operand.hbm [shape: f32[512,128], index: 7, kind: output, shape index: {}]  }
   0x1   :  { %13 = vsyncpa [#allocation7], 0 }
   0x2   :  { %14 = vsyncpa [#allocation5], 0  ;;  %s3742_s24 = smov [#allocation6]   ;;  %s3648_s28 = scalar_lea.hbm %s5409_s3, 4096 }
   0x3   :  { %s36_s25 = sshll.u32 %s3742_s24, 4  ;;  %p3649_p0 = scmp.ne.s32.totalorder %s5409_s3, %s3648_s28  ;;  %s37_s25 = int_to_ptr.vmem [resolvable:$true] %s36_s25 }
   0x4   :  { %p3652_p1 = scmp.lt.u32.totalorder %s3648_s28, %s5409_s3 }
   0x6   :  { %p3654_p2 = pnand %p3652_p1, %p3649_p0 }
   0x8   :  { %3657 = shalt.err (!%p3654_p2)
}
   0x9   :  { %s3658_s10 = scalar_lea.vmem %s37_s25, 4096  ;;  %p3663_p4 = scmp.lt.s32.totalorder %s37_s25, %s37_s25 }
   0xa   :  { %p3659_p3 = scmp.ne.s32.totalorder %s37_s25, %s3658_s10  ;;  %p3664_p5 = scmp.lt.s32.totalorder %s3658_s10, %s3658_s10 }
   0xc   :  { %p3665_p6 = por %p3664_p5, %p3663_p4 }
   0xe   :  { %p3666_p7 = pnand %p3665_p6, %p3659_p3 }
  0x10   :  { %3669 = shalt.err (!%p3666_p7)
}
  0x11   :  { %s3743_s11 = smov 256   ;;  %s3744_s12 = smov 16  }
  0x12   :  { %42 = dma.hbm_to_vmem [thread:$0]  %s5409_s3, 4096, %s37_s25, [#allocation7], %s3743_s11, %s3743_s11, %s3744_s12  }
  0x13   :  { %s3745_s15 = smov [#allocation3]   ;;  %s3670_s19 = scalar_lea.hbm %s5406_s0, 8192 }
  0x14   :  { %s20_s16 = sshll.u32 %s3745_s15, 4  ;;  %p3671_p8 = scmp.ne.s32.totalorder %s5406_s0, %s3670_s19  ;;  %s21_s16 = int_to_ptr.vmem [resolvable:$true] %s20_s16 }
  0x15   :  { %p3674_p9 = scmp.lt.u32.totalorder %s3670_s19, %s5406_s0 }
  0x17   :  { %p3676_p10 = pnand %p3674_p9, %p3671_p8 }
  0x19   :  { %3679 = shalt.err (!%p3676_p10)
}
  0x1a   :  { %s3680_s24 = scalar_lea.vmem %s21_s16, 8192  ;;  %p3685_p12 = scmp.lt.s32.totalorder %s21_s16, %s21_s16 }
  0x1b   :  { %p3681_p11 = scmp.ne.s32.totalorder %s21_s16, %s3680_s24  ;;  %p3686_p13 = scmp.lt.s32.totalorder %s3680_s24, %s3680_s24 }
  0x1d   :  { %p3687_p0 = por %p3686_p13, %p3685_p12 }
  0x1f   :  { %p3688_p1 = pnand %p3687_p0, %p3681_p11 }
  0x21   :  { %3691 = shalt.err (!%p3688_p1)
}
  0x22   :  { %s3746_s3 = smov 128   ;;  %s3747_s25 = smov 8  }
  0x23   :  { %26 = dma.hbm_to_vmem [thread:$0]  %s5406_s0, 8192, %s21_s16, [#allocation4], %s3746_s3, %s3746_s3, %s3747_s25  }
  0x24   :  { %s3748_s28 = smov [#allocation8]   ;;  %s3692_s9 = scalar_lea.hbm %s5411_s5, 4096 }
  0x25   :  { %s50_s29 = sshll.u32 %s3748_s28, 4  ;;  %p3693_p2 = scmp.ne.s32.totalorder %s5411_s5, %s3692_s9  ;;  %s51_s29 = int_to_ptr.vmem [resolvable:$true] %s50_s29 }
  0x26   :  { %p3696_p3 = scmp.lt.u32.totalorder %s3692_s9, %s5411_s5 }
  0x28   :  { %p3698_p4 = pnand %p3696_p3, %p3693_p2 }
  0x2a   :  { %3701 = shalt.err (!%p3698_p4)
}
  0x2b   :  { %s3702_s14 = scalar_lea.vmem %s51_s29, 4096  ;;  %p3707_p6 = scmp.lt.s32.totalorder %s51_s29, %s51_s29 }
  0x2c   :  { %p3703_p5 = scmp.ne.s32.totalorder %s51_s29, %s3702_s14  ;;  %p3708_p7 = scmp.lt.s32.totalorder %s3702_s14, %s3702_s14 }
  0x2e   :  { %p3709_p8 = por %p3708_p7, %p3707_p6 }
  0x30   :  { %p3710_p9 = pnand %p3709_p8, %p3703_p5 }
  0x32   :  { %3713 = shalt.err (!%p3710_p9)
}
  0x33   :  { %56 = dma.hbm_to_vmem [thread:$0]  %s5411_s5, 4096, %s51_s29, [#allocation7], %s3746_s3, %s3746_s3, %s3747_s25  }
  0x34   :  { %3736 = dma.done.wait [#allocation4], 8192  }
  0x35   :  { %3737 = vsyncadd [#allocation4], 4294959104 }
  0x36   :  { %3738 = dma.done.wait [#allocation7], 8192  }
  0x37   :  { %3739 = vsyncadd [#allocation7], 4294959104  ;;  %v3834_v0 = vld [vmem:[#allocation3 + $0x10] sm:$0xff]  ;;  %v3836_v1 = vld [vmem:[#allocation3] sm:$0xff] }
  0x38   :  { %140 = vadd.xlane.f32.xlu1 %v3834_v0  ;;  %136 = vadd.xlane.f32.xlu0 %v3836_v1  ;;  %v3840_v2 = vld [vmem:[#allocation3 + $0x18] sm:$0xff]  ;;  %v3842_v3 = vld [vmem:[#allocation3 + $0x8] sm:$0xff]  ;;  %v3848_v5 = vld [vmem:[#allocation3 + $0x20] sm:$0xff] }
  0x39   :  { %v3846_v4 = vld [vmem:[#allocation3 + $0x28] sm:$0xff]  ;;  %v3852_v6 = vld [vmem:[#allocation3 + $0x38] sm:$0xff]  ;;  %v3854_v7 = vld [vmem:[#allocation3 + $0x30] sm:$0xff] }
  0x3a   :  { %v3858_v8 = vld [vmem:[#allocation3 + $0x48] sm:$0xff]  ;;  %v3860_v9 = vld [vmem:[#allocation3 + $0x40] sm:$0xff]  ;;  %v3864_v10 = vld [vmem:[#allocation3 + $0x58] sm:$0xff] }
  0x3b   :  { %v3866_v11 = vld [vmem:[#allocation3 + $0x50] sm:$0xff]  ;;  %v3870_v12 = vld [vmem:[#allocation3 + $0x68] sm:$0xff]  ;;  %v3872_v13 = vld [vmem:[#allocation3 + $0x60] sm:$0xff] }
  0x3c   :  { %142 = vadd.xlane.f32.xlu1 %v3840_v2  ;;  %138 = vadd.xlane.f32.xlu0 %v3842_v3  ;;  %v3876_v14 = vld [vmem:[#allocation3 + $0x78] sm:$0xff]  ;;  %v3878_v15 = vld [vmem:[#allocation3 + $0x70] sm:$0xff]  ;;  %v3882_v16 = vld [vmem:[#allocation3 + $0x88] sm:$0xff] }
  0x3d   :  { %v3884_v17 = vld [vmem:[#allocation3 + $0x80] sm:$0xff]  ;;  %v3888_v18 = vld [vmem:[#allocation3 + $0x98] sm:$0xff]  ;;  %v3890_v19 = vld [vmem:[#allocation3 + $0x90] sm:$0xff] }
  0x3e   :  { %v3894_v20 = vld [vmem:[#allocation3 + $0xa0] sm:$0xff]  ;;  %v3897_v21 = vld [vmem:[#allocation3 + $0xa8] sm:$0xff]  ;;  %v3900_v22 = vld [vmem:[#allocation3 + $0xb0] sm:$0xff] }
  0x3f   :  { %v3903_v23 = vld [vmem:[#allocation3 + $0xb8] sm:$0xff]  ;;  %v3906_v24 = vld [vmem:[#allocation3 + $0xc0] sm:$0xff]  ;;  %v3909_v25 = vld [vmem:[#allocation3 + $0xc8] sm:$0xff] }
  0x40   :  { %146 = vadd.xlane.f32.xlu1 %v3846_v4  ;;  %144 = vadd.xlane.f32.xlu0 %v3848_v5  ;;  %v3912_v26 = vld [vmem:[#allocation3 + $0xd0] sm:$0xff]  ;;  %v3915_v27 = vld [vmem:[#allocation3 + $0xd8] sm:$0xff]  ;;  %v3918_v28 = vld [vmem:[#allocation3 + $0xe0] sm:$0xff] }
  0x41   :  { %v3921_v29 = vld [vmem:[#allocation3 + $0xe8] sm:$0xff]  ;;  %v3924_v30 = vld [vmem:[#allocation3 + $0xf0] sm:$0xff]  ;;  %v3927_v31 = vld [vmem:[#allocation3 + $0xf8] sm:$0xff] }
  0x42   :  { %v3930_v32 = vld [vmem:[#allocation3 + $0x100] sm:$0xff]  ;;  %v3933_v33 = vld [vmem:[#allocation3 + $0x108] sm:$0xff]  ;;  %v3936_v34 = vld [vmem:[#allocation3 + $0x110] sm:$0xff] }
  0x43   :  { %v3939_v35 = vld [vmem:[#allocation3 + $0x118] sm:$0xff]  ;;  %v3942_v36 = vld [vmem:[#allocation3 + $0x120] sm:$0xff]  ;;  %v3945_v37 = vld [vmem:[#allocation3 + $0x128] sm:$0xff] }
  0x44   :  { %150 = vadd.xlane.f32.xlu1 %v3852_v6  ;;  %148 = vadd.xlane.f32.xlu0 %v3854_v7  ;;  %v3948_v38 = vld [vmem:[#allocation3 + $0x130] sm:$0xff]  ;;  %v3951_v39 = vld [vmem:[#allocation3 + $0x138] sm:$0xff]  ;;  %v3954_v40 = vld [vmem:[#allocation3 + $0x140] sm:$0xff] }
  0x45   :  { %v3957_v41 = vld [vmem:[#allocation3 + $0x148] sm:$0xff]  ;;  %v3960_v42 = vld [vmem:[#allocation3 + $0x150] sm:$0xff]  ;;  %v3963_v43 = vld [vmem:[#allocation3 + $0x158] sm:$0xff] }
  0x46   :  { %v3966_v44 = vld [vmem:[#allocation3 + $0x160] sm:$0xff]  ;;  %v3969_v45 = vld [vmem:[#allocation3 + $0x168] sm:$0xff]  ;;  %v3972_v48 = vld [vmem:[#allocation3 + $0x170] sm:$0xff] }
  0x47   :  { %5442 = vst [vmem:[#allocation13_spill] sm:$0xff] %v3966_v44  ;;  %5443 = vst [vmem:[#allocation14_spill] sm:$0xff] %v3972_v48  ;;  %v3978_v54 = vld [vmem:[#allocation3 + $0x178] sm:$0xff]  ;;  %v1176_v60 = vld [vmem:[#allocation6 + $0x8] sm:$0xff] }
  0x48   :  { %154 = vadd.xlane.f32.xlu1 %v3858_v8  ;;  %152 = vadd.xlane.f32.xlu0 %v3860_v9  ;;  %v1178_v61 = vld [vmem:[#allocation6 + $0x18] sm:$0xff]  ;;  %v3989_v63 = vld [vmem:[#allocation3 + $0x180] sm:$0xff] }
  0x49   :  { %5445 = vst [vmem:[#allocation16_spill] sm:$0xff] %v3989_v63 }
  0x4c   :  { %158 = vadd.xlane.f32.xlu1 %v3864_v10  ;;  %156 = vadd.xlane.f32.xlu0 %v3866_v11 }
  0x50   :  { %162 = vadd.xlane.f32.xlu1 %v3870_v12  ;;  %160 = vadd.xlane.f32.xlu0 %v3872_v13 }
  0x54   :  { %166 = vadd.xlane.f32.xlu1 %v3876_v14  ;;  %164 = vadd.xlane.f32.xlu0 %v3878_v15 }
  0x58   :  { %170 = vadd.xlane.f32.xlu1 %v3882_v16  ;;  %168 = vadd.xlane.f32.xlu0 %v3884_v17 }
  0x5c   :  { %174 = vadd.xlane.f32.xlu1 %v3888_v18  ;;  %172 = vadd.xlane.f32.xlu0 %v3890_v19 }
  0x60   :  { %176 = vadd.xlane.f32.xlu1 %v3894_v20 }
  0x64   :  { %178 = vadd.xlane.f32.xlu1 %v3897_v21 }
  0x68   :  { %180 = vadd.xlane.f32.xlu1 %v3900_v22 }
  0x6c   :  { %182 = vadd.xlane.f32.xlu1 %v3903_v23 }
  0x70   :  { %184 = vadd.xlane.f32.xlu1 %v3906_v24 }
  0x74   :  { %186 = vadd.xlane.f32.xlu1 %v3909_v25 }
  0x78   :  { %188 = vadd.xlane.f32.xlu1 %v3912_v26 }
  0x7c   :  { %190 = vadd.xlane.f32.xlu1 %v3915_v27 }
  0x80   :  { %192 = vadd.xlane.f32.xlu1 %v3918_v28 }
  0x84   :  { %194 = vadd.xlane.f32.xlu1 %v3921_v29 }
  0x88   :  { %196 = vadd.xlane.f32.xlu1 %v3924_v30 }
  0x8c   :  { %198 = vadd.xlane.f32.xlu1 %v3927_v31 }
  0x90   :  { %200 = vadd.xlane.f32.xlu1 %v3930_v32 }
  0x94   :  { %202 = vadd.xlane.f32.xlu1 %v3933_v33 }
  0x98   :  { %204 = vadd.xlane.f32.xlu1 %v3936_v34 }
  0x9c   :  { %206 = vadd.xlane.f32.xlu1 %v3939_v35 }
  0xa0   :  { %208 = vadd.xlane.f32.xlu1 %v3942_v36 }
  0xa4   :  { %210 = vadd.xlane.f32.xlu1 %v3945_v37 }
  0xa8   :  { %212 = vadd.xlane.f32.xlu1 %v3948_v38 }
  0xac   :  { %214 = vadd.xlane.f32.xlu1 %v3951_v39 }
  0xb0   :  { %216 = vadd.xlane.f32.xlu1 %v3954_v40 }
  0xb4   :  { %218 = vadd.xlane.f32.xlu1 %v3957_v41 }
  0xb8   :  { %220 = vadd.xlane.f32.xlu1 %v3960_v42 }
  0xbc   :  { %222 = vadd.xlane.f32.xlu1 %v3963_v43 }
  0xc0   :  { %224 = vadd.xlane.f32.xlu1 %v3966_v44  ;;  %v1179_v44 = vld [vmem:[#allocation6 + $0x20] sm:$0xff] }
  0xc4   :  { %226 = vadd.xlane.f32.xlu1 %v3969_v45 }
  0xc5   :  { %v141_v46 = vpop.xlane.xlu1 %140  ;;  %v137_v47 = vpop.xlane.xlu0 %136 }
  0xc6   :  { %v265_v49 = vmul.f32 0.0078125, %v137_v47  ;;  %v267_v50 = vmul.f32 0.0078125, %v141_v46  ;;  %v3140_v46 = vpack.c.bf16 %v1178_v61, %v1176_v60  ;;  %v1175_v47 = vld [vmem:[#allocation6] sm:$0xff]  ;;  %v3999_v61 = vld [vmem:[#allocation3 + $0x188] sm:$0xff] }
  0xc8   :  { %228 = vadd.xlane.f32.xlu1 %v3972_v48  ;;  %v3976_v51 = vsub.f32 %v3836_v1, %v265_v49  ;;  %v3987_v59 = vsub.f32 %v3834_v0, %v267_v50  ;;  %v1177_v49 = vld [vmem:[#allocation6 + $0x10] sm:$0xff]  ;;  %3141 = vmatprep.subr.bf16.mxu0 %v3140_v46 }
  0xc9   :  { %v143_v52 = vpop.xlane.xlu1 %142  ;;  %v139_v53 = vpop.xlane.xlu0 %138  ;;  %v1181_v46 = vld [vmem:[#allocation6 + $0x30] sm:$0xff] }
  0xca   :  { %v266_v55 = vmul.f32 0.0078125, %v139_v53  ;;  %v393_v56 = vmul.f32 %v3976_v51, %v3976_v51  ;;  %v268_v57 = vmul.f32 0.0078125, %v143_v52  ;;  %5444 = vst [vmem:[#allocation15_spill] sm:$0xff] %v3987_v59  ;;  %v3142_v53 = vpack.c.bf16 %v1177_v49, %v1175_v47 }
  0xcb   :  { %v395_v0 = vmul.f32 %v3987_v59, %v3987_v59  ;;  %v3146_v47 = vpack.c.bf16 %v1181_v46, %v1179_v44  ;;  %v4007_v59 = vld [vmem:[#allocation3 + $0x190] sm:$0xff]  ;;  %v1190_v46 = vld [vmem:[#allocation6 + $0x78] sm:$0xff] }
  0xcc   :  { %230 = vadd.xlane.f32.xlu1 %v3978_v54  ;;  %457 = vadd.xlane.f32.xlu0 %v393_v56  ;;  %v3984_v58 = vsub.f32 %v3842_v3, %v266_v55  ;;  %v3997_v50 = vsub.f32 %v3840_v2, %v268_v57  ;;  %v1180_v55 = vld [vmem:[#allocation6 + $0x28] sm:$0xff]  ;;  %v1182_v56 = vld [vmem:[#allocation6 + $0x38] sm:$0xff]  ;;  %5448 = vst [vmem:[#allocation19_spill] sm:$0xff] %v4007_v59  ;;  %v1185_v44 = vld [vmem:[#allocation6 + $0x50] sm:$0xff] }
  0xcd   :  { %v147_v62 = vpop.xlane.xlu1 %146  ;;  %v145_v1 = vpop.xlane.xlu0 %144  ;;  %3143 = vmatpush1.bf16.msra.mxu0 %v3142_v53  ;;  %v3144_v48 = vpack.c.bf16 %v1182_v56, %v1180_v55  ;;  %v1184_v57 = vld [vmem:[#allocation6 + $0x48] sm:$0xff] }
  0xce   :  { %v394_v52 = vmul.f32 %v3984_v58, %v3984_v58  ;;  %v269_v3 = vmul.f32 0.0078125, %v145_v1  ;;  %5446 = vst [vmem:[#allocation17_spill] sm:$0xff] %v3997_v50  ;;  %v270_v49 = vmul.f32 0.0078125, %v147_v62  ;;  %v396_v1 = vmul.f32 %v3997_v50, %v3997_v50  ;;  %v1188_v56 = vld [vmem:[#allocation6 + $0x68] sm:$0xff] }
  0xcf   :  { %3145 = vmatprep.subr.bf16.mxu0 %v3144_v48  ;;  %v1183_v48 = vld [vmem:[#allocation6 + $0x40] sm:$0xff] }
  0xd0   :  { %232 = vadd.xlane.f32.xlu1 %v3989_v63  ;;  %459 = vadd.xlane.f32.xlu0 %v394_v52  ;;  %v4005_v2 = vsub.f32 %v3848_v5, %v269_v3  ;;  %v1186_v52 = vld [vmem:[#allocation6 + $0x58] sm:$0xff]  ;;  %v3150_v62 = vpack.c.bf16 %v1185_v44, %v1183_v48  ;;  %v4013_v3 = vsub.f32 %v3846_v4, %v270_v49 }
  0xd1   :  { %v151_v60 = vpop.xlane.xlu1 %150  ;;  %v149_v53 = vpop.xlane.xlu0 %148  ;;  %3147 = vmatpush1.bf16.msra.mxu0 %v3146_v47  ;;  %v3148_v55 = vpack.c.bf16 %v1186_v52, %v1184_v57  ;;  %v4017_v47 = vld [vmem:[#allocation3 + $0x198] sm:$0xff]  ;;  %v3152_v57 = vpack.c.bf16 %v1190_v46, %v1188_v56  ;;  %v1187_v52 = vld [vmem:[#allocation6 + $0x60] sm:$0xff] }
  0xd2   :  { %5447 = vst [vmem:[#allocation18_spill] sm:$0xff] %v4005_v2  ;;  %v271_v5 = vmul.f32 0.0078125, %v149_v53  ;;  %5449 = vst [vmem:[#allocation20_spill] sm:$0xff] %v4013_v3  ;;  %v398_v4 = vmul.f32 %v4013_v3, %v4013_v3  ;;  %v1192_v53 = vld [vmem:[#allocation6 + $0x88] sm:$0xff]  ;;  %v1194_v44 = vld [vmem:[#allocation6 + $0x98] sm:$0xff] }
  0xd3   :  { %3149 = vmatprep.subr.bf16.mxu0 %v3148_v55  ;;  %v1189_v55 = vld [vmem:[#allocation6 + $0x70] sm:$0xff]  ;;  %v3156_v46 = vpack.c.bf16 %v1194_v44, %v1192_v53  ;;  %v1198_v3 = vld [vmem:[#allocation6 + $0xb8] sm:$0xff]  ;;  %v1195_v44 = vld [vmem:[#allocation6 + $0xa0] sm:$0xff] }
  0xd4   :  { %234 = vadd.xlane.f32.xlu1 %v3999_v61  ;;  %461 = vadd.xlane.f32.xlu0 %v395_v0  ;;  %v397_v0 = vmul.f32 %v4005_v2, %v4005_v2  ;;  %v3154_v48 = vpack.c.bf16 %v1189_v55, %v1187_v52  ;;  %v4023_v49 = vsub.f32 %v3854_v7, %v271_v5  ;;  %v1196_v55 = vld [vmem:[#allocation6 + $0xa8] sm:$0xff] }
  0xd5   :  { %v155_v63 = vpop.xlane.xlu1 %154  ;;  %3151 = vmatpush1.bf16.msra.mxu0 %v3150_v62  ;;  %v4027_v62 = vld [vmem:[#allocation3 + $0x1a0] sm:$0xff]  ;;  %v153_v56 = vpop.xlane.xlu0 %152  ;;  %v3160_v53 = vpack.c.bf16 %v1198_v3, %v1196_v55 }
  0xd6   :  { %3153 = vmatprep.subr.bf16.mxu0 %v3152_v57  ;;  %5450 = vst [vmem:[#allocation21_spill] sm:$0xff] %v4023_v49  ;;  %5451 = vst [vmem:[#allocation22_spill] sm:$0xff] %v4027_v62  ;;  %v1191_v57 = vld [vmem:[#allocation6 + $0x80] sm:$0xff]  ;;  %v399_v7 = vmul.f32 %v4023_v49, %v4023_v49 }
  0xd8   :  { %236 = vadd.xlane.f32.xlu1 %v4007_v59  ;;  %463 = vadd.xlane.f32.xlu0 %v396_v1  ;;  %v272_v1 = vmul.f32 0.0078125, %v151_v60  ;;  %v1193_v60 = vld [vmem:[#allocation6 + $0x90] sm:$0xff] }
  0xd9   :  { %v4015_v50 = vpop.xlane.xlu1 %158  ;;  %3155 = vmatpush1.bf16.msra.mxu0 %v3154_v48  ;;  %v3158_v52 = vpack.c.bf16 %v1193_v60, %v1191_v57  ;;  %v4037_v48 = vld [vmem:[#allocation3 + $0x1a8] sm:$0xff]  ;;  %v1202_v60 = vld [vmem:[#allocation6 + $0xd8] sm:$0xff]  ;;  %v157_v3 = vpop.xlane.xlu0 %156 }
  0xda   :  { %3157 = vmatprep.subr.bf16.mxu0 %v3156_v46  ;;  %v4033_v5 = vsub.f32 %v3852_v6, %v272_v1  ;;  %v1197_v46 = vld [vmem:[#allocation6 + $0xb0] sm:$0xff] }
  0xdb   :  { %v3162_v57 = vpack.c.bf16 %v1197_v46, %v1195_v44  ;;  %v1204_v46 = vld [vmem:[#allocation6 + $0xe8] sm:$0xff] }
  0xdc   :  { %238 = vadd.xlane.f32.xlu1 %v4017_v47  ;;  %465 = vadd.xlane.f32.xlu0 %v397_v0  ;;  %v273_v0 = vmul.f32 0.0078125, %v153_v56  ;;  %5452 = vst [vmem:[#allocation23_spill] sm:$0xff] %v4033_v5  ;;  %v400_v6 = vmul.f32 %v4033_v5, %v4033_v5  ;;  %v1200_v56 = vld [vmem:[#allocation6 + $0xc8] sm:$0xff]  ;;  %v1206_v5 = vld [vmem:[#allocation6 + $0xf8] sm:$0xff] }
  0xdd   :  { %v4025_v59 = vpop.xlane.xlu1 %162  ;;  %3159 = vmatpush1.bf16.msra.mxu0 %v3158_v52  ;;  %v4047_v52 = vld [vmem:[#allocation3 + $0x1b0] sm:$0xff]  ;;  %v3164_v55 = vpack.c.bf16 %v1202_v60, %v1200_v56  ;;  %v3168_v56 = vpack.c.bf16 %v1206_v5, %v1204_v46  ;;  %v1203_v60 = vld [vmem:[#allocation6 + $0xe0] sm:$0xff]  ;;  %v161_v5 = vpop.xlane.xlu0 %160 }
  0xde   :  { %3161 = vmatprep.subr.bf16.mxu0 %v3160_v53  ;;  %v4043_v1 = vsub.f32 %v3860_v9, %v273_v0  ;;  %v1199_v53 = vld [vmem:[#allocation6 + $0xc0] sm:$0xff] }
  0xe0   :  { %240 = vadd.xlane.f32.xlu1 %v4027_v62  ;;  %467 = vadd.xlane.f32.xlu0 %v398_v4  ;;  %v274_v4 = vmul.f32 0.0078125, %v155_v63  ;;  %v1201_v63 = vld [vmem:[#allocation6 + $0xd0] sm:$0xff]  ;;  %v401_v9 = vmul.f32 %v4043_v1, %v4043_v1 }
  0xe1   :  { %v4035_v2 = vpop.xlane.xlu1 %166  ;;  %3163 = vmatpush1.bf16.msra.mxu0 %v3162_v57  ;;  %v3166_v44 = vpack.c.bf16 %v1201_v63, %v1199_v53  ;;  %v4057_v57 = vld [vmem:[#allocation3 + $0x1b8] sm:$0xff]  ;;  %v4068_v63 = vld [vmem:[#allocation3 + $0x1c0] sm:$0xff] }
  0xe2   :  { %3165 = vmatprep.subr.bf16.mxu0 %v3164_v55  ;;  %v4053_v0 = vsub.f32 %v3858_v8, %v274_v4  ;;  %v1205_v55 = vld [vmem:[#allocation6 + $0xf0] sm:$0xff] }
  0xe3   :  { %v3170_v53 = vpack.c.bf16 %v1205_v55, %v1203_v60 }
  0xe4   :  { %242 = vadd.xlane.f32.xlu1 %v4037_v48  ;;  %469 = vadd.xlane.f32.xlu0 %v399_v7  ;;  %v275_v7 = vmul.f32 0.0078125, %v157_v3  ;;  %v402_v8 = vmul.f32 %v4053_v0, %v4053_v0 }
  0xe5   :  { %v4045_v62 = vpop.xlane.xlu1 %170  ;;  %3167 = vmatpush1.bf16.msra.mxu0 %v3166_v44  ;;  %v5425_v44 = vmov 0.0  }
  0xe6   :  { %3169 = vmatprep.subr.bf16.mxu0 %v3168_v56  ;;  %v4064_v4 = vsub.f32 %v3866_v11, %v275_v7  ;;  %1283 = vmatprep.mubr.f32.mxu0 %v5425_v44  ;;  %v4077_v7 = vld [vmem:[#allocation3 + $0x1c8] sm:$0xff]  ;;  %v278_v56 = vmul.f32 0.0078125, %v4025_v59  ;;  %v4094_v44 = vld [vmem:[#allocation3 + $0x1d8] sm:$0xff] }
  0xe8   :  { %244 = vadd.xlane.f32.xlu1 %v4047_v52  ;;  %471 = vadd.xlane.f32.xlu0 %v400_v6  ;;  %v276_v6 = vmul.f32 0.0078125, %v4015_v50  ;;  %5453 = vst [vmem:[#allocation24_spill] sm:$0xff] %v4064_v4  ;;  %v403_v50 = vmul.f32 %v4064_v4, %v4064_v4  ;;  %v4111_v4 = vld [vmem:[#allocation3 + $0x1e8] sm:$0xff] }
  0xe9   :  { %v4055_v49 = vpop.xlane.xlu1 %174  ;;  %3171 = vmatpush1.bf16.msra.mxu0 %v3170_v53  ;;  %5459 = vst [vmem:[#allocation30_spill] sm:$0xff] %v4111_v4 }
  0xea   :  { %v4075_v46 = vsub.f32 %v3864_v10, %v276_v6  ;;  %v4092_v6 = vsub.f32 %v3870_v12, %v278_v56 }
  0xec   :  { %246 = vadd.xlane.f32.xlu1 %v4057_v57  ;;  %473 = vadd.xlane.f32.xlu0 %v401_v9  ;;  %v277_v9 = vmul.f32 0.0078125, %v161_v5  ;;  %5454 = vst [vmem:[#allocation25_spill] sm:$0xff] %v4075_v46  ;;  %v404_v60 = vmul.f32 %v4075_v46, %v4075_v46  ;;  %v165_v5 = vpop.xlane.xlu0 %164  ;;  %5456 = vst [vmem:[#allocation27_spill] sm:$0xff] %v4092_v6 }
  0xed   :  { %v4066_v3 = vpop.xlane.xlu1 %176  ;;  %v279_v59 = vmul.f32 0.0078125, %v165_v5 }
  0xee   :  { %v4084_v55 = vsub.f32 %v3872_v13, %v277_v9  ;;  %v280_v13 = vmul.f32 0.0078125, %v4035_v2  ;;  %v406_v9 = vmul.f32 %v4092_v6, %v4092_v6 }
  0xf0   :  { %248 = vadd.xlane.f32.xlu1 %v4068_v63  ;;  %475 = vadd.xlane.f32.xlu0 %v402_v8  ;;  %5455 = vst [vmem:[#allocation26_spill] sm:$0xff] %v4084_v55  ;;  %v4086_v8 = vld [vmem:[#allocation3 + $0x1d0] sm:$0xff]  ;;  %v405_v10 = vmul.f32 %v4084_v55, %v4084_v55  ;;  %v4103_v55 = vld [vmem:[#allocation3 + $0x1e0] sm:$0xff]  ;;  %v169_v5 = vpop.xlane.xlu0 %168  ;;  %v4109_v56 = vsub.f32 %v3876_v14, %v280_v13 }
  0xf1   :  { %v179_v11 = vpop.xlane.xlu1 %178  ;;  %v281_v2 = vmul.f32 0.0078125, %v169_v5 }
  0xf2   :  { %5458 = vst [vmem:[#allocation29_spill] sm:$0xff] %v4109_v56 }
  0xf4   :  { %250 = vadd.xlane.f32.xlu1 %v4077_v7  ;;  %477 = vadd.xlane.f32.xlu0 %v403_v50  ;;  %v173_v5 = vpop.xlane.xlu0 %172 }
  0xf5   :  { %v181_v53 = vpop.xlane.xlu1 %180 }
  0xf8   :  { %252 = vadd.xlane.f32.xlu1 %v4086_v8  ;;  %479 = vadd.xlane.f32.xlu0 %v404_v60  ;;  %v4101_v60 = vsub.f32 %v3878_v15, %v279_v59  ;;  %v282_v15 = vmul.f32 0.0078125, %v4045_v62  ;;  %v408_v59 = vmul.f32 %v4109_v56, %v4109_v56  ;;  %v283_v62 = vmul.f32 0.0078125, %v173_v5 }
  0xf9   :  { %v183_v50 = vpop.xlane.xlu1 %182  ;;  %v285_v5 = vmul.f32 0.0078125, %v4066_v3 }
  0xfa   :  { %5457 = vst [vmem:[#allocation28_spill] sm:$0xff] %v4101_v60  ;;  %v407_v12 = vmul.f32 %v4101_v60, %v4101_v60  ;;  %v4120_v60 = vld [vmem:[#allocation3 + $0x1f0] sm:$0xff]  ;;  %v4126_v13 = vsub.f32 %v3882_v16, %v282_v15 }
  0xfc   :  { %254 = vadd.xlane.f32.xlu1 %v4094_v44  ;;  %481 = vadd.xlane.f32.xlu0 %v405_v10  ;;  %5461 = vst [vmem:[#allocation32_spill] sm:$0xff] %v4126_v13 }
  0xfd   :  { %v185_v46 = vpop.xlane.xlu1 %184 }
 0x100   :  { %256 = vadd.xlane.f32.xlu1 %v4103_v55  ;;  %483 = vadd.xlane.f32.xlu0 %v406_v9  ;;  %v4118_v9 = vsub.f32 %v3884_v17, %v281_v2  ;;  %v284_v17 = vmul.f32 0.0078125, %v4055_v49  ;;  %v410_v2 = vmul.f32 %v4126_v13, %v4126_v13  ;;  %v4146_v13 = vsub.f32 %v3894_v20, %v285_v5 }
 0x101   :  { %v187_v10 = vpop.xlane.xlu1 %186  ;;  %v289_v5 = vmul.f32 0.0078125, %v185_v46 }
 0x102   :  { %5460 = vst [vmem:[#allocation31_spill] sm:$0xff] %v4118_v9  ;;  %v409_v14 = vmul.f32 %v4118_v9, %v4118_v9  ;;  %v4141_v15 = vsub.f32 %v3888_v18, %v284_v17  ;;  %v286_v9 = vmul.f32 0.0078125, %v179_v11  ;;  %v413_v3 = vmul.f32 %v4146_v13, %v4146_v13 }
 0x103   :  { %v288_v17 = vmul.f32 0.0078125, %v183_v50 }
 0x104   :  { %258 = vadd.xlane.f32.xlu1 %v4111_v4  ;;  %485 = vadd.xlane.f32.xlu0 %v407_v12  ;;  %v4128_v4 = vld [vmem:[#allocation3 + $0x1f8] sm:$0xff] }
 0x105   :  { %v189_v6 = vpop.xlane.xlu1 %188 }
 0x106   :  { %v291_v46 = vmul.f32 0.0078125, %v189_v6 }
 0x108   :  { %260 = vadd.xlane.f32.xlu1 %v4120_v60  ;;  %487 = vadd.xlane.f32.xlu0 %v408_v59  ;;  %v4135_v59 = vsub.f32 %v3890_v19, %v283_v62  ;;  %v287_v62 = vmul.f32 0.0078125, %v181_v53 }
 0x109   :  { %v191_v12 = vpop.xlane.xlu1 %190 }
 0x10a   :  { %v411_v16 = vmul.f32 %v4135_v59, %v4135_v59 }
 0x10c   :  { %262 = vadd.xlane.f32.xlu1 %v4128_v4  ;;  %489 = vadd.xlane.f32.xlu0 %v409_v14  ;;  %v412_v14 = vmul.f32 %v4141_v15, %v4141_v15 }
 0x10d   :  { %v193_v56 = vpop.xlane.xlu1 %192 }
 0x110   :  { %491 = vadd.xlane.f32.xlu0 %v410_v2  ;;  %v4151_v2 = vsub.f32 %v3897_v21, %v286_v9  ;;  %v290_v9 = vmul.f32 0.0078125, %v187_v10  ;;  %v292_v10 = vmul.f32 0.0078125, %v191_v12 }
 0x111   :  { %v195_v49 = vpop.xlane.xlu1 %194 }
 0x112   :  { %v414_v11 = vmul.f32 %v4151_v2, %v4151_v2 }
 0x114   :  { %493 = vadd.xlane.f32.xlu0 %v411_v16  ;;  %v4156_v16 = vsub.f32 %v3900_v22, %v287_v62  ;;  %v4169_v62 = vsub.f32 %v3909_v25, %v290_v9  ;;  %v293_v25 = vmul.f32 0.0078125, %v193_v56 }
 0x115   :  { %v197_v19 = vpop.xlane.xlu1 %196 }
 0x116   :  { %v415_v53 = vmul.f32 %v4156_v16, %v4156_v16 }
 0x118   :  { %495 = vadd.xlane.f32.xlu0 %v412_v14  ;;  %v4161_v14 = vsub.f32 %v3903_v23, %v288_v17  ;;  %v4174_v17 = vsub.f32 %v3912_v26, %v291_v46  ;;  %v294_v26 = vmul.f32 0.0078125, %v195_v49 }
 0x119   :  { %v199_v18 = vpop.xlane.xlu1 %198 }
 0x11a   :  { %v416_v50 = vmul.f32 %v4161_v14, %v4161_v14  ;;  %v419_v6 = vmul.f32 %v4174_v17, %v4174_v17 }
 0x11c   :  { %497 = vadd.xlane.f32.xlu0 %v413_v3  ;;  %v4166_v3 = vsub.f32 %v3906_v24, %v289_v5  ;;  %v4179_v5 = vsub.f32 %v3915_v27, %v292_v10  ;;  %v295_v27 = vmul.f32 0.0078125, %v197_v19 }
 0x11d   :  { %v201_v20 = vpop.xlane.xlu1 %200 }
 0x11e   :  { %v420_v12 = vmul.f32 %v4179_v5, %v4179_v5 }
 0x120   :  { %499 = vadd.xlane.f32.xlu0 %v414_v11  ;;  %v417_v11 = vmul.f32 %v4166_v3, %v4166_v3 }
 0x121   :  { %v203_v21 = vpop.xlane.xlu1 %202 }
 0x124   :  { %501 = vadd.xlane.f32.xlu0 %v415_v53  ;;  %v418_v53 = vmul.f32 %v4169_v62, %v4169_v62 }
 0x125   :  { %v205_v22 = vpop.xlane.xlu1 %204 }
 0x128   :  { %503 = vadd.xlane.f32.xlu0 %v416_v50  ;;  %v4184_v50 = vsub.f32 %v3918_v28, %v293_v25  ;;  %v296_v28 = vmul.f32 0.0078125, %v199_v18 }
 0x129   :  { %v207_v23 = vpop.xlane.xlu1 %206 }
 0x12a   :  { %v421_v56 = vmul.f32 %v4184_v50, %v4184_v50 }
 0x12c   :  { %505 = vadd.xlane.f32.xlu0 %v417_v11  ;;  %v4189_v11 = vsub.f32 %v3921_v29, %v294_v26  ;;  %v297_v29 = vmul.f32 0.0078125, %v201_v20 }
 0x12d   :  { %v209_v24 = vpop.xlane.xlu1 %208 }
 0x12e   :  { %v422_v49 = vmul.f32 %v4189_v11, %v4189_v11 }
 0x130   :  { %507 = vadd.xlane.f32.xlu0 %v418_v53  ;;  %v4194_v53 = vsub.f32 %v3924_v30, %v295_v27  ;;  %v298_v30 = vmul.f32 0.0078125, %v203_v21  ;;  %v300_v21 = vmul.f32 0.0078125, %v207_v23 }
 0x131   :  { %v211_v9 = vpop.xlane.xlu1 %210 }
 0x132   :  { %v423_v19 = vmul.f32 %v4194_v53, %v4194_v53 }
 0x134   :  { %509 = vadd.xlane.f32.xlu0 %v419_v6  ;;  %v4199_v6 = vsub.f32 %v3927_v31, %v296_v28  ;;  %v299_v31 = vmul.f32 0.0078125, %v205_v22  ;;  %v301_v22 = vmul.f32 0.0078125, %v209_v24 }
 0x135   :  { %v213_v46 = vpop.xlane.xlu1 %212 }
 0x136   :  { %v424_v18 = vmul.f32 %v4199_v6, %v4199_v6 }
 0x138   :  { %511 = vadd.xlane.f32.xlu0 %v420_v12  ;;  %v4204_v12 = vsub.f32 %v3930_v32, %v297_v29  ;;  %v4218_v32 = vsub.f32 %v3936_v34, %v299_v31  ;;  %v4230_v34 = vsub.f32 %v3942_v36, %v301_v22 }
 0x139   :  { %v215_v10 = vpop.xlane.xlu1 %214 }
 0x13a   :  { %5462 = vst [vmem:[#allocation33_spill] sm:$0xff] %v4204_v12  ;;  %v425_v20 = vmul.f32 %v4204_v12, %v4204_v12  ;;  %v302_v12 = vmul.f32 0.0078125, %v211_v9  ;;  %v429_v36 = vmul.f32 %v4230_v34, %v4230_v34 }
 0x13c   :  { %513 = vadd.xlane.f32.xlu0 %v421_v56  ;;  %v4211_v56 = vsub.f32 %v3933_v33, %v298_v30  ;;  %v4225_v33 = vsub.f32 %v3939_v35, %v300_v21  ;;  %v303_v21 = vmul.f32 0.0078125, %v213_v46 }
 0x13d   :  { %v217_v25 = vpop.xlane.xlu1 %216 }
 0x13e   :  { %v428_v31 = vmul.f32 %v4225_v33, %v4225_v33 }
 0x140   :  { %515 = vadd.xlane.f32.xlu0 %v422_v49  ;;  %v426_v49 = vmul.f32 %v4211_v56, %v4211_v56 }
 0x141   :  { %v219_v26 = vpop.xlane.xlu1 %218 }
 0x144   :  { %517 = vadd.xlane.f32.xlu0 %v423_v19  ;;  %v427_v19 = vmul.f32 %v4218_v32, %v4218_v32 }
 0x145   :  { %v4208_v27 = vpop.xlane.xlu1 %220 }
 0x148   :  { %519 = vadd.xlane.f32.xlu0 %v424_v18 }
 0x149   :  { %v4215_v28 = vpop.xlane.xlu1 %222 }
 0x14c   :  { %521 = vadd.xlane.f32.xlu0 %v425_v20  ;;  %v4242_v20 = vsub.f32 %v3945_v37, %v302_v12 }
 0x14d   :  { %v4222_v29 = vpop.xlane.xlu1 %224 }
 0x150   :  { %523 = vadd.xlane.f32.xlu0 %v426_v49 }
 0x151   :  { %v227_v30 = vpop.xlane.xlu1 %226 }
 0x152   :  { %v310_v18 = vmul.f32 0.0078125, %v227_v30  ;;  %v4249_v30 = vsub.f32 %v3948_v38, %v303_v21 }
 0x154   :  { %v4233_v23 = vsub.f32 %v3969_v45, %v310_v18  ;;  %525 = vadd.xlane.f32.xlu0 %v427_v19  ;;  %v430_v19 = vmul.f32 %v4242_v20, %v4242_v20  ;;  %v304_v18 = vmul.f32 0.0078125, %v215_v10 }
 0x155   :  { %v4237_v35 = vpop.xlane.xlu1 %228 }
 0x156   :  { %5463 = vst [vmem:[#allocation34_spill] sm:$0xff] %v4233_v23  ;;  %v438_v24 = vmul.f32 %v4233_v23, %v4233_v23  ;;  %v305_v23 = vmul.f32 0.0078125, %v217_v25 }
 0x158   :  { %547 = vadd.xlane.f32.xlu1 %v438_v24  ;;  %527 = vadd.xlane.f32.xlu0 %v428_v31 }
 0x159   :  { %v231_v45 = vpop.xlane.xlu1 %230  ;;  %v458_v9 = vpop.xlane.xlu0 %457 }
 0x15a   :  { %v312_v49 = vmul.f32 0.0078125, %v231_v45  ;;  %v585_v22 = vmul.f32 0.0078125, %v458_v9  ;;  %v4259_v9 = vsub.f32 %v3951_v39, %v304_v18 }
 0x15c   :  { %v4252_v37 = vsub.f32 %v3978_v54, %v312_v49  ;;  %v649_v46 = vadd.f32 1e-05, %v585_v22  ;;  %529 = vadd.xlane.f32.xlu0 %v429_v36  ;;  %v431_v54 = vmul.f32 %v4249_v30, %v4249_v30  ;;  %v306_v22 = vmul.f32 0.0078125, %v219_v26 }
 0x15d   :  { %v4254_v12 = vpop.xlane.xlu1 %232  ;;  %v460_v31 = vpop.xlane.xlu0 %459  ;;  %v432_v25 = vmul.f32 %v4259_v9, %v4259_v9 }
 0x15e   :  { %3262 = vrsqrt.f32 %v649_v46  ;;  %v586_v24 = vmul.f32 0.0078125, %v460_v31  ;;  %v440_v45 = vmul.f32 %v4252_v37, %v4252_v37  ;;  %v4264_v46 = vsub.f32 %v3954_v40, %v305_v23 }
 0x15f   :  { %v4276_v26 = vsub.f32 %v3957_v41, %v306_v22 }
 0x160   :  { %v650_v38 = vadd.f32 1e-05, %v586_v24  ;;  %551 = vadd.xlane.f32.xlu1 %v440_v45  ;;  %531 = vadd.xlane.f32.xlu0 %v430_v19 }
 0x161   :  { %v235_v10 = vpop.xlane.xlu1 %234  ;;  %v462_v21 = vpop.xlane.xlu0 %461 }
 0x162   :  { %3264 = vrsqrt.f32 %v650_v38  ;;  %v314_v36 = vmul.f32 0.0078125, %v235_v10  ;;  %v587_v49 = vmul.f32 0.0078125, %v462_v21  ;;  %v433_v38 = vmul.f32 %v4264_v46, %v4264_v46 }
 0x164   :  { %v4267_v31 = vsub.f32 %v3999_v61, %v314_v36  ;;  %v651_v39 = vadd.f32 1e-05, %v587_v49  ;;  %533 = vadd.xlane.f32.xlu0 %v431_v54  ;;  %v307_v61 = vmul.f32 0.0078125, %v4208_v27  ;;  %v4284_v54 = vld [vmem:[%s5407_s1] ss:$0 sm:$0xff] }
 0x165   :  { %v4271_v19 = vpop.xlane.xlu1 %236  ;;  %v464_v18 = vpop.xlane.xlu0 %463  ;;  %v4290_v27 = vld [vmem:[%s5408_s2] ss:$0 sm:$0xff] }
 0x166   :  { %5464 = vst [vmem:[#allocation35_spill] sm:$0xff] %v4267_v31  ;;  %3266 = vrsqrt.f32 %v651_v39  ;;  %v588_v24 = vmul.f32 0.0078125, %v464_v18  ;;  %v442_v45 = vmul.f32 %v4267_v31, %v4267_v31  ;;  %v434_v39 = vmul.f32 %v4276_v26, %v4276_v26 }
 0x167   :  { %v4296_v18 = vsub.f32 %v3960_v42, %v307_v61 }
 0x168   :  { %v3263_v40 = vpop.eup %3262  ;;  %v652_v23 = vadd.f32 1e-05, %v588_v24  ;;  %555 = vadd.xlane.f32.xlu1 %v442_v45  ;;  %535 = vadd.xlane.f32.xlu0 %v432_v25  ;;  %v308_v24 = vmul.f32 0.0078125, %v4215_v28 }
 0x169   :  { %v239_v10 = vpop.xlane.xlu1 %238  ;;  %v466_v21 = vpop.xlane.xlu0 %465  ;;  %v777_v36 = vmul.f32 %v3263_v40, %v3976_v51 }
 0x16a   :  { %3268 = vrsqrt.f32 %v652_v23  ;;  %v316_v41 = vmul.f32 0.0078125, %v239_v10  ;;  %v589_v49 = vmul.f32 0.0078125, %v466_v21 }
 0x16b   :  { %v848_v22 = vmul.f32 %v4284_v54, %v777_v36 }
 0x16c   :  { %v3265_v25 = vpop.eup %3264  ;;  %v4300_v51 = vsub.f32 %v4017_v47, %v316_v41  ;;  %v653_v45 = vadd.f32 1e-05, %v589_v49  ;;  %537 = vadd.xlane.f32.xlu0 %v433_v38  ;;  %v4310_v47 = vsub.f32 %v3963_v43, %v308_v24  ;;  %v309_v38 = vmul.f32 0.0078125, %v4222_v29 }
 0x16d   :  { %v4302_v40 = vpop.xlane.xlu1 %240  ;;  %v468_v23 = vpop.xlane.xlu0 %467  ;;  %v919_v10 = vadd.f32 %v4290_v27, %v848_v22  ;;  %v778_v21 = vmul.f32 %v3265_v25, %v3984_v58  ;;  %v435_v58 = vmul.f32 %v4296_v18, %v4296_v18  ;;  %v5466_v25 = vmov 0.0  }
 0x16e   :  { %5465 = vst [vmem:[#allocation36_spill] sm:$0xff] %v4300_v51  ;;  %3270 = vrsqrt.f32 %v653_v45  ;;  %v590_v36 = vmul.f32 0.0078125, %v468_v23  ;;  %v444_v42 = vmul.f32 %v4300_v51, %v4300_v51  ;;  %v5467_v23 = vld [vmem:[#allocation15_spill] sm:$0xff]  ;;  %v311_v24 = vmul.f32 0.0078125, %v4237_v35 }
 0x16f   :  { %1284 = vmatmul.mubr.f32.vlgmr.msra.gmra.mrb[0].mxu0 %v919_v10  ;;  %v849_v28 = vmul.f32 %v4284_v54, %v778_v21 }
 0x170   :  { %v3267_v61 = vpop.eup %3266  ;;  %v654_v41 = vadd.f32 1e-05, %v590_v36  ;;  %559 = vadd.xlane.f32.xlu1 %v444_v42  ;;  %539 = vadd.xlane.f32.xlu0 %v434_v39  ;;  %v5468_v36 = vld [vmem:[#allocation13_spill] sm:$0xff] }
 0x171   :  { %v243_v49 = vpop.xlane.xlu1 %242  ;;  %v470_v22 = vpop.xlane.xlu0 %469  ;;  %1289 = vmatprep.mubr.f32.mxu0 %v5466_v25  ;;  %v920_v45 = vadd.f32 %v4290_v27, %v849_v28  ;;  %v779_v10 = vmul.f32 %v3267_v61, %v5467_v23  ;;  %v4321_v42 = vsub.f32 %v5468_v36, %v309_v38  ;;  %v436_v28 = vmul.f32 %v4310_v47, %v4310_v47 }
 0x172   :  { %3272 = vrsqrt.f32 %v654_v41  ;;  %v318_v21 = vmul.f32 0.0078125, %v243_v49  ;;  %v591_v43 = vmul.f32 0.0078125, %v470_v22  ;;  %v5470_v49 = vld [vmem:[#allocation17_spill] sm:$0xff] }
 0x173   :  { %1290 = vmatmul.mubr.f32.gmra.mrb[2].mxu0 %v920_v45  ;;  %v850_v29 = vmul.f32 %v4284_v54, %v779_v10 }
 0x174   :  { %v3269_v39 = vpop.eup %3268  ;;  %v4324_v51 = vsub.f32 %v4037_v48, %v318_v21  ;;  %v655_v31 = vadd.f32 1e-05, %v591_v43  ;;  %541 = vadd.xlane.f32.xlu0 %v435_v58  ;;  %1295 = vmatprep.mubr.f32.mxu0 %v5466_v25  ;;  %v5471_v48 = vld [vmem:[#allocation14_spill] sm:$0xff]  ;;  %v313_v21 = vmul.f32 0.0078125, %v4254_v12 }
 0x175   :  { %v245_v61 = vpop.xlane.xlu1 %244  ;;  %v472_v41 = vpop.xlane.xlu0 %471  ;;  %v921_v35 = vadd.f32 %v4290_v27, %v850_v29  ;;  %v780_v22 = vmul.f32 %v3269_v39, %v5470_v49  ;;  %v4334_v23 = vsub.f32 %v5471_v48, %v311_v24  ;;  %v437_v29 = vmul.f32 %v4321_v42, %v4321_v42  ;;  %v5472_v24 = vld [vmem:[#allocation18_spill] sm:$0xff] }
 0x176   :  { %5469 = vst [vmem:[#allocation15_spill] sm:$0xff] %v4324_v51  ;;  %3274 = vrsqrt.f32 %v655_v31  ;;  %v592_v45 = vmul.f32 0.0078125, %v472_v41  ;;  %v446_v38 = vmul.f32 %v4324_v51, %v4324_v51  ;;  %v315_v48 = vmul.f32 0.0078125, %v4271_v19 }
 0x177   :  { %1296 = vmatmul.mubr.f32.gmra.mrb[4].mxu0 %v921_v35  ;;  %v851_v58 = vmul.f32 %v4284_v54, %v780_v22 }
 0x178   :  { %v3271_v10 = vpop.eup %3270  ;;  %v656_v43 = vadd.f32 1e-05, %v592_v45  ;;  %563 = vadd.xlane.f32.xlu1 %v446_v38  ;;  %543 = vadd.xlane.f32.xlu0 %v436_v28  ;;  %v439_v28 = vmul.f32 %v4334_v23, %v4334_v23  ;;  %v5473_v45 = vld [vmem:[#allocation16_spill] sm:$0xff] }
 0x179   :  { %v247_v31 = vpop.xlane.xlu1 %246  ;;  %v474_v39 = vpop.xlane.xlu0 %473  ;;  %1301 = vmatprep.mubr.f32.mxu0 %v5466_v25  ;;  %v922_v36 = vadd.f32 %v4290_v27, %v851_v58  ;;  %v781_v41 = vmul.f32 %v3271_v10, %v5472_v24  ;;  %v4347_v38 = vsub.f32 %v5473_v45, %v313_v21 }
 0x17a   :  { %3276 = vrsqrt.f32 %v656_v43  ;;  %v320_v35 = vmul.f32 0.0078125, %v247_v31  ;;  %v593_v49 = vmul.f32 0.0078125, %v474_v39  ;;  %v5475_v39 = vld [vmem:[#allocation20_spill] sm:$0xff] }
 0x17b   :  { %1302 = vmatmul.mubr.f32.gmra.mrb[6].mxu0 %v922_v36  ;;  %v852_v12 = vmul.f32 %v4284_v54, %v781_v41  ;;  %v5476_v41 = vld [vmem:[#allocation19_spill] sm:$0xff] }
 0x17c   :  { %v3273_v22 = vpop.eup %3272  ;;  %v4351_v51 = vsub.f32 %v4057_v57, %v320_v35  ;;  %v657_v58 = vadd.f32 1e-05, %v593_v49  ;;  %545 = vadd.xlane.f32.xlu0 %v437_v29  ;;  %1307 = vmatprep.mubr.f32.mxu0 %v5466_v25  ;;  %v4360_v35 = vsub.f32 %v5476_v41, %v315_v48  ;;  %v317_v29 = vmul.f32 0.0078125, %v4302_v40 }
 0x17d   :  { %v249_v10 = vpop.xlane.xlu1 %248  ;;  %v476_v43 = vpop.xlane.xlu0 %475  ;;  %v923_v31 = vadd.f32 %v4290_v27, %v852_v12  ;;  %v782_v36 = vmul.f32 %v3273_v22, %v5475_v39  ;;  %v441_v12 = vmul.f32 %v4347_v38, %v4347_v38 }
 0x17e   :  { %5474 = vst [vmem:[#allocation13_spill] sm:$0xff] %v4351_v51  ;;  %3278 = vrsqrt.f32 %v657_v58  ;;  %v594_v24 = vmul.f32 0.0078125, %v476_v43  ;;  %v448_v21 = vmul.f32 %v4351_v51, %v4351_v51  ;;  %v5477_v43 = vld [vmem:[#allocation21_spill] sm:$0xff] }
 0x17f   :  { %1308 = vmatmul.mubr.f32.gmra.mrb[8].mxu0 %v923_v31  ;;  %v853_v19 = vmul.f32 %v4284_v54, %v782_v36  ;;  %v319_v36 = vmul.f32 0.0078125, %v245_v61 }
 0x180   :  { %v3275_v57 = vpop.eup %3274  ;;  %v658_v49 = vadd.f32 1e-05, %v594_v24  ;;  %567 = vadd.xlane.f32.xlu1 %v448_v21  ;;  %549 = vadd.xlane.f32.xlu0 %v439_v28  ;;  %v5478_v28 = vld [vmem:[#allocation22_spill] sm:$0xff] }
 0x181   :  { %v251_v22 = vpop.xlane.xlu1 %250  ;;  %v478_v45 = vpop.xlane.xlu0 %477  ;;  %1313 = vmatprep.mubr.f32.mxu0 %v5466_v25  ;;  %v924_v58 = vadd.f32 %v4290_v27, %v853_v19  ;;  %v783_v31 = vmul.f32 %v3275_v57, %v5477_v43  ;;  %v4370_v21 = vsub.f32 %v5478_v28, %v317_v29  ;;  %v443_v19 = vmul.f32 %v4360_v35, %v4360_v35 }
 0x182   :  { %3280 = vrsqrt.f32 %v658_v49  ;;  %v322_v39 = vmul.f32 0.0078125, %v251_v22  ;;  %v595_v48 = vmul.f32 0.0078125, %v478_v45  ;;  %v5479_v22 = vld [vmem:[#allocation23_spill] sm:$0xff] }
 0x183   :  { %1314 = vmatmul.mubr.f32.gmra.mrb[10].mxu0 %v924_v58  ;;  %v854_v40 = vmul.f32 %v4284_v54, %v783_v31  ;;  %v321_v31 = vmul.f32 0.0078125, %v249_v10 }
 0x184   :  { %v3277_v24 = vpop.eup %3276  ;;  %v4373_v41 = vsub.f32 %v4077_v7, %v322_v39  ;;  %v659_v51 = vadd.f32 1e-05, %v595_v48  ;;  %553 = vadd.xlane.f32.xlu0 %v441_v12  ;;  %1319 = vmatprep.mubr.f32.mxu0 %v5466_v25  ;;  %v4383_v7 = vsub.f32 %v4047_v52, %v319_v36  ;;  %v445_v48 = vmul.f32 %v4370_v21, %v4370_v21 }
 0x185   :  { %v253_v57 = vpop.xlane.xlu1 %252  ;;  %v480_v49 = vpop.xlane.xlu0 %479  ;;  %v925_v61 = vadd.f32 %v4290_v27, %v854_v40  ;;  %v784_v45 = vmul.f32 %v3277_v24, %v5479_v22 }
 0x186   :  { %3282 = vrsqrt.f32 %v659_v51  ;;  %v596_v58 = vmul.f32 0.0078125, %v480_v49  ;;  %v450_v29 = vmul.f32 %v4373_v41, %v4373_v41  ;;  %v323_v22 = vmul.f32 0.0078125, %v253_v57 }
 0x187   :  { %1320 = vmatmul.mubr.f32.gmra.mrb[12].mxu0 %v925_v61  ;;  %v855_v12 = vmul.f32 %v4284_v54, %v784_v45  ;;  %v4395_v61 = vsub.f32 %v4068_v63, %v321_v31 }
 0x188   :  { %v3279_v43 = vpop.eup %3278  ;;  %v660_v39 = vadd.f32 1e-05, %v596_v58  ;;  %571 = vadd.xlane.f32.xlu1 %v450_v29  ;;  %557 = vadd.xlane.f32.xlu0 %v443_v19  ;;  %v447_v19 = vmul.f32 %v4383_v7, %v4383_v7  ;;  %v4407_v31 = vsub.f32 %v4086_v8, %v323_v22 }
 0x189   :  { %v255_v40 = vpop.xlane.xlu1 %254  ;;  %v482_v51 = vpop.xlane.xlu0 %481  ;;  %1325 = vmatprep.mubr.f32.mxu0 %v5466_v25  ;;  %v926_v24 = vadd.f32 %v4290_v27, %v855_v12  ;;  %v785_v52 = vmul.f32 %v3279_v43, %v4043_v1 }
 0x18a   :  { %3284 = vrsqrt.f32 %v660_v39  ;;  %v324_v36 = vmul.f32 0.0078125, %v255_v40  ;;  %v597_v28 = vmul.f32 0.0078125, %v482_v51  ;;  %v449_v51 = vmul.f32 %v4395_v61, %v4395_v61 }
 0x18b   :  { %1326 = vmatmul.mubr.f32.gmra.mrb[14].mxu0 %v926_v24  ;;  %v856_v10 = vmul.f32 %v4284_v54, %v785_v52 }
 0x18c   :  { %v3281_v49 = vpop.eup %3280  ;;  %v4398_v45 = vsub.f32 %v4094_v44, %v324_v36  ;;  %v661_v58 = vadd.f32 1e-05, %v597_v28  ;;  %561 = vadd.xlane.f32.xlu0 %v445_v48  ;;  %1331 = vmatprep.mubr.f32.mxu0 %v5466_v25  ;;  %v5480_v36 = vld [vmem:[#allocation24_spill] sm:$0xff] }
 0x18d   :  { %v257_v1 = vpop.xlane.xlu1 %256  ;;  %v484_v29 = vpop.xlane.xlu0 %483  ;;  %v927_v12 = vadd.f32 %v4290_v27, %v856_v10  ;;  %v786_v43 = vmul.f32 %v3281_v49, %v4053_v0 }
 0x18e   :  { %3286 = vrsqrt.f32 %v661_v58  ;;  %v598_v39 = vmul.f32 0.0078125, %v484_v29  ;;  %v452_v63 = vmul.f32 %v4398_v45, %v4398_v45  ;;  %v325_v48 = vmul.f32 0.0078125, %v257_v1  ;;  %v5481_v58 = vld [vmem:[#allocation30_spill] sm:$0xff] }
 0x18f   :  { %1332 = vmatmul.mubr.f32.gmra.mrb[16].mxu0 %v927_v12  ;;  %v857_v57 = vmul.f32 %v4284_v54, %v786_v43  ;;  %v451_v12 = vmul.f32 %v4407_v31, %v4407_v31 }
 0x190   :  { %v3283_v44 = vpop.eup %3282  ;;  %v662_v40 = vadd.f32 1e-05, %v598_v39  ;;  %575 = vadd.xlane.f32.xlu1 %v452_v63  ;;  %565 = vadd.xlane.f32.xlu0 %v447_v19  ;;  %v4416_v19 = vsub.f32 %v4103_v55, %v325_v48 }
 0x191   :  { %v259_v0 = vpop.xlane.xlu1 %258  ;;  %v486_v24 = vpop.xlane.xlu0 %485  ;;  %1337 = vmatprep.mubr.f32.mxu0 %v5466_v25  ;;  %v928_v52 = vadd.f32 %v4290_v27, %v857_v57  ;;  %v787_v28 = vmul.f32 %v3283_v44, %v5480_v36  ;;  %v5482_v57 = vld [vmem:[#allocation25_spill] sm:$0xff] }
 0x192   :  { %3288 = vrsqrt.f32 %v662_v40  ;;  %v326_v10 = vmul.f32 0.0078125, %v259_v0  ;;  %v599_v49 = vmul.f32 0.0078125, %v486_v24  ;;  %v453_v36 = vmul.f32 %v4416_v19, %v4416_v19 }
 0x193   :  { %1338 = vmatmul.mubr.f32.gmra.mrb[18].mxu0 %v928_v52  ;;  %v858_v8 = vmul.f32 %v4284_v54, %v787_v28 }
 0x194   :  { %v3285_v22 = vpop.eup %3284  ;;  %v4419_v1 = vsub.f32 %v5481_v58, %v326_v10  ;;  %v663_v29 = vadd.f32 1e-05, %v599_v49  ;;  %569 = vadd.xlane.f32.xlu0 %v449_v51  ;;  %1343 = vmatprep.mubr.f32.mxu0 %v5466_v25 }
 0x195   :  { %v261_v43 = vpop.xlane.xlu1 %260  ;;  %v488_v39 = vpop.xlane.xlu0 %487  ;;  %v929_v63 = vadd.f32 %v4290_v27, %v858_v8  ;;  %v788_v44 = vmul.f32 %v3285_v22, %v5482_v57  ;;  %v5483_v8 = vld [vmem:[#allocation26_spill] sm:$0xff] }
 0x196   :  { %3290 = vrsqrt.f32 %v663_v29  ;;  %v327_v40 = vmul.f32 0.0078125, %v261_v43  ;;  %v600_v55 = vmul.f32 0.0078125, %v488_v39  ;;  %v454_v48 = vmul.f32 %v4419_v1, %v4419_v1 }
 0x197   :  { %1344 = vmatmul.mubr.f32.gmra.mrb[20].mxu0 %v929_v63  ;;  %v859_v51 = vmul.f32 %v4284_v54, %v788_v44 }
 0x198   :  { %v3287_v0 = vpop.eup %3286  ;;  %v4430_v24 = vsub.f32 %v4120_v60, %v327_v40  ;;  %v664_v52 = vadd.f32 1e-05, %v600_v55  ;;  %579 = vadd.xlane.f32.xlu1 %v454_v48  ;;  %573 = vadd.xlane.f32.xlu0 %v451_v12  ;;  %v5484_v40 = vld [vmem:[#allocation27_spill] sm:$0xff] }
 0x199   :  { %v263_v28 = vpop.xlane.xlu1 %262  ;;  %v490_v10 = vpop.xlane.xlu0 %489  ;;  %1349 = vmatprep.mubr.f32.mxu0 %v5466_v25  ;;  %v930_v49 = vadd.f32 %v4290_v27, %v859_v51  ;;  %v789_v22 = vmul.f32 %v3287_v0, %v5483_v8 }
 0x19a   :  { %3292 = vrsqrt.f32 %v664_v52  ;;  %v328_v58 = vmul.f32 0.0078125, %v263_v28  ;;  %v601_v29 = vmul.f32 0.0078125, %v490_v10  ;;  %v455_v63 = vmul.f32 %v4430_v24, %v4430_v24  ;;  %v5485_v10 = vld [vmem:[#allocation28_spill] sm:$0xff] }
 0x19b   :  { %1350 = vmatmul.mubr.f32.gmra.mrb[22].mxu0 %v930_v49  ;;  %v860_v60 = vmul.f32 %v4284_v54, %v789_v22 }
 0x19c   :  { %v3289_v43 = vpop.eup %3288  ;;  %v4439_v12 = vsub.f32 %v4128_v4, %v328_v58  ;;  %v665_v39 = vadd.f32 1e-05, %v601_v29  ;;  %577 = vadd.xlane.f32.xlu0 %v453_v36  ;;  %1355 = vmatprep.mubr.f32.mxu0 %v5466_v25 }
 0x19d   :  { %v492_v57 = vpop.xlane.xlu0 %491  ;;  %v931_v44 = vadd.f32 %v4290_v27, %v860_v60  ;;  %v790_v55 = vmul.f32 %v3289_v43, %v5484_v40  ;;  %v2372_v40 = vld [vmem:[#allocation8] sm:$0xff] }
 0x19e   :  { %3294 = vrsqrt.f32 %v665_v39  ;;  %v602_v48 = vmul.f32 0.0078125, %v492_v57  ;;  %v456_v51 = vmul.f32 %v4439_v12, %v4439_v12  ;;  %v5486_v39 = vld [vmem:[#allocation29_spill] sm:$0xff] }
 0x19f   :  { %1356 = vmatmul.mubr.f32.gmra.mrb[24].mxu0 %v931_v44  ;;  %v861_v4 = vmul.f32 %v4284_v54, %v790_v55  ;;  %v2373_v55 = vld [vmem:[#allocation8 + $0x8] sm:$0xff] }
 0x1a0   :  { %v3291_v0 = vpop.eup %3290  ;;  %v666_v52 = vadd.f32 1e-05, %v602_v48  ;;  %583 = vadd.xlane.f32.xlu1 %v456_v51  ;;  %581 = vadd.xlane.f32.xlu0 %v455_v63 }
 0x1a1   :  { %v494_v36 = vpop.xlane.xlu0 %493  ;;  %1361 = vmatprep.mubr.f32.mxu0 %v5466_v25  ;;  %v932_v28 = vadd.f32 %v4290_v27, %v861_v4  ;;  %v791_v49 = vmul.f32 %v3291_v0, %v5485_v10  ;;  %v3173_v4 = vpack.c.bf16 %v2373_v55, %v2372_v40  ;;  %v3750_v10 = vmov 0.0|0.0  }
 0x1a2   :  { %3296 = vrsqrt.f32 %v666_v52  ;;  %v603_v8 = vmul.f32 0.0078125, %v494_v36  ;;  %v5487_v36 = vld [vmem:[#allocation31_spill] sm:$0xff]  ;;  %3220 = vmatprep.subr.bf16.mxu1 %v3750_v10  ;;  %3172 = vmatprep.subr.bf16.mxu0 %v3750_v10 }
 0x1a3   :  { %1362 = vmatmul.mubr.f32.gmra.mrb[26].mxu0 %v932_v28  ;;  %v862_v22 = vmul.f32 %v4284_v54, %v791_v49  ;;  %3236 = vmatpush1.bf16.msra.mxu1 %v3173_v4 }
 0x1a4   :  { %v3293_v58 = vpop.eup %3292  ;;  %v667_v29 = vadd.f32 1e-05, %v603_v8  ;;  %1367 = vmatprep.mubr.f32.mxu0 %v5466_v25  ;;  %3174 = vmatpush1.bf16.msra.mxu0 %v3173_v4 }
 0x1a5   :  { %v496_v60 = vpop.xlane.xlu0 %495  ;;  %v933_v43 = vadd.f32 %v4290_v27, %v862_v22  ;;  %v792_v63 = vmul.f32 %v3293_v58, %v5486_v39  ;;  %3221 = vmatprep.subr.bf16.mxu1 %v3750_v10  ;;  %v2374_v22 = vld [vmem:[#allocation8 + $0x10] sm:$0xff]  ;;  %v2375_v58 = vld [vmem:[#allocation8 + $0x18] sm:$0xff]  ;;  %3175 = vmatprep.subr.bf16.mxu0 %v3750_v10 }
 0x1a6   :  { %3298 = vrsqrt.f32 %v667_v29  ;;  %v604_v57 = vmul.f32 0.0078125, %v496_v60 }
 0x1a7   :  { %1368 = vmatmul.mubr.f32.gmra.mrb[28].mxu0 %v933_v43  ;;  %v863_v44 = vmul.f32 %v4284_v54, %v792_v63  ;;  %v3176_v43 = vpack.c.bf16 %v2375_v58, %v2374_v22  ;;  %v2378_v58 = vld [vmem:[#allocation8 + $0x30] sm:$0xff] }
 0x1a8   :  { %v3295_v48 = vpop.eup %3294  ;;  %v668_v51 = vadd.f32 1e-05, %v604_v57  ;;  %1373 = vmatprep.mubr.f32.mxu0 %v5466_v25  ;;  %v5488_v57 = vld [vmem:[#allocation32_spill] sm:$0xff] }
 0x1a9   :  { %v498_v0 = vpop.xlane.xlu0 %497  ;;  %v934_v52 = vadd.f32 %v4290_v27, %v863_v44  ;;  %v793_v28 = vmul.f32 %v3295_v48, %v5487_v36  ;;  %3237 = vmatpush1.bf16.msra.mxu1 %v3176_v43  ;;  %3177 = vmatpush1.bf16.msra.mxu0 %v3176_v43  ;;  %v2376_v48 = vld [vmem:[#allocation8 + $0x20] sm:$0xff] }
 0x1aa   :  { %3300 = vrsqrt.f32 %v668_v51  ;;  %v605_v49 = vmul.f32 0.0078125, %v498_v0  ;;  %3222 = vmatprep.subr.bf16.mxu1 %v3750_v10  ;;  %v2377_v51 = vld [vmem:[#allocation8 + $0x28] sm:$0xff]  ;;  %3178 = vmatprep.subr.bf16.mxu0 %v3750_v10 }
 0x1ab   :  { %1374 = vmatmul.mubr.f32.gmra.mrb[30].mxu0 %v934_v52  ;;  %v864_v8 = vmul.f32 %v4284_v54, %v793_v28  ;;  %v3179_v52 = vpack.c.bf16 %v2377_v51, %v2376_v48  ;;  %v2381_v48 = vld [vmem:[#allocation8 + $0x48] sm:$0xff] }
 0x1ac   :  { %v3297_v29 = vpop.eup %3296  ;;  %v669_v60 = vadd.f32 1e-05, %v605_v49  ;;  %1379 = vmatprep.mubr.f32.mxu0 %v5466_v25 }
 0x1ad   :  { %v500_v39 = vpop.xlane.xlu0 %499  ;;  %v935_v63 = vadd.f32 %v4290_v27, %v864_v8  ;;  %v794_v44 = vmul.f32 %v3297_v29, %v5488_v57  ;;  %3238 = vmatpush1.bf16.msra.mxu1 %v3179_v52  ;;  %3180 = vmatpush1.bf16.msra.mxu0 %v3179_v52  ;;  %v2379_v29 = vld [vmem:[#allocation8 + $0x38] sm:$0xff] }
 0x1ae   :  { %3302 = vrsqrt.f32 %v669_v60  ;;  %v606_v40 = vmul.f32 0.0078125, %v500_v39  ;;  %3223 = vmatprep.subr.bf16.mxu1 %v3750_v10  ;;  %v3182_v39 = vpack.c.bf16 %v2379_v29, %v2378_v58  ;;  %3181 = vmatprep.subr.bf16.mxu0 %v3750_v10 }
 0x1af   :  { %1380 = vmatmul.mubr.f32.gmra.mrb[32].mxu0 %v935_v63  ;;  %v865_v55 = vmul.f32 %v4284_v54, %v794_v44 }
 0x1b0   :  { %v3299_v4 = vpop.eup %3298  ;;  %v670_v0 = vadd.f32 1e-05, %v606_v40  ;;  %1385 = vmatprep.mubr.f32.mxu0 %v5466_v25 }
 0x1b1   :  { %v502_v36 = vpop.xlane.xlu0 %501  ;;  %v936_v28 = vadd.f32 %v4290_v27, %v865_v55  ;;  %v795_v49 = vmul.f32 %v3299_v4, %v4135_v59  ;;  %3239 = vmatpush1.bf16.msra.mxu1 %v3182_v39  ;;  %3183 = vmatpush1.bf16.msra.mxu0 %v3182_v39  ;;  %v2380_v55 = vld [vmem:[#allocation8 + $0x40] sm:$0xff] }
 0x1b2   :  { %3304 = vrsqrt.f32 %v670_v0  ;;  %v607_v8 = vmul.f32 0.0078125, %v502_v36  ;;  %3224 = vmatprep.subr.bf16.mxu1 %v3750_v10  ;;  %v3185_v0 = vpack.c.bf16 %v2381_v48, %v2380_v55  ;;  %3184 = vmatprep.subr.bf16.mxu0 %v3750_v10 }
 0x1b3   :  { %1386 = vmatmul.mubr.f32.gmra.mrb[34].mxu0 %v936_v28  ;;  %v866_v22 = vmul.f32 %v4284_v54, %v795_v49 }
 0x1b4   :  { %v3301_v60 = vpop.eup %3300  ;;  %v671_v43 = vadd.f32 1e-05, %v607_v8  ;;  %1391 = vmatprep.mubr.f32.mxu0 %v5466_v25  ;;  %v2382_v8 = vld [vmem:[#allocation8 + $0x50] sm:$0xff] }
 0x1b5   :  { %v504_v63 = vpop.xlane.xlu0 %503  ;;  %v937_v59 = vadd.f32 %v4290_v27, %v866_v22  ;;  %v796_v57 = vmul.f32 %v3301_v60, %v4141_v15  ;;  %3240 = vmatpush1.bf16.msra.mxu1 %v3185_v0  ;;  %3186 = vmatpush1.bf16.msra.mxu0 %v3185_v0  ;;  %v2383_v22 = vld [vmem:[#allocation8 + $0x58] sm:$0xff] }
 0x1b6   :  { %3306 = vrsqrt.f32 %v671_v43  ;;  %v608_v44 = vmul.f32 0.0078125, %v504_v63  ;;  %3225 = vmatprep.subr.bf16.mxu1 %v3750_v10  ;;  %v3188_v60 = vpack.c.bf16 %v2383_v22, %v2382_v8  ;;  %3187 = vmatprep.subr.bf16.mxu0 %v3750_v10 }
 0x1b7   :  { %1392 = vmatmul.mubr.f32.gmra.mrb[36].mxu0 %v937_v59  ;;  %v867_v40 = vmul.f32 %v4284_v54, %v796_v57  ;;  %v2384_v57 = vld [vmem:[#allocation8 + $0x60] sm:$0xff] }
 0x1b8   :  { %v3303_v51 = vpop.eup %3302  ;;  %v672_v4 = vadd.f32 1e-05, %v608_v44  ;;  %1397 = vmatprep.mubr.f32.mxu0 %v5466_v25  ;;  %v2385_v44 = vld [vmem:[#allocation8 + $0x68] sm:$0xff] }
 0x1b9   :  { %v506_v52 = vpop.xlane.xlu0 %505  ;;  %v938_v15 = vadd.f32 %v4290_v27, %v867_v40  ;;  %v797_v36 = vmul.f32 %v3303_v51, %v4146_v13  ;;  %3241 = vmatpush1.bf16.msra.mxu1 %v3188_v60  ;;  %3189 = vmatpush1.bf16.msra.mxu0 %v3188_v60  ;;  %v3191_v48 = vpack.c.bf16 %v2385_v44, %v2384_v57 }
 0x1ba   :  { %3308 = vrsqrt.f32 %v672_v4  ;;  %v609_v28 = vmul.f32 0.0078125, %v506_v52  ;;  %3226 = vmatprep.subr.bf16.mxu1 %v3750_v10  ;;  %3190 = vmatprep.subr.bf16.mxu0 %v3750_v10 }
 0x1bb   :  { %1398 = vmatmul.mubr.f32.gmra.mrb[38].mxu0 %v938_v15  ;;  %v868_v49 = vmul.f32 %v4284_v54, %v797_v36  ;;  %v2386_v15 = vld [vmem:[#allocation8 + $0x70] sm:$0xff]  ;;  %v2387_v36 = vld [vmem:[#allocation8 + $0x78] sm:$0xff] }
 0x1bc   :  { %v3305_v58 = vpop.eup %3304  ;;  %v673_v29 = vadd.f32 1e-05, %v609_v28  ;;  %1403 = vmatprep.mubr.f32.mxu0 %v5466_v25  ;;  %v3194_v8 = vpack.c.bf16 %v2387_v36, %v2386_v15 }
 0x1bd   :  { %v508_v43 = vpop.xlane.xlu0 %507  ;;  %v939_v13 = vadd.f32 %v4290_v27, %v868_v49  ;;  %v798_v39 = vmul.f32 %v3305_v58, %v4151_v2  ;;  %3242 = vmatpush1.bf16.msra.mxu1 %v3191_v48  ;;  %3192 = vmatpush1.bf16.msra.mxu0 %v3191_v48  ;;  %v2390_v48 = vld [vmem:[#allocation8 + $0x90] sm:$0xff] }
 0x1be   :  { %3310 = vrsqrt.f32 %v673_v29  ;;  %v610_v63 = vmul.f32 0.0078125, %v508_v43  ;;  %3227 = vmatprep.subr.bf16.mxu1 %v3750_v10  ;;  %3193 = vmatprep.subr.bf16.mxu0 %v3750_v10  ;;  %v2388_v43 = vld [vmem:[#allocation8 + $0x80] sm:$0xff] }
 0x1bf   :  { %1404 = vmatmul.mubr.f32.gmra.mrb[40].mxu0 %v939_v13  ;;  %v869_v59 = vmul.f32 %v4284_v54, %v798_v39  ;;  %v2389_v13 = vld [vmem:[#allocation8 + $0x88] sm:$0xff] }
 0x1c0   :  { %v3307_v40 = vpop.eup %3306  ;;  %v674_v55 = vadd.f32 1e-05, %v610_v63  ;;  %1409 = vmatprep.mubr.f32.mxu0 %v5466_v25 }
 0x1c1   :  { %v510_v51 = vpop.xlane.xlu0 %509  ;;  %v940_v2 = vadd.f32 %v4290_v27, %v869_v59  ;;  %v799_v4 = vmul.f32 %v3307_v40, %v4156_v16  ;;  %3243 = vmatpush1.bf16.msra.mxu1 %v3194_v8  ;;  %3195 = vmatpush1.bf16.msra.mxu0 %v3194_v8  ;;  %v3197_v59 = vpack.c.bf16 %v2389_v13, %v2388_v43  ;;  %v2393_v8 = vld [vmem:[#allocation8 + $0xa8] sm:$0xff] }
 0x1c2   :  { %3312 = vrsqrt.f32 %v674_v55  ;;  %v611_v0 = vmul.f32 0.0078125, %v510_v51  ;;  %3228 = vmatprep.subr.bf16.mxu1 %v3750_v10  ;;  %3196 = vmatprep.subr.bf16.mxu0 %v3750_v10  ;;  %v2391_v51 = vld [vmem:[#allocation8 + $0x98] sm:$0xff] }
 0x1c3   :  { %1410 = vmatmul.mubr.f32.gmra.mrb[42].mxu0 %v940_v2  ;;  %v870_v52 = vmul.f32 %v4284_v54, %v799_v4 }
 0x1c4   :  { %v3309_v28 = vpop.eup %3308  ;;  %v675_v49 = vadd.f32 1e-05, %v611_v0  ;;  %1415 = vmatprep.mubr.f32.mxu0 %v5466_v25  ;;  %v3200_v0 = vpack.c.bf16 %v2391_v51, %v2390_v48  ;;  %v2396_v51 = vld [vmem:[#allocation8 + $0xc0] sm:$0xff] }
 0x1c5   :  { %v512_v22 = vpop.xlane.xlu0 %511  ;;  %v941_v16 = vadd.f32 %v4290_v27, %v870_v52  ;;  %v800_v58 = vmul.f32 %v3309_v28, %v4161_v14  ;;  %3244 = vmatpush1.bf16.msra.mxu1 %v3197_v59  ;;  %3198 = vmatpush1.bf16.msra.mxu0 %v3197_v59 }
 0x1c6   :  { %3314 = vrsqrt.f32 %v675_v49  ;;  %v612_v29 = vmul.f32 0.0078125, %v512_v22  ;;  %3229 = vmatprep.subr.bf16.mxu1 %v3750_v10  ;;  %3199 = vmatprep.subr.bf16.mxu0 %v3750_v10  ;;  %v2392_v49 = vld [vmem:[#allocation8 + $0xa0] sm:$0xff] }
 0x1c7   :  { %1416 = vmatmul.mubr.f32.gmra.mrb[44].mxu0 %v941_v16  ;;  %v871_v60 = vmul.f32 %v4284_v54, %v800_v58  ;;  %v3203_v58 = vpack.c.bf16 %v2393_v8, %v2392_v49  ;;  %v2398_v49 = vld [vmem:[#allocation8 + $0xd0] sm:$0xff]  ;;  %v2399_v8 = vld [vmem:[#allocation8 + $0xd8] sm:$0xff] }
 0x1c8   :  { %v3311_v39 = vpop.eup %3310  ;;  %v676_v63 = vadd.f32 1e-05, %v612_v29  ;;  %1421 = vmatprep.mubr.f32.mxu0 %v5466_v25 }
 0x1c9   :  { %v514_v57 = vpop.xlane.xlu0 %513  ;;  %v942_v14 = vadd.f32 %v4290_v27, %v871_v60  ;;  %v801_v44 = vmul.f32 %v3311_v39, %v4166_v3  ;;  %3245 = vmatpush1.bf16.msra.mxu1 %v3200_v0  ;;  %3201 = vmatpush1.bf16.msra.mxu0 %v3200_v0  ;;  %v2394_v39 = vld [vmem:[#allocation8 + $0xb0] sm:$0xff] }
 0x1ca   :  { %3316 = vrsqrt.f32 %v676_v63  ;;  %v613_v40 = vmul.f32 0.0078125, %v514_v57  ;;  %3230 = vmatprep.subr.bf16.mxu1 %v3750_v10  ;;  %3202 = vmatprep.subr.bf16.mxu0 %v3750_v10  ;;  %v2395_v63 = vld [vmem:[#allocation8 + $0xb8] sm:$0xff] }
 0x1cb   :  { %1422 = vmatmul.mubr.f32.gmra.mrb[46].mxu0 %v942_v14  ;;  %v872_v55 = vmul.f32 %v4284_v54, %v801_v44  ;;  %v3206_v14 = vpack.c.bf16 %v2395_v63, %v2394_v39  ;;  %v2401_v39 = vld [vmem:[#allocation8 + $0xe8] sm:$0xff] }
 0x1cc   :  { %v3313_v2 = vpop.eup %3312  ;;  %v677_v4 = vadd.f32 1e-05, %v613_v40  ;;  %1427 = vmatprep.mubr.f32.mxu0 %v5466_v25 }
 0x1cd   :  { %v516_v52 = vpop.xlane.xlu0 %515  ;;  %v943_v3 = vadd.f32 %v4290_v27, %v872_v55  ;;  %v802_v15 = vmul.f32 %v3313_v2, %v4169_v62  ;;  %3246 = vmatpush1.bf16.msra.mxu1 %v3203_v58  ;;  %3204 = vmatpush1.bf16.msra.mxu0 %v3203_v58  ;;  %v2397_v2 = vld [vmem:[#allocation8 + $0xc8] sm:$0xff]  ;;  %v3212_v58 = vpack.c.bf16 %v2399_v8, %v2398_v49 }
 0x1ce   :  { %3318 = vrsqrt.f32 %v677_v4  ;;  %v614_v36 = vmul.f32 0.0078125, %v516_v52  ;;  %3231 = vmatprep.subr.bf16.mxu1 %v3750_v10  ;;  %3205 = vmatprep.subr.bf16.mxu0 %v3750_v10  ;;  %v3209_v52 = vpack.c.bf16 %v2397_v2, %v2396_v51 }
 0x1cf   :  { %1428 = vmatmul.mubr.f32.gmra.mrb[48].mxu0 %v943_v3  ;;  %v873_v28 = vmul.f32 %v4284_v54, %v802_v15 }
 0x1d0   :  { %v3315_v22 = vpop.eup %3314  ;;  %v678_v16 = vadd.f32 1e-05, %v614_v36  ;;  %1433 = vmatprep.mubr.f32.mxu0 %v5466_v25 }
 0x1d1   :  { %v518_v29 = vpop.xlane.xlu0 %517  ;;  %v944_v62 = vadd.f32 %v4290_v27, %v873_v28  ;;  %v803_v60 = vmul.f32 %v3315_v22, %v4174_v17  ;;  %3247 = vmatpush1.bf16.msra.mxu1 %v3206_v14  ;;  %3207 = vmatpush1.bf16.msra.mxu0 %v3206_v14 }
 0x1d2   :  { %3320 = vrsqrt.f32 %v678_v16  ;;  %v615_v43 = vmul.f32 0.0078125, %v518_v29  ;;  %3232 = vmatprep.subr.bf16.mxu1 %v3750_v10  ;;  %3208 = vmatprep.subr.bf16.mxu0 %v3750_v10 }
 0x1d3   :  { %1434 = vmatmul.mubr.f32.gmra.mrb[50].mxu0 %v944_v62  ;;  %v874_v13 = vmul.f32 %v4284_v54, %v803_v60 }
 0x1d4   :  { %v3317_v59 = vpop.eup %3316  ;;  %v679_v57 = vadd.f32 1e-05, %v615_v43  ;;  %1439 = vmatprep.mubr.f32.mxu0 %v5466_v25 }
 0x1d5   :  { %v520_v44 = vpop.xlane.xlu0 %519  ;;  %v945_v17 = vadd.f32 %v4290_v27, %v874_v13  ;;  %v804_v40 = vmul.f32 %v3317_v59, %v4179_v5  ;;  %3248 = vmatpush1.bf16.msra.mxu1 %v3209_v52  ;;  %3210 = vmatpush1.bf16.msra.mxu0 %v3209_v52  ;;  %v2400_v13 = vld [vmem:[#allocation8 + $0xe0] sm:$0xff] }
 0x1d6   :  { %3322 = vrsqrt.f32 %v679_v57  ;;  %v616_v55 = vmul.f32 0.0078125, %v520_v44  ;;  %3233 = vmatprep.subr.bf16.mxu1 %v3750_v10  ;;  %3211 = vmatprep.subr.bf16.mxu0 %v3750_v10  ;;  %v3215_v57 = vpack.c.bf16 %v2401_v39, %v2400_v13 }
 0x1d7   :  { %1440 = vmatmul.mubr.f32.gmra.mrb[52].mxu0 %v945_v17  ;;  %v875_v48 = vmul.f32 %v4284_v54, %v804_v40 }
 0x1d8   :  { %v3319_v4 = vpop.eup %3318  ;;  %v680_v0 = vadd.f32 1e-05, %v616_v55  ;;  %1445 = vmatprep.mubr.f32.mxu0 %v5466_v25  ;;  %v2402_v55 = vld [vmem:[#allocation8 + $0xf0] sm:$0xff] }
 0x1d9   :  { %v522_v3 = vpop.xlane.xlu0 %521  ;;  %v946_v5 = vadd.f32 %v4290_v27, %v875_v48  ;;  %v805_v15 = vmul.f32 %v3319_v4, %v4184_v50  ;;  %3249 = vmatpush1.bf16.msra.mxu1 %v3212_v58  ;;  %3213 = vmatpush1.bf16.msra.mxu0 %v3212_v58  ;;  %v2403_v48 = vld [vmem:[#allocation8 + $0xf8] sm:$0xff] }
 0x1da   :  { %3324 = vrsqrt.f32 %v680_v0  ;;  %v617_v36 = vmul.f32 0.0078125, %v522_v3  ;;  %3234 = vmatprep.subr.bf16.mxu1 %v3750_v10  ;;  %3214 = vmatprep.subr.bf16.mxu0 %v3750_v10  ;;  %v3218_v4 = vpack.c.bf16 %v2403_v48, %v2402_v55 }
 0x1db   :  { %1446 = vmatmul.mubr.f32.gmra.mrb[54].mxu0 %v946_v5  ;;  %v876_v28 = vmul.f32 %v4284_v54, %v805_v15 }
 0x1dc   :  { %v3321_v22 = vpop.eup %3320  ;;  %v681_v16 = vadd.f32 1e-05, %v617_v36  ;;  %1451 = vmatprep.mubr.f32.mxu0 %v5466_v25 }
 0x1dd   :  { %v524_v29 = vpop.xlane.xlu0 %523  ;;  %v947_v50 = vadd.f32 %v4290_v27, %v876_v28  ;;  %v806_v62 = vmul.f32 %v3321_v22, %v4189_v11  ;;  %3250 = vmatpush1.bf16.msra.mxu1 %v3215_v57  ;;  %3216 = vmatpush1.bf16.msra.mxu0 %v3215_v57  ;;  %v5489_v28 = vld [vmem:[#allocation33_spill] sm:$0xff] }
 0x1de   :  { %3326 = vrsqrt.f32 %v681_v16  ;;  %v618_v60 = vmul.f32 0.0078125, %v524_v29  ;;  %3235 = vmatprep.subr.bf16.mxu1 %v3750_v10  ;;  %3217 = vmatprep.subr.bf16.mxu0 %v3750_v10 }
 0x1df   :  { %1452 = vmatmul.mubr.f32.gmra.mrb[56].mxu0 %v947_v50  ;;  %v877_v43 = vmul.f32 %v4284_v54, %v806_v62 }
 0x1e0   :  { %v3323_v63 = vpop.eup %3322  ;;  %v682_v59 = vadd.f32 1e-05, %v618_v60  ;;  %1457 = vmatprep.mubr.f32.mxu0 %v5466_v25 }
 0x1e1   :  { %v526_v14 = vpop.xlane.xlu0 %525  ;;  %v948_v11 = vadd.f32 %v4290_v27, %v877_v43  ;;  %v807_v44 = vmul.f32 %v3323_v63, %v4194_v53  ;;  %3251 = vmatpush1.bf16.msra.mxu1 %v3218_v4  ;;  %3219 = vmatpush1.bf16.msra.mxu0 %v3218_v4 }
 0x1e2   :  { %3328 = vrsqrt.f32 %v682_v59  ;;  %v619_v17 = vmul.f32 0.0078125, %v526_v14 }
 0x1e3   :  { %1458 = vmatmul.mubr.f32.gmra.mrb[58].mxu0 %v948_v11  ;;  %v878_v40 = vmul.f32 %v4284_v54, %v807_v44  ;;  %v4555_v54 = vld [vmem:[%s5407_s1] ss:$0 sm:$0xff] }
 0x1e4   :  { %v3325_v51 = vpop.eup %3324  ;;  %v683_v2 = vadd.f32 1e-05, %v619_v17  ;;  %1463 = vmatprep.mubr.f32.mxu0 %v5466_v25 }
 0x1e5   :  { %v528_v0 = vpop.xlane.xlu0 %527  ;;  %v949_v53 = vadd.f32 %v4290_v27, %v878_v40  ;;  %v808_v52 = vmul.f32 %v3325_v51, %v4199_v6  ;;  %v4562_v6 = vld [vmem:[%s5408_s2] ss:$0 sm:$0xff] }
 0x1e6   :  { %3330 = vrsqrt.f32 %v683_v2  ;;  %v620_v3 = vmul.f32 0.0078125, %v528_v0 }
 0x1e7   :  { %1464 = vmatmul.mubr.f32.gmra.mrb[60].mxu0 %v949_v53  ;;  %v879_v5 = vmul.f32 %v4555_v54, %v808_v52 }
 0x1e8   :  { %v3327_v15 = vpop.eup %3326  ;;  %v684_v36 = vadd.f32 1e-05, %v620_v3  ;;  %1469 = vmatprep.mubr.f32.mxu0 %v5466_v25 }
 0x1e9   :  { %v530_v10 = vpop.xlane.xlu0 %529  ;;  %v950_v27 = vadd.f32 %v4562_v6, %v879_v5  ;;  %v809_v49 = vmul.f32 %v3327_v15, %v5489_v28 }
 0x1ea   :  { %v621_v8 = vmul.f32 0.0078125, %v530_v10  ;;  %3332 = vrsqrt.f32 %v684_v36 }
 0x1eb   :  { %1470 = vmatmul.mubr.f32.gmra.mrb[62].mxu0 %v950_v27  ;;  %v880_v22 = vmul.f32 %v4555_v54, %v809_v49 }
 0x1ec   :  { %v3329_v16 = vpop.eup %3328  ;;  %v685_v58 = vadd.f32 1e-05, %v621_v8  ;;  %1475 = vmatprep.mubr.f32.mxu0 %v5466_v25 }
 0x1ed   :  { %v532_v29 = vpop.xlane.xlu0 %531  ;;  %v951_v50 = vadd.f32 %v4562_v6, %v880_v22  ;;  %v810_v62 = vmul.f32 %v3329_v16, %v4211_v56  ;;  %v548_v16 = vpop.xlane.xlu1 %547 }
 0x1ee   :  { %3334 = vrsqrt.f32 %v685_v58  ;;  %v622_v60 = vmul.f32 0.0078125, %v532_v29 }
 0x1ef   :  { %1476 = vmatmul.mubr.f32.gmra.mrb[64].mxu0 %v951_v50  ;;  %v881_v43 = vmul.f32 %v4555_v54, %v810_v62 }
 0x1f0   :  { %v3331_v13 = vpop.eup %3330  ;;  %v686_v39 = vadd.f32 1e-05, %v622_v60  ;;  %1481 = vmatprep.mubr.f32.mxu0 %v5466_v25  ;;  %v630_v60 = vmul.f32 0.0078125, %v548_v16 }
 0x1f1   :  { %v534_v63 = vpop.xlane.xlu0 %533  ;;  %v952_v59 = vadd.f32 %v4562_v6, %v881_v43  ;;  %v811_v57 = vmul.f32 %v3331_v13, %v4218_v32 }
 0x1f2   :  { %v623_v14 = vmul.f32 0.0078125, %v534_v63  ;;  %3336 = vrsqrt.f32 %v686_v39 }
 0x1f3   :  { %1482 = vmatmul.mubr.f32.gmra.mrb[66].mxu0 %v952_v59  ;;  %v882_v11 = vmul.f32 %v4555_v54, %v811_v57 }
 0x1f4   :  { %v687_v56 = vadd.f32 1e-05, %v623_v14  ;;  %1487 = vmatprep.mubr.f32.mxu0 %v5466_v25  ;;  %v3333_v44 = vpop.eup %3332  ;;  %v694_v14 = vadd.f32 1e-05, %v630_v60 }
 0x1f5   :  { %v536_v17 = vpop.xlane.xlu0 %535  ;;  %v953_v40 = vadd.f32 %v4562_v6, %v882_v11  ;;  %v812_v48 = vmul.f32 %v3333_v44, %v4225_v33  ;;  %v552_v44 = vpop.xlane.xlu1 %551 }
 0x1f6   :  { %3338 = vrsqrt.f32 %v687_v56  ;;  %v624_v55 = vmul.f32 0.0078125, %v536_v17 }
 0x1f7   :  { %1488 = vmatmul.mubr.f32.gmra.mrb[68].mxu0 %v953_v40  ;;  %v883_v32 = vmul.f32 %v4555_v54, %v812_v48 }
 0x1f8   :  { %v3335_v51 = vpop.eup %3334  ;;  %v688_v2 = vadd.f32 1e-05, %v624_v55  ;;  %1493 = vmatprep.mubr.f32.mxu0 %v5466_v25 }
 0x1f9   :  { %v538_v4 = vpop.xlane.xlu0 %537  ;;  %v813_v0 = vmul.f32 %v3335_v51, %v4230_v34  ;;  %v954_v52 = vadd.f32 %v4562_v6, %v883_v32  ;;  %v632_v51 = vmul.f32 0.0078125, %v552_v44 }
 0x1fa   :  { %v625_v53 = vmul.f32 0.0078125, %v538_v4  ;;  %3340 = vrsqrt.f32 %v688_v2 }
 0x1fb   :  { %v884_v3 = vmul.f32 %v4555_v54, %v813_v0  ;;  %1494 = vmatmul.mubr.f32.gmra.mrb[70].mxu0 %v954_v52 }
 0x1fc   :  { %v689_v5 = vadd.f32 1e-05, %v625_v53  ;;  %v3337_v15 = vpop.eup %3336  ;;  %1499 = vmatprep.mubr.f32.mxu0 %v5466_v25 }
 0x1fd   :  { %v540_v33 = vpop.xlane.xlu0 %539  ;;  %v955_v36 = vadd.f32 %v4562_v6, %v884_v3  ;;  %v814_v27 = vmul.f32 %v3337_v15, %v4242_v20  ;;  %v696_v3 = vadd.f32 1e-05, %v632_v51 }
 0x1fe   :  { %3342 = vrsqrt.f32 %v689_v5  ;;  %v626_v10 = vmul.f32 0.0078125, %v540_v33  ;;  %v556_v33 = vpop.xlane.xlu1 %555 }
 0x1ff   :  { %1500 = vmatmul.mubr.f32.gmra.mrb[72].mxu0 %v955_v36  ;;  %v885_v49 = vmul.f32 %v4555_v54, %v814_v27 }
 0x200   :  { %v3339_v28 = vpop.eup %3338  ;;  %v690_v34 = vadd.f32 1e-05, %v626_v10  ;;  %1505 = vmatprep.mubr.f32.mxu0 %v5466_v25 }
 0x201   :  { %v542_v8 = vpop.xlane.xlu0 %541  ;;  %v815_v22 = vmul.f32 %v3339_v28, %v4249_v30  ;;  %v956_v29 = vadd.f32 %v4562_v6, %v885_v49  ;;  %v634_v28 = vmul.f32 0.0078125, %v556_v33 }
 0x202   :  { %v627_v58 = vmul.f32 0.0078125, %v542_v8  ;;  %3344 = vrsqrt.f32 %v690_v34 }
 0x203   :  { %v886_v50 = vmul.f32 %v4555_v54, %v815_v22  ;;  %1506 = vmatmul.mubr.f32.gmra.mrb[74].mxu0 %v956_v29  ;;  %v698_v29 = vadd.f32 1e-05, %v634_v28 }
 0x204   :  { %v691_v62 = vadd.f32 1e-05, %v627_v58  ;;  %v3341_v20 = vpop.eup %3340  ;;  %1511 = vmatprep.mubr.f32.mxu0 %v5466_v25 }
 0x205   :  { %v544_v43 = vpop.xlane.xlu0 %543  ;;  %v957_v13 = vadd.f32 %v4562_v6, %v886_v50  ;;  %v816_v30 = vmul.f32 %v3341_v20, %v4259_v9  ;;  %v560_v20 = vpop.xlane.xlu1 %559 }
 0x206   :  { %3346 = vrsqrt.f32 %v691_v62  ;;  %v628_v39 = vmul.f32 0.0078125, %v544_v43  ;;  %v5490_v43 = vld [vmem:[#allocation34_spill] sm:$0xff] }
 0x207   :  { %1512 = vmatmul.mubr.f32.gmra.mrb[76].mxu0 %v957_v13  ;;  %v887_v57 = vmul.f32 %v4555_v54, %v816_v30  ;;  %v636_v30 = vmul.f32 0.0078125, %v560_v20 }
 0x208   :  { %v3343_v63 = vpop.eup %3342  ;;  %v692_v59 = vadd.f32 1e-05, %v628_v39  ;;  %1517 = vmatprep.mubr.f32.mxu0 %v5466_v25 }
 0x209   :  { %v546_v11 = vpop.xlane.xlu0 %545  ;;  %v817_v56 = vmul.f32 %v3343_v63, %v4264_v46  ;;  %v958_v40 = vadd.f32 %v4562_v6, %v887_v57 }
 0x20a   :  { %v629_v17 = vmul.f32 0.0078125, %v546_v11  ;;  %3348 = vrsqrt.f32 %v692_v59 }
 0x20b   :  { %v888_v55 = vmul.f32 %v4555_v54, %v817_v56  ;;  %1518 = vmatmul.mubr.f32.gmra.mrb[78].mxu0 %v958_v40  ;;  %3350 = vrsqrt.f32 %v694_v14  ;;  %v700_v56 = vadd.f32 1e-05, %v636_v30 }
 0x20c   :  { %v693_v48 = vadd.f32 1e-05, %v629_v17  ;;  %v3345_v9 = vpop.eup %3344  ;;  %1523 = vmatprep.mubr.f32.mxu0 %v5466_v25  ;;  %v564_v17 = vpop.xlane.xlu1 %563 }
 0x20d   :  { %v550_v2 = vpop.xlane.xlu0 %549  ;;  %v959_v32 = vadd.f32 %v4562_v6, %v888_v55  ;;  %v818_v46 = vmul.f32 %v3345_v9, %v4276_v26  ;;  %v638_v51 = vmul.f32 0.0078125, %v564_v17 }
 0x20e   :  { %3352 = vrsqrt.f32 %v693_v48  ;;  %v631_v4 = vmul.f32 0.0078125, %v550_v2 }
 0x20f   :  { %1524 = vmatmul.mubr.f32.gmra.mrb[80].mxu0 %v959_v32  ;;  %v889_v52 = vmul.f32 %v4555_v54, %v818_v46 }
 0x210   :  { %v3347_v0 = vpop.eup %3346  ;;  %v695_v53 = vadd.f32 1e-05, %v631_v4  ;;  %1529 = vmatprep.mubr.f32.mxu0 %v5466_v25 }
 0x211   :  { %v554_v5 = vpop.xlane.xlu0 %553  ;;  %v819_v15 = vmul.f32 %v3347_v0, %v4296_v18  ;;  %v960_v10 = vadd.f32 %v4562_v6, %v889_v52  ;;  %v568_v52 = vpop.xlane.xlu1 %567 }
 0x212   :  { %v633_v36 = vmul.f32 0.0078125, %v554_v5  ;;  %3354 = vrsqrt.f32 %v695_v53  ;;  %v702_v53 = vadd.f32 1e-05, %v638_v51 }
 0x213   :  { %v890_v27 = vmul.f32 %v4555_v54, %v819_v15  ;;  %1530 = vmatmul.mubr.f32.gmra.mrb[82].mxu0 %v960_v10  ;;  %3356 = vrsqrt.f32 %v696_v3  ;;  %v5491_v15 = vld [vmem:[#allocation35_spill] sm:$0xff]  ;;  %v640_v10 = vmul.f32 0.0078125, %v568_v52 }
 0x214   :  { %v3349_v26 = vpop.eup %3348  ;;  %v697_v34 = vadd.f32 1e-05, %v633_v36  ;;  %1535 = vmatprep.mubr.f32.mxu0 %v5466_v25 }
 0x215   :  { %v961_v49 = vadd.f32 %v4562_v6, %v890_v27  ;;  %v558_v8 = vpop.xlane.xlu0 %557  ;;  %v820_v22 = vmul.f32 %v3349_v26, %v4310_v47  ;;  %v3351_v18 = vpop.eup %3350 }
 0x216   :  { %3358 = vrsqrt.f32 %v697_v34  ;;  %v635_v50 = vmul.f32 0.0078125, %v558_v8  ;;  %v822_v13 = vmul.f32 %v3351_v18, %v5490_v43  ;;  %v704_v8 = vadd.f32 1e-05, %v640_v10  ;;  %v572_v18 = vpop.xlane.xlu1 %571 }
 0x217   :  { %1536 = vmatmul.mubr.f32.gmra.mrb[84].mxu0 %v961_v49  ;;  %v891_v58 = vmul.f32 %v4555_v54, %v820_v22  ;;  %3360 = vrsqrt.f32 %v698_v29  ;;  %v5492_v29 = vld [vmem:[#allocation36_spill] sm:$0xff] }
 0x218   :  { %v3353_v16 = vpop.eup %3352  ;;  %1541 = vmatprep.mubr.f32.mxu0 %v5466_v25  ;;  %v699_v63 = vadd.f32 1e-05, %v635_v50  ;;  %v893_v14 = vmul.f32 %v4555_v54, %v822_v13 }
 0x219   :  { %v821_v62 = vmul.f32 %v3353_v16, %v4321_v42  ;;  %v962_v60 = vadd.f32 %v4562_v6, %v891_v58  ;;  %v562_v57 = vpop.xlane.xlu0 %561 }
 0x21a   :  { %3362 = vrsqrt.f32 %v699_v63  ;;  %v637_v44 = vmul.f32 0.0078125, %v562_v57  ;;  %v964_v40 = vadd.f32 %v4562_v6, %v893_v14 }
 0x21b   :  { %v892_v39 = vmul.f32 %v4555_v54, %v821_v62  ;;  %1542 = vmatmul.mubr.f32.gmra.mrb[86].mxu0 %v962_v60  ;;  %3364 = vrsqrt.f32 %v700_v56  ;;  %v642_v60 = vmul.f32 0.0078125, %v572_v18  ;;  %v5493_v56 = vld [vmem:[#allocation15_spill] sm:$0xff] }
 0x21c   :  { %v3355_v47 = vpop.eup %3354  ;;  %1547 = vmatprep.mubr.f32.mxu0 %v5466_v25  ;;  %v701_v2 = vadd.f32 1e-05, %v637_v44 }
 0x21d   :  { %v963_v59 = vadd.f32 %v4562_v6, %v892_v39  ;;  %v823_v42 = vmul.f32 %v3355_v47, %v4334_v23  ;;  %v3357_v11 = vpop.eup %3356  ;;  %v566_v23 = vpop.xlane.xlu0 %565 }
 0x21e   :  { %v824_v48 = vmul.f32 %v3357_v11, %v4252_v37  ;;  %3366 = vrsqrt.f32 %v701_v2  ;;  %v639_v37 = vmul.f32 0.0078125, %v566_v23  ;;  %v576_v43 = vpop.xlane.xlu1 %575 }
 0x21f   :  { %1548 = vmatmul.mubr.f32.gmra.mrb[88].mxu0 %v963_v59  ;;  %v894_v55 = vmul.f32 %v4555_v54, %v823_v42  ;;  %3368 = vrsqrt.f32 %v702_v53  ;;  %v706_v59 = vadd.f32 1e-05, %v642_v60 }
 0x220   :  { %1553 = vmatprep.mubr.f32.mxu0 %v5466_v25  ;;  %v3359_v9 = vpop.eup %3358  ;;  %v895_v4 = vmul.f32 %v4555_v54, %v824_v48  ;;  %v703_v27 = vadd.f32 1e-05, %v639_v37  ;;  %v5494_v37 = vld [vmem:[#allocation13_spill] sm:$0xff] }
 0x221   :  { %v965_v32 = vadd.f32 %v4562_v6, %v894_v55  ;;  %v825_v46 = vmul.f32 %v3359_v9, %v4347_v38  ;;  %v3361_v0 = vpop.eup %3360  ;;  %v570_v38 = vpop.xlane.xlu0 %569 }
 0x222   :  { %v966_v3 = vadd.f32 %v4562_v6, %v895_v4  ;;  %v826_v33 = vmul.f32 %v3361_v0, %v5491_v15  ;;  %3370 = vrsqrt.f32 %v703_v27  ;;  %v641_v22 = vmul.f32 0.0078125, %v570_v38 }
 0x223   :  { %1554 = vmatmul.mubr.f32.gmra.mrb[90].mxu0 %v964_v40  ;;  %v896_v5 = vmul.f32 %v4555_v54, %v825_v46  ;;  %3372 = vrsqrt.f32 %v704_v8  ;;  %v644_v40 = vmul.f32 0.0078125, %v576_v43  ;;  %v1207_v8 = vld [vmem:[%s5410_s4] sm:$0x3] }
 0x224   :  { %1559 = vmatprep.mubr.f32.mxu0 %v5466_v25  ;;  %v3363_v36 = vpop.eup %3362  ;;  %v897_v28 = vmul.f32 %v4555_v54, %v826_v33 }
 0x225   :  { %v967_v26 = vadd.f32 %v4562_v6, %v896_v5  ;;  %v827_v34 = vmul.f32 %v3363_v36, %v4360_v35  ;;  %v3365_v49 = vpop.eup %3364  ;;  %v574_v20 = vpop.xlane.xlu0 %573  ;;  %v705_v35 = vadd.f32 1e-05, %v641_v22  ;;  %v708_v4 = vadd.f32 1e-05, %v644_v40 }
 0x226   :  { %v968_v16 = vadd.f32 %v4562_v6, %v897_v28  ;;  %v828_v50 = vmul.f32 %v3365_v49, %v5492_v29  ;;  %v643_v63 = vmul.f32 0.0078125, %v574_v20  ;;  %v580_v14 = vpop.xlane.xlu1 %579 }
 0x227   :  { %1560 = vmatmul.mubr.f32.gmra.mrb[92].mxu0 %v965_v32  ;;  %v898_v58 = vmul.f32 %v4555_v54, %v827_v34  ;;  %3374 = vrsqrt.f32 %v705_v35  ;;  %v646_v9 = vmul.f32 0.0078125, %v580_v14 }
 0x228   :  { %1565 = vmatprep.mubr.f32.mxu0 %v5466_v25  ;;  %v3367_v62 = vpop.eup %3366  ;;  %v899_v39 = vmul.f32 %v4555_v54, %v828_v50  ;;  %v707_v55 = vadd.f32 1e-05, %v643_v63  ;;  %3376 = vrsqrt.f32 %v706_v59 }
 0x229   :  { %v969_v13 = vadd.f32 %v4562_v6, %v898_v58  ;;  %v829_v47 = vmul.f32 %v3367_v62, %v4370_v21  ;;  %v3369_v30 = vpop.eup %3368  ;;  %v578_v57 = vpop.xlane.xlu0 %577  ;;  %v1209_v21 = vlaneseq  ;;  %v710_v5 = vadd.f32 1e-05, %v646_v9 }
 0x22a   :  { %v970_v42 = vadd.f32 %v4562_v6, %v899_v39  ;;  %v830_v44 = vmul.f32 %v3369_v30, %v5493_v56  ;;  %v645_v46 = vmul.f32 0.0078125, %v578_v57  ;;  %3378 = vrsqrt.f32 %v707_v55 }
 0x22b   :  { %1566 = vmatmul.mubr.f32.gmra.mrb[94].mxu0 %v966_v3  ;;  %v900_v11 = vmul.f32 %v4555_v54, %v829_v47  ;;  %v1210_v52 = vshrl.u32 %v1209_v21, 7  ;;  %3380 = vrsqrt.f32 %v708_v4 }
 0x22c   :  { %1571 = vmatprep.mubr.f32.mxu0 %v5466_v25  ;;  %v3371_v17 = vpop.eup %3370  ;;  %v901_v23 = vmul.f32 %v4555_v54, %v830_v44  ;;  %3382 = vrsqrt.f32 %v710_v5 }
 0x22d   :  { %v3373_v48 = vpop.eup %3372  ;;  %v584_v51 = vpop.xlane.xlu1 %583  ;;  %v971_v2 = vadd.f32 %v4562_v6, %v900_v11  ;;  %v831_v32 = vmul.f32 %v3371_v17, %v4383_v7  ;;  %v709_v7 = vadd.f32 1e-05, %v645_v46  ;;  %v1215_v28 = vsub.s32 1, %v1210_v52 }
 0x22e   :  { %v582_v0 = vpop.xlane.xlu0 %581  ;;  %v648_v53 = vmul.f32 0.0078125, %v584_v51  ;;  %v832_v3 = vmul.f32 %v3373_v48, %v5494_v37  ;;  %v972_v36 = vadd.f32 %v4562_v6, %v901_v23  ;;  %v1211_v50 = vsub.s32 0, %v1210_v52 }
 0x22f   :  { %1572 = vmatmul.mubr.f32.gmra.mrb[96].mxu0 %v967_v26  ;;  %v647_v15 = vmul.f32 0.0078125, %v582_v0  ;;  %v902_v10 = vmul.f32 %v4555_v54, %v831_v32  ;;  %3384 = vrsqrt.f32 %v709_v7  ;;  %v4663_v62 = vrot.slane %v1207_v8, %v1215_v28 }
 0x230   :  { %1577 = vmatprep.mubr.f32.mxu0 %v5466_v25  ;;  %v712_v26 = vadd.f32 1e-05, %v648_v53  ;;  %v903_v34 = vmul.f32 %v4555_v54, %v832_v3  ;;  %v4669_v47 = vrot.slane %v1207_v8, %v1211_v50 }
 0x231   :  { %v3375_v27 = vpop.eup %3374  ;;  %v711_v49 = vadd.f32 1e-05, %v647_v15  ;;  %v973_v18 = vadd.f32 %v4562_v6, %v902_v10 }
 0x232   :  { %v3377_v58 = vpop.eup %3376  ;;  %3386 = vrsqrt.f32 %v712_v26  ;;  %v974_v35 = vadd.f32 %v4562_v6, %v903_v34 }
 0x233   :  { %1578 = vmatmul.mubr.f32.gmra.mrb[98].mxu0 %v968_v16  ;;  %v833_v16 = vmul.f32 %v3375_v27, %v4395_v61  ;;  %3388 = vrsqrt.f32 %v711_v49 }
 0x234   :  { %1583 = vmatprep.mubr.f32.mxu0 %v5466_v25  ;;  %v3379_v20 = vpop.eup %3378 }
 0x235   :  { %v904_v43 = vmul.f32 %v4555_v54, %v833_v16  ;;  %v3381_v39 = vpop.eup %3380  ;;  %v835_v30 = vmul.f32 %v3379_v20, %v4407_v31 }
 0x236   :  { %v836_v11 = vmul.f32 %v3381_v39, %v4398_v45 }
 0x237   :  { %1584 = vmatmul.mubr.f32.gmra.mrb[100].mxu0 %v969_v13  ;;  %v834_v13 = vmul.f32 %v3377_v58, %v4373_v41  ;;  %v975_v57 = vadd.f32 %v4562_v6, %v904_v43  ;;  %v3383_v41 = vpop.eup %3382  ;;  %v906_v31 = vmul.f32 %v4555_v54, %v835_v30 }
 0x238   :  { %1589 = vmatprep.mubr.f32.mxu0 %v5466_v25  ;;  %v907_v23 = vmul.f32 %v4555_v54, %v836_v11  ;;  %v838_v4 = vmul.f32 %v3383_v41, %v4419_v1 }
 0x239   :  { %v905_v14 = vmul.f32 %v4555_v54, %v834_v13  ;;  %v3385_v56 = vpop.eup %3384  ;;  %v977_v52 = vadd.f32 %v4562_v6, %v906_v31 }
 0x23a   :  { %v837_v32 = vmul.f32 %v3385_v56, %v4416_v19  ;;  %v978_v27 = vadd.f32 %v4562_v6, %v907_v23  ;;  %v909_v7 = vmul.f32 %v4555_v54, %v838_v4 }
 0x23b   :  { %1590 = vmatmul.mubr.f32.gmra.mrb[102].mxu0 %v970_v42  ;;  %v976_v21 = vadd.f32 %v4562_v6, %v905_v14 }
 0x23c   :  { %1595 = vmatprep.mubr.f32.mxu0 %v5466_v25  ;;  %v3387_v48 = vpop.eup %3386  ;;  %v908_v28 = vmul.f32 %v4555_v54, %v837_v32 }
 0x23d   :  { %v3389_v51 = vpop.eup %3388 }
 0x23f   :  { %1596 = vmatmul.mubr.f32.gmra.mrb[104].mxu0 %v971_v2 }
 0x240   :  { %1601 = vmatprep.mubr.f32.mxu0 %v5466_v25 }
 0x242   :  { %v1285_v33 = vpop.f32.mrb[0].mxu0 }
 0x243   :  { %v1287_v38 = vpop.f32.mrb[1].mxu0  ;;  %1602 = vmatmul.mubr.f32.gmra.mrb[106].mxu0 %v972_v36  ;;  %v4682_v44 = vadd.f32 %v1285_v33, %v4669_v47  ;;  %v839_v33 = vmul.f32 %v3389_v51, %v4430_v24  ;;  %v840_v36 = vmul.f32 %v3387_v48, %v4439_v12 }
 0x244   :  { %1607 = vmatprep.mubr.f32.mxu0 %v5466_v25  ;;  %v4674_v63 = vadd.f32 %v1287_v38, %v4663_v62 }
 0x245   :  { %v1796_v46 = vmul.f32 0.70710677, %v4682_v44  ;;  %v911_v16 = vmul.f32 %v4555_v54, %v840_v36 }
 0x246   :  { %v1291_v22 = vpop.f32.mrb[2].mxu0  ;;  %v1797_v17 = vmul.f32 0.70710677, %v4674_v63 }
 0x247   :  { %v1293_v29 = vpop.f32.mrb[3].mxu0  ;;  %1608 = vmatmul.mubr.f32.gmra.mrb[108].mxu0 %v973_v18  ;;  %v4688_v40 = vadd.f32 %v1291_v22, %v4669_v47  ;;  %v910_v18 = vmul.f32 %v4555_v54, %v839_v33 }
 0x248   :  { %1613 = vmatprep.mubr.f32.mxu0 %v5466_v25  ;;  %v1294_v0 = vadd.f32 %v1293_v29, %v4663_v62  ;;  %3390 = verf.f32 %v1797_v17  ;;  %v980_v29 = vadd.f32 %v4562_v6, %v909_v7 }
 0x249   :  { %v1798_v37 = vmul.f32 0.70710677, %v4688_v40  ;;  %v981_v30 = vadd.f32 %v4562_v6, %v910_v18  ;;  %v4761_v56 = vmul.f32 0.5, %v4688_v40 }
 0x24a   :  { %v1297_v60 = vpop.f32.mrb[4].mxu0  ;;  %v1799_v38 = vmul.f32 0.70710677, %v1294_v0  ;;  %v4763_v31 = vmul.f32 0.5, %v1294_v0 }
 0x24b   :  { %v1299_v61 = vpop.f32.mrb[5].mxu0  ;;  %1614 = vmatmul.mubr.f32.gmra.mrb[110].mxu0 %v974_v35  ;;  %v1298_v24 = vadd.f32 %v1297_v60, %v4669_v47  ;;  %v979_v60 = vadd.f32 %v4562_v6, %v908_v28 }
 0x24c   :  { %1619 = vmatprep.mubr.f32.mxu0 %v5466_v25  ;;  %v4707_v3 = vadd.f32 %v1299_v61, %v4663_v62 }
 0x24d   :  { %v1800_v35 = vmul.f32 0.70710677, %v1298_v24 }
 0x24e   :  { %v4676_v59 = vpop.f32.mrb[6].mxu0  ;;  %v1801_v12 = vmul.f32 0.70710677, %v4707_v3 }
 0x24f   :  { %v1305_v42 = vpop.f32.mrb[7].mxu0  ;;  %1620 = vmatmul.mubr.f32.gmra.mrb[112].mxu0 %v975_v57  ;;  %v4743_v54 = vadd.f32 %v4676_v59, %v4669_v47  ;;  %v4751_v57 = vadd.f32 %v4562_v6, %v911_v16  ;;  %v1669_v59 = vmul.f32 0.5, %v4674_v63 }
 0x250   :  { %1625 = vmatprep.mubr.f32.mxu0 %v5466_v25  ;;  %v4736_v50 = vadd.f32 %v1305_v42, %v4663_v62  ;;  %v4754_v42 = vmul.f32 0.5, %v4682_v44 }
 0x251   :  { %v1802_v63 = vmul.f32 0.70710677, %v4743_v54 }
 0x252   :  { %v1309_v55 = vpop.f32.mrb[8].mxu0  ;;  %v3391_v14 = vpop.eup %3390  ;;  %v1803_v6 = vmul.f32 0.70710677, %v4736_v50 }
 0x253   :  { %v4692_v9 = vadd.f32 %v1309_v55, %v4669_v47  ;;  %v1311_v45 = vpop.f32.mrb[9].mxu0  ;;  %1626 = vmatmul.mubr.f32.gmra.mrb[114].mxu0 %v976_v21 }
 0x254   :  { %v4695_v2 = vadd.f32 %v1311_v45, %v4663_v62  ;;  %1631 = vmatprep.mubr.f32.mxu0 %v5466_v25 }
 0x255   :  { %v1804_v53 = vmul.f32 0.70710677, %v4692_v9  ;;  %v1676_v0 = vmul.f32 0.5, %v4692_v9 }
 0x256   :  { %v1805_v19 = vmul.f32 0.70710677, %v4695_v2  ;;  %v1315_v5 = vpop.f32.mrb[10].mxu0  ;;  %v1677_v23 = vmul.f32 0.5, %v4695_v2 }
 0x257   :  { %3392 = verf.f32 %v1804_v53  ;;  %v4711_v1 = vadd.f32 %v1315_v5, %v4669_v47  ;;  %v1317_v15 = vpop.f32.mrb[11].mxu0  ;;  %1632 = vmatmul.mubr.f32.gmra.mrb[116].mxu0 %v977_v52 }
 0x258   :  { %3394 = verf.f32 %v1805_v19  ;;  %v4716_v10 = vadd.f32 %v1317_v15, %v4663_v62  ;;  %1637 = vmatprep.mubr.f32.mxu0 %v5466_v25 }
 0x259   :  { %3396 = verf.f32 %v1796_v46  ;;  %v1806_v26 = vmul.f32 0.70710677, %v4711_v1  ;;  %v4774_v46 = vmul.f32 0.5, %v1298_v24 }
 0x25a   :  { %3398 = verf.f32 %v1798_v37  ;;  %v1807_v34 = vmul.f32 0.70710677, %v4716_v10  ;;  %v1321_v49 = vpop.f32.mrb[12].mxu0  ;;  %v2053_v37 = vadd.f32 1.0, %v3391_v14  ;;  %v1679_v7 = vmul.f32 0.5, %v4716_v10 }
 0x25b   :  { %3400 = verf.f32 %v1806_v26  ;;  %v4727_v8 = vadd.f32 %v1321_v49, %v4669_v47  ;;  %v1323_v22 = vpop.f32.mrb[13].mxu0  ;;  %1638 = vmatmul.mubr.f32.gmra.mrb[118].mxu0 %v978_v27 }
 0x25c   :  { %3402 = verf.f32 %v1807_v34  ;;  %v4732_v58 = vadd.f32 %v1323_v22, %v4663_v62  ;;  %1643 = vmatprep.mubr.f32.mxu0 %v5466_v25  ;;  %v1678_v34 = vmul.f32 0.5, %v4711_v1 }
 0x25d   :  { %3404 = verf.f32 %v1799_v38  ;;  %v1808_v20 = vmul.f32 0.70710677, %v4727_v8 }
 0x25e   :  { %3406 = verf.f32 %v1801_v12  ;;  %v1809_v43 = vmul.f32 0.70710677, %v4732_v58  ;;  %v1327_v13 = vpop.f32.mrb[14].mxu0  ;;  %v1673_v12 = vmul.f32 0.5, %v4707_v3 }
 0x25f   :  { %3408 = verf.f32 %v1808_v20  ;;  %v4747_v61 = vadd.f32 %v1327_v13, %v4669_v47  ;;  %v1329_v39 = vpop.f32.mrb[15].mxu0  ;;  %1644 = vmatmul.mubr.f32.gmra.mrb[120].mxu0 %v979_v60  ;;  %v1681_v13 = vmul.f32 0.5, %v4732_v58 }
 0x260   :  { %3410 = verf.f32 %v1809_v43  ;;  %v4758_v41 = vadd.f32 %v1329_v39, %v4663_v62  ;;  %1649 = vmatprep.mubr.f32.mxu0 %v5466_v25 }
 0x261   :  { %v3393_v11 = vpop.eup %3392  ;;  %v1810_v17 = vmul.f32 0.70710677, %v4747_v61  ;;  %3412 = verf.f32 %v1800_v35 }
 0x262   :  { %v3395_v44 = vpop.eup %3394  ;;  %v2060_v55 = vadd.f32 1.0, %v3393_v11  ;;  %v1811_v21 = vmul.f32 0.70710677, %v4758_v41  ;;  %v1333_v48 = vpop.f32.mrb[16].mxu0 }
 0x263   :  { %v3397_v45 = vpop.eup %3396  ;;  %3414 = verf.f32 %v1810_v17  ;;  %v4771_v40 = vadd.f32 %v1333_v48, %v4669_v47  ;;  %v1335_v51 = vpop.f32.mrb[17].mxu0  ;;  %v2061_v32 = vadd.f32 1.0, %v3395_v44  ;;  %1650 = vmatmul.mubr.f32.gmra.mrb[122].mxu0 %v980_v29  ;;  %v2181_v29 = vmul.f32 %v2053_v37, %v1669_v59 }
 0x264   :  { %v3399_v4 = vpop.eup %3398  ;;  %3416 = verf.f32 %v1811_v21  ;;  %v4778_v53 = vadd.f32 %v1335_v51, %v4663_v62  ;;  %1655 = vmatprep.mubr.f32.mxu0 %v5466_v25  ;;  %v2188_v9 = vmul.f32 %v2060_v55, %v1676_v0  ;;  %v2052_v10 = vadd.f32 1.0, %v3397_v45 }
 0x265   :  { %v3401_v52 = vpop.eup %3400  ;;  %3418 = verf.f32 %v1803_v6  ;;  %v1812_v19 = vmul.f32 0.70710677, %v4771_v40  ;;  %v2189_v5 = vmul.f32 %v2061_v32, %v1677_v23  ;;  %v1680_v59 = vmul.f32 0.5, %v4727_v8 }
 0x266   :  { %v3403_v2 = vpop.eup %3402  ;;  %3420 = verf.f32 %v1802_v63  ;;  %v2062_v15 = vadd.f32 1.0, %v3401_v52  ;;  %v1813_v33 = vmul.f32 0.70710677, %v4778_v53  ;;  %v1339_v36 = vpop.f32.mrb[18].mxu0  ;;  %v2180_v58 = vmul.f32 %v2052_v10, %v4754_v42 }
 0x267   :  { %v3405_v27 = vpop.eup %3404  ;;  %v2063_v38 = vadd.f32 1.0, %v3403_v2  ;;  %3422 = verf.f32 %v1812_v19  ;;  %v4785_v26 = vadd.f32 %v1339_v36, %v4669_v47  ;;  %v1341_v28 = vpop.f32.mrb[19].mxu0  ;;  %2488 = vmatprep.mubr.f32.mxu1 %v2189_v5  ;;  %1656 = vmatmul.mubr.f32.gmra.mrb[124].mxu0 %v981_v30  ;;  %v1682_v37 = vmul.f32 0.5, %v4747_v61 }
 0x268   :  { %v3407_v24 = vpop.eup %3406  ;;  %3424 = verf.f32 %v1813_v33  ;;  %v4790_v49 = vadd.f32 %v1341_v28, %v4663_v62  ;;  %2489 = vmatmul.mubr.f32.vlgmr.msra.gmra.mrb[0].mxu1 %v2188_v9  ;;  %1661 = vmatprep.mubr.f32.mxu0 %v5466_v25  ;;  %v2055_v60 = vadd.f32 1.0, %v3405_v27  ;;  %v2190_v43 = vmul.f32 %v2062_v15, %v1678_v34 }
 0x269   :  { %v3409_v22 = vpop.eup %3408  ;;  %v1814_v18 = vmul.f32 0.70710677, %v4785_v26  ;;  %v2191_v16 = vmul.f32 %v2063_v38, %v1679_v7  ;;  %v2054_v25 = vadd.f32 1.0, %v3399_v4  ;;  %v2057_v44 = vadd.f32 1.0, %v3407_v24 }
 0x26a   :  { %v3411_v20 = vpop.eup %3410  ;;  %v2064_v35 = vadd.f32 1.0, %v3409_v22  ;;  %v1815_v3 = vmul.f32 0.70710677, %v4790_v49  ;;  %v1345_v1 = vpop.f32.mrb[20].mxu0  ;;  %v2183_v51 = vmul.f32 %v2055_v60, %v4763_v31  ;;  %v1685_v28 = vmul.f32 0.5, %v4778_v53 }
 0x26b   :  { %v2065_v39 = vadd.f32 1.0, %v3411_v20  ;;  %3426 = verf.f32 %v1814_v18  ;;  %v4797_v30 = vadd.f32 %v1345_v1, %v4669_v47  ;;  %v1347_v14 = vpop.f32.mrb[21].mxu0  ;;  %2493 = vmatprep.mubr.f32.mxu1 %v2191_v16  ;;  %v3413_v11 = vpop.eup %3412  ;;  %1662 = vmatmul.mubr.f32.gmra.mrb[126].mxu0 %v4751_v57  ;;  %v1683_v57 = vmul.f32 0.5, %v4758_v41 }
 0x26c   :  { %3428 = verf.f32 %v1815_v3  ;;  %v4801_v6 = vadd.f32 %v1347_v14, %v4663_v62  ;;  %2494 = vmatmul.mubr.f32.gmra.mrb[2].mxu1 %v2190_v43  ;;  %2468 = vmatprep.mubr.f32.mxu0 %v2181_v29  ;;  %v2192_v23 = vmul.f32 %v2064_v35, %v1680_v59  ;;  %v2182_v31 = vmul.f32 %v2054_v25, %v4761_v56 }
 0x26d   :  { %v3415_v17 = vpop.eup %3414  ;;  %v1816_v63 = vmul.f32 0.70710677, %v4797_v30  ;;  %v2193_v55 = vmul.f32 %v2065_v39, %v1681_v13  ;;  %v2056_v41 = vadd.f32 1.0, %v3413_v11  ;;  %v2185_v33 = vmul.f32 %v2057_v44, %v1673_v12 }
 0x26e   :  { %v3417_v21 = vpop.eup %3416  ;;  %v2066_v48 = vadd.f32 1.0, %v3415_v17  ;;  %v1817_v45 = vmul.f32 0.70710677, %v4801_v6  ;;  %v1351_v8 = vpop.f32.mrb[22].mxu0  ;;  %v1675_v22 = vmul.f32 0.5, %v4736_v50  ;;  %v1684_v12 = vmul.f32 0.5, %v4771_v40 }
 0x26f   :  { %v3419_v32 = vpop.eup %3418  ;;  %v2067_v4 = vadd.f32 1.0, %v3417_v21  ;;  %3430 = verf.f32 %v1816_v63  ;;  %v4810_v42 = vadd.f32 %v1351_v8, %v4669_v47  ;;  %v1353_v0 = vpop.f32.mrb[23].mxu0  ;;  %2498 = vmatprep.mubr.f32.mxu1 %v2193_v55  ;;  %2469 = vmatmul.mubr.f32.vlgmr.msra.gmra.mrb[128].mxu0 %v2180_v58  ;;  %v2184_v29 = vmul.f32 %v2056_v41, %v4774_v46 }
 0x270   :  { %v3421_v52 = vpop.eup %3420  ;;  %3432 = verf.f32 %v1817_v45  ;;  %v4814_v19 = vadd.f32 %v1353_v0, %v4663_v62  ;;  %2499 = vmatmul.mubr.f32.gmra.mrb[4].mxu1 %v2192_v23  ;;  %2473 = vmatprep.mubr.f32.mxu0 %v2183_v51  ;;  %v2059_v9 = vadd.f32 1.0, %v3419_v32  ;;  %v2194_v38 = vmul.f32 %v2066_v48, %v1682_v37 }
 0x271   :  { %v3423_v5 = vpop.eup %3422  ;;  %v1818_v2 = vmul.f32 0.70710677, %v4810_v42  ;;  %v2195_v15 = vmul.f32 %v2067_v4, %v1683_v57  ;;  %v2058_v16 = vadd.f32 1.0, %v3421_v52  ;;  %v1687_v43 = vmul.f32 0.5, %v4790_v49 }
 0x272   :  { %v3425_v36 = vpop.eup %3424  ;;  %v2068_v27 = vadd.f32 1.0, %v3423_v5  ;;  %v1819_v61 = vmul.f32 0.70710677, %v4814_v19  ;;  %v1357_v7 = vpop.f32.mrb[24].mxu0  ;;  %v2187_v40 = vmul.f32 %v2059_v9, %v1675_v22  ;;  %v1674_v11 = vmul.f32 0.5, %v4743_v54 }
 0x273   :  { %v2069_v24 = vadd.f32 1.0, %v3425_v36  ;;  %3434 = verf.f32 %v1818_v2  ;;  %v4821_v56 = vadd.f32 %v1357_v7, %v4669_v47  ;;  %v1359_v34 = vpop.f32.mrb[25].mxu0  ;;  %2503 = vmatprep.mubr.f32.mxu1 %v2195_v15  ;;  %2474 = vmatmul.mubr.f32.gmra.mrb[130].mxu0 %v2182_v31  ;;  %v1686_v46 = vmul.f32 0.5, %v4785_v26 }
 0x274   :  { %3436 = verf.f32 %v1819_v61  ;;  %v4826_v10 = vadd.f32 %v1359_v34, %v4663_v62  ;;  %2504 = vmatmul.mubr.f32.gmra.mrb[6].mxu1 %v2194_v38  ;;  %2478 = vmatprep.mubr.f32.mxu0 %v2185_v33  ;;  %v2196_v1 = vmul.f32 %v2068_v27, %v1684_v12  ;;  %v2186_v21 = vmul.f32 %v2058_v16, %v1674_v11 }
 0x275   :  { %v3427_v18 = vpop.eup %3426  ;;  %v1820_v53 = vmul.f32 0.70710677, %v4821_v56  ;;  %v2197_v20 = vmul.f32 %v2069_v24, %v1685_v28  ;;  %v1689_v26 = vmul.f32 0.5, %v4801_v6  ;;  %v1688_v51 = vmul.f32 0.5, %v4797_v30 }
 0x276   :  { %v3429_v60 = vpop.eup %3428  ;;  %v2070_v35 = vadd.f32 1.0, %v3427_v18  ;;  %v1821_v50 = vmul.f32 0.70710677, %v4826_v10  ;;  %v1363_v3 = vpop.f32.mrb[26].mxu0  ;;  %v1691_v5 = vmul.f32 0.5, %v4814_v19  ;;  %v1690_v15 = vmul.f32 0.5, %v4810_v42 }
 0x277   :  { %v2071_v13 = vadd.f32 1.0, %v3429_v60  ;;  %3438 = verf.f32 %v1820_v53  ;;  %v4833_v39 = vadd.f32 %v1363_v3, %v4669_v47  ;;  %v1365_v14 = vpop.f32.mrb[27].mxu0  ;;  %2508 = vmatprep.mubr.f32.mxu1 %v2197_v20  ;;  %2479 = vmatmul.mubr.f32.gmra.mrb[132].mxu0 %v2184_v29  ;;  %v1693_v24 = vmul.f32 0.5, %v4826_v10 }
 0x278   :  { %3440 = verf.f32 %v1821_v50  ;;  %v4838_v25 = vadd.f32 %v1365_v14, %v4663_v62  ;;  %2509 = vmatmul.mubr.f32.gmra.mrb[8].mxu1 %v2196_v1  ;;  %2483 = vmatprep.mubr.f32.mxu0 %v2187_v40  ;;  %v2198_v54 = vmul.f32 %v2070_v35, %v1686_v46  ;;  %v1692_v12 = vmul.f32 0.5, %v4821_v56 }
 0x279   :  { %v3431_v59 = vpop.eup %3430  ;;  %v1822_v49 = vmul.f32 0.70710677, %v4833_v39  ;;  %v2199_v17 = vmul.f32 %v2071_v13, %v1687_v43  ;;  %v1694_v43 = vmul.f32 0.5, %v4833_v39 }
 0x27a   :  { %v3433_v58 = vpop.eup %3432  ;;  %v2072_v44 = vadd.f32 1.0, %v3431_v59  ;;  %v1823_v63 = vmul.f32 0.70710677, %v4838_v25  ;;  %v1369_v55 = vpop.f32.mrb[28].mxu0  ;;  %v1695_v3 = vmul.f32 0.5, %v4838_v25 }
 0x27b   :  { %v2073_v48 = vadd.f32 1.0, %v3433_v58  ;;  %3442 = verf.f32 %v1822_v49  ;;  %v4844_v45 = vadd.f32 %v1369_v55, %v4669_v47  ;;  %v1371_v8 = vpop.f32.mrb[29].mxu0  ;;  %2513 = vmatprep.mubr.f32.mxu1 %v2199_v17  ;;  %2484 = vmatmul.mubr.f32.gmra.mrb[134].mxu0 %v2186_v21 }
 0x27c   :  { %3444 = verf.f32 %v1823_v63  ;;  %v4848_v23 = vadd.f32 %v1371_v8, %v4663_v62  ;;  %2514 = vmatmul.mubr.f32.gmra.mrb[10].mxu1 %v2198_v54  ;;  %v2200_v31 = vmul.f32 %v2072_v44, %v1688_v51 }
 0x27d   :  { %v3435_v32 = vpop.eup %3434  ;;  %v1824_v57 = vmul.f32 0.70710677, %v4844_v45  ;;  %v2201_v4 = vmul.f32 %v2073_v48, %v1689_v26  ;;  %v1696_v21 = vmul.f32 0.5, %v4844_v45 }
 0x27e   :  { %v3437_v6 = vpop.eup %3436  ;;  %v2074_v0 = vadd.f32 1.0, %v3435_v32  ;;  %v1825_v52 = vmul.f32 0.70710677, %v4848_v23  ;;  %v1375_v37 = vpop.f32.mrb[30].mxu0  ;;  %v1697_v44 = vmul.f32 0.5, %v4848_v23 }
 0x27f   :  { %v2075_v41 = vadd.f32 1.0, %v3437_v6  ;;  %3446 = verf.f32 %v1824_v57  ;;  %v4854_v30 = vadd.f32 %v1375_v37, %v4669_v47  ;;  %v1377_v2 = vpop.f32.mrb[31].mxu0  ;;  %2518 = vmatprep.mubr.f32.mxu1 %v2201_v4 }
 0x280   :  { %3448 = verf.f32 %v1825_v52  ;;  %v4858_v33 = vadd.f32 %v1377_v2, %v4663_v62  ;;  %2519 = vmatmul.mubr.f32.gmra.mrb[12].mxu1 %v2200_v31  ;;  %v2202_v28 = vmul.f32 %v2074_v0, %v1690_v15 }
 0x281   :  { %v3439_v36 = vpop.eup %3438  ;;  %v1826_v9 = vmul.f32 0.70710677, %v4854_v30  ;;  %v2203_v27 = vmul.f32 %v2075_v41, %v1691_v5  ;;  %v1698_v37 = vmul.f32 0.5, %v4854_v30 }
 0x282   :  { %v3441_v61 = vpop.eup %3440  ;;  %v2076_v19 = vadd.f32 1.0, %v3439_v36  ;;  %v1827_v7 = vmul.f32 0.70710677, %v4858_v33  ;;  %v1381_v38 = vpop.f32.mrb[32].mxu0  ;;  %v1699_v6 = vmul.f32 0.5, %v4858_v33 }
 0x283   :  { %v2077_v34 = vadd.f32 1.0, %v3441_v61  ;;  %3450 = verf.f32 %v1826_v9  ;;  %v4864_v42 = vadd.f32 %v1381_v38, %v4669_v47  ;;  %v1383_v22 = vpop.f32.mrb[33].mxu0  ;;  %2523 = vmatprep.mubr.f32.mxu1 %v2203_v27 }
 0x284   :  { %3452 = verf.f32 %v1827_v7  ;;  %v4868_v18 = vadd.f32 %v1383_v22, %v4663_v62  ;;  %2524 = vmatmul.mubr.f32.gmra.mrb[14].mxu1 %v2202_v28  ;;  %v2204_v50 = vmul.f32 %v2076_v19, %v1692_v12 }
 0x285   :  { %v3443_v16 = vpop.eup %3442  ;;  %v1828_v53 = vmul.f32 0.70710677, %v4864_v42  ;;  %v2205_v29 = vmul.f32 %v2077_v34, %v1693_v24  ;;  %v1700_v38 = vmul.f32 0.5, %v4864_v42 }
 0x286   :  { %v3445_v20 = vpop.eup %3444  ;;  %v2078_v10 = vadd.f32 1.0, %v3443_v16  ;;  %v1829_v60 = vmul.f32 0.70710677, %v4868_v18  ;;  %v1387_v35 = vpop.f32.mrb[34].mxu0  ;;  %v1701_v61 = vmul.f32 0.5, %v4868_v18 }
 0x287   :  { %v2079_v40 = vadd.f32 1.0, %v3445_v20  ;;  %3454 = verf.f32 %v1828_v53  ;;  %v4874_v56 = vadd.f32 %v1387_v35, %v4669_v47  ;;  %v1389_v1 = vpop.f32.mrb[35].mxu0  ;;  %2528 = vmatprep.mubr.f32.mxu1 %v2205_v29 }
 0x288   :  { %3456 = verf.f32 %v1829_v60  ;;  %v4878_v13 = vadd.f32 %v1389_v1, %v4663_v62  ;;  %2529 = vmatmul.mubr.f32.gmra.mrb[16].mxu1 %v2204_v50  ;;  %v2206_v58 = vmul.f32 %v2078_v10, %v1694_v43 }
 0x289   :  { %v3447_v14 = vpop.eup %3446  ;;  %v1830_v11 = vmul.f32 0.70710677, %v4874_v56  ;;  %v2207_v46 = vmul.f32 %v2079_v40, %v1695_v3  ;;  %v1702_v35 = vmul.f32 0.5, %v4874_v56 }
 0x28a   :  { %v3449_v59 = vpop.eup %3448  ;;  %v2080_v25 = vadd.f32 1.0, %v3447_v14  ;;  %v1831_v49 = vmul.f32 0.70710677, %v4878_v13  ;;  %v1393_v17 = vpop.f32.mrb[36].mxu0  ;;  %v1703_v20 = vmul.f32 0.5, %v4878_v13 }
 0x28b   :  { %v2081_v63 = vadd.f32 1.0, %v3449_v59  ;;  %3458 = verf.f32 %v1830_v11  ;;  %v4884_v39 = vadd.f32 %v1393_v17, %v4669_v47  ;;  %v1395_v55 = vpop.f32.mrb[37].mxu0  ;;  %2533 = vmatprep.mubr.f32.mxu1 %v2207_v46 }
 0x28c   :  { %3460 = verf.f32 %v1831_v49  ;;  %v4888_v54 = vadd.f32 %v1395_v55, %v4663_v62  ;;  %2534 = vmatmul.mubr.f32.gmra.mrb[18].mxu1 %v2206_v58  ;;  %v2208_v4 = vmul.f32 %v2080_v25, %v1696_v21 }
 0x28d   :  { %v3451_v26 = vpop.eup %3450  ;;  %v1832_v48 = vmul.f32 0.70710677, %v4884_v39  ;;  %v2209_v8 = vmul.f32 %v2081_v63, %v1697_v44  ;;  %v1704_v17 = vmul.f32 0.5, %v4884_v39 }
 0x28e   :  { %v3453_v51 = vpop.eup %3452  ;;  %v2082_v23 = vadd.f32 1.0, %v3451_v26  ;;  %v1833_v32 = vmul.f32 0.70710677, %v4888_v54  ;;  %v1399_v57 = vpop.f32.mrb[38].mxu0  ;;  %v1705_v59 = vmul.f32 0.5, %v4888_v54 }
 0x28f   :  { %v2083_v0 = vadd.f32 1.0, %v3453_v51  ;;  %3462 = verf.f32 %v1832_v48  ;;  %v4894_v45 = vadd.f32 %v1399_v57, %v4669_v47  ;;  %v1401_v52 = vpop.f32.mrb[39].mxu0  ;;  %2538 = vmatprep.mubr.f32.mxu1 %v2209_v8 }
 0x290   :  { %3464 = verf.f32 %v1833_v32  ;;  %v4898_v31 = vadd.f32 %v1401_v52, %v4663_v62  ;;  %2539 = vmatmul.mubr.f32.gmra.mrb[20].mxu1 %v2208_v4  ;;  %v2210_v27 = vmul.f32 %v2082_v23, %v1698_v37 }
 0x291   :  { %v3455_v5 = vpop.eup %3454  ;;  %v1834_v41 = vmul.f32 0.70710677, %v4894_v45  ;;  %v2211_v2 = vmul.f32 %v2083_v0, %v1699_v6  ;;  %v1706_v57 = vmul.f32 0.5, %v4894_v45 }
 0x292   :  { %v3457_v15 = vpop.eup %3456  ;;  %v2084_v33 = vadd.f32 1.0, %v3455_v5  ;;  %v1835_v36 = vmul.f32 0.70710677, %v4898_v31  ;;  %v1405_v9 = vpop.f32.mrb[40].mxu0  ;;  %v1707_v51 = vmul.f32 0.5, %v4898_v31 }
 0x293   :  { %v2085_v19 = vadd.f32 1.0, %v3457_v15  ;;  %3466 = verf.f32 %v1834_v41  ;;  %v4904_v30 = vadd.f32 %v1405_v9, %v4669_v47  ;;  %v1407_v7 = vpop.f32.mrb[41].mxu0  ;;  %2543 = vmatprep.mubr.f32.mxu1 %v2211_v2 }
 0x294   :  { %3468 = verf.f32 %v1835_v36  ;;  %v4908_v28 = vadd.f32 %v1407_v7, %v4663_v62  ;;  %2544 = vmatmul.mubr.f32.gmra.mrb[22].mxu1 %v2210_v27  ;;  %v2212_v29 = vmul.f32 %v2084_v33, %v1700_v38 }
 0x295   :  { %v3459_v24 = vpop.eup %3458  ;;  %v1836_v34 = vmul.f32 0.70710677, %v4904_v30  ;;  %v2213_v22 = vmul.f32 %v2085_v19, %v1701_v61  ;;  %v1708_v9 = vmul.f32 0.5, %v4904_v30 }
 0x296   :  { %v3461_v12 = vpop.eup %3460  ;;  %v2086_v18 = vadd.f32 1.0, %v3459_v24  ;;  %v1837_v16 = vmul.f32 0.70710677, %v4908_v28  ;;  %v1411_v53 = vpop.f32.mrb[42].mxu0  ;;  %v1709_v15 = vmul.f32 0.5, %v4908_v28 }
 0x297   :  { %v2087_v10 = vadd.f32 1.0, %v3461_v12  ;;  %3470 = verf.f32 %v1836_v34  ;;  %v4914_v42 = vadd.f32 %v1411_v53, %v4669_v47  ;;  %v1413_v60 = vpop.f32.mrb[43].mxu0  ;;  %2548 = vmatprep.mubr.f32.mxu1 %v2213_v22 }
 0x298   :  { %3472 = verf.f32 %v1837_v16  ;;  %v4918_v50 = vadd.f32 %v1413_v60, %v4663_v62  ;;  %2549 = vmatmul.mubr.f32.gmra.mrb[24].mxu1 %v2212_v29  ;;  %v2214_v46 = vmul.f32 %v2086_v18, %v1702_v35 }
 0x299   :  { %v3463_v3 = vpop.eup %3462  ;;  %v1838_v40 = vmul.f32 0.70710677, %v4914_v42  ;;  %v2215_v1 = vmul.f32 %v2087_v10, %v1703_v20  ;;  %v1710_v53 = vmul.f32 0.5, %v4914_v42 }
 0x29a   :  { %v3465_v43 = vpop.eup %3464  ;;  %v2088_v13 = vadd.f32 1.0, %v3463_v3  ;;  %v1839_v14 = vmul.f32 0.70710677, %v4918_v50  ;;  %v1417_v11 = vpop.f32.mrb[44].mxu0  ;;  %v1711_v12 = vmul.f32 0.5, %v4918_v50 }
 0x29b   :  { %v2089_v25 = vadd.f32 1.0, %v3465_v43  ;;  %3474 = verf.f32 %v1838_v40  ;;  %v4924_v56 = vadd.f32 %v1417_v11, %v4669_v47  ;;  %v1419_v49 = vpop.f32.mrb[45].mxu0  ;;  %2553 = vmatprep.mubr.f32.mxu1 %v2215_v1 }
 0x29c   :  { %3476 = verf.f32 %v1839_v14  ;;  %v4928_v58 = vadd.f32 %v1419_v49, %v4663_v62  ;;  %2554 = vmatmul.mubr.f32.gmra.mrb[26].mxu1 %v2214_v46  ;;  %v2216_v8 = vmul.f32 %v2088_v13, %v1704_v17 }
 0x29d   :  { %v3467_v44 = vpop.eup %3466  ;;  %v1840_v63 = vmul.f32 0.70710677, %v4924_v56  ;;  %v2217_v55 = vmul.f32 %v2089_v25, %v1705_v59  ;;  %v1712_v11 = vmul.f32 0.5, %v4924_v56 }
 0x29e   :  { %v3469_v21 = vpop.eup %3468  ;;  %v2090_v54 = vadd.f32 1.0, %v3467_v44  ;;  %v1841_v26 = vmul.f32 0.70710677, %v4928_v58  ;;  %v1423_v48 = vpop.f32.mrb[46].mxu0  ;;  %v1713_v43 = vmul.f32 0.5, %v4928_v58 }
 0x29f   :  { %v2091_v23 = vadd.f32 1.0, %v3469_v21  ;;  %3478 = verf.f32 %v1840_v63  ;;  %v4934_v39 = vadd.f32 %v1423_v48, %v4669_v47  ;;  %v1425_v32 = vpop.f32.mrb[47].mxu0  ;;  %2558 = vmatprep.mubr.f32.mxu1 %v2217_v55 }
 0x2a0   :  { %3480 = verf.f32 %v1841_v26  ;;  %v4938_v4 = vadd.f32 %v1425_v32, %v4663_v62  ;;  %2559 = vmatmul.mubr.f32.gmra.mrb[28].mxu1 %v2216_v8  ;;  %v2218_v2 = vmul.f32 %v2090_v54, %v1706_v57 }
 0x2a1   :  { %v3471_v6 = vpop.eup %3470  ;;  %v1842_v0 = vmul.f32 0.70710677, %v4934_v39  ;;  %v2219_v52 = vmul.f32 %v2091_v23, %v1707_v51  ;;  %v1714_v48 = vmul.f32 0.5, %v4934_v39 }
 0x2a2   :  { %v3473_v37 = vpop.eup %3472  ;;  %v2092_v31 = vadd.f32 1.0, %v3471_v6  ;;  %v1843_v5 = vmul.f32 0.70710677, %v4938_v4  ;;  %v1429_v41 = vpop.f32.mrb[48].mxu0  ;;  %v1715_v21 = vmul.f32 0.5, %v4938_v4 }
 0x2a3   :  { %v2093_v33 = vadd.f32 1.0, %v3473_v37  ;;  %3482 = verf.f32 %v1842_v0  ;;  %v4944_v45 = vadd.f32 %v1429_v41, %v4669_v47  ;;  %v1431_v36 = vpop.f32.mrb[49].mxu0  ;;  %2563 = vmatprep.mubr.f32.mxu1 %v2219_v52 }
 0x2a4   :  { %3484 = verf.f32 %v1843_v5  ;;  %v4948_v27 = vadd.f32 %v1431_v36, %v4663_v62  ;;  %2564 = vmatmul.mubr.f32.gmra.mrb[30].mxu1 %v2218_v2  ;;  %v2220_v22 = vmul.f32 %v2092_v31, %v1708_v9 }
 0x2a5   :  { %v3475_v61 = vpop.eup %3474  ;;  %v1844_v19 = vmul.f32 0.70710677, %v4944_v45  ;;  %v2221_v7 = vmul.f32 %v2093_v33, %v1709_v15  ;;  %v1716_v41 = vmul.f32 0.5, %v4944_v45 }
 0x2a6   :  { %v3477_v38 = vpop.eup %3476  ;;  %v2094_v28 = vadd.f32 1.0, %v3475_v61  ;;  %v1845_v24 = vmul.f32 0.70710677, %v4948_v27  ;;  %v1435_v34 = vpop.f32.mrb[50].mxu0  ;;  %v1717_v37 = vmul.f32 0.5, %v4948_v27 }
 0x2a7   :  { %v2095_v18 = vadd.f32 1.0, %v3477_v38  ;;  %3486 = verf.f32 %v1844_v19  ;;  %v4954_v30 = vadd.f32 %v1435_v34, %v4669_v47  ;;  %v1437_v16 = vpop.f32.mrb[51].mxu0  ;;  %2568 = vmatprep.mubr.f32.mxu1 %v2221_v7 }
 0x2a8   :  { %3488 = verf.f32 %v1845_v24  ;;  %v4958_v29 = vadd.f32 %v1437_v16, %v4663_v62  ;;  %2569 = vmatmul.mubr.f32.gmra.mrb[32].mxu1 %v2220_v22  ;;  %v2222_v1 = vmul.f32 %v2094_v28, %v1710_v53 }
 0x2a9   :  { %v3479_v20 = vpop.eup %3478  ;;  %v1846_v10 = vmul.f32 0.70710677, %v4954_v30  ;;  %v2223_v60 = vmul.f32 %v2095_v18, %v1711_v12  ;;  %v1718_v34 = vmul.f32 0.5, %v4954_v30 }
 0x2aa   :  { %v3481_v35 = vpop.eup %3480  ;;  %v2096_v50 = vadd.f32 1.0, %v3479_v20  ;;  %v1847_v3 = vmul.f32 0.70710677, %v4958_v29  ;;  %v1441_v40 = vpop.f32.mrb[52].mxu0  ;;  %v1719_v38 = vmul.f32 0.5, %v4958_v29 }
 0x2ab   :  { %v2097_v13 = vadd.f32 1.0, %v3481_v35  ;;  %3490 = verf.f32 %v1846_v10  ;;  %v4964_v42 = vadd.f32 %v1441_v40, %v4669_v47  ;;  %v1443_v14 = vpop.f32.mrb[53].mxu0  ;;  %2573 = vmatprep.mubr.f32.mxu1 %v2223_v60 }
 0x2ac   :  { %3492 = verf.f32 %v1847_v3  ;;  %v4968_v46 = vadd.f32 %v1443_v14, %v4663_v62  ;;  %2574 = vmatmul.mubr.f32.gmra.mrb[34].mxu1 %v2222_v1  ;;  %v2224_v55 = vmul.f32 %v2096_v50, %v1712_v11 }
 0x2ad   :  { %v3483_v59 = vpop.eup %3482  ;;  %v1848_v25 = vmul.f32 0.70710677, %v4964_v42  ;;  %v2225_v49 = vmul.f32 %v2097_v13, %v1713_v43  ;;  %v1720_v40 = vmul.f32 0.5, %v4964_v42 }
 0x2ae   :  { %v3485_v17 = vpop.eup %3484  ;;  %v2098_v58 = vadd.f32 1.0, %v3483_v59  ;;  %v1849_v44 = vmul.f32 0.70710677, %v4968_v46  ;;  %v1447_v63 = vpop.f32.mrb[54].mxu0  ;;  %v1721_v35 = vmul.f32 0.5, %v4968_v46 }
 0x2af   :  { %v2099_v54 = vadd.f32 1.0, %v3485_v17  ;;  %3494 = verf.f32 %v1848_v25  ;;  %v4974_v56 = vadd.f32 %v1447_v63, %v4669_v47  ;;  %v1449_v26 = vpop.f32.mrb[55].mxu0  ;;  %2578 = vmatprep.mubr.f32.mxu1 %v2225_v49 }
 0x2b0   :  { %3496 = verf.f32 %v1849_v44  ;;  %v4978_v8 = vadd.f32 %v1449_v26, %v4663_v62  ;;  %2579 = vmatmul.mubr.f32.gmra.mrb[36].mxu1 %v2224_v55  ;;  %v2226_v52 = vmul.f32 %v2098_v58, %v1714_v48 }
 0x2b1   :  { %v3487_v51 = vpop.eup %3486  ;;  %v1850_v23 = vmul.f32 0.70710677, %v4974_v56  ;;  %v2227_v32 = vmul.f32 %v2099_v54, %v1715_v21  ;;  %v1722_v63 = vmul.f32 0.5, %v4974_v56 }
 0x2b2   :  { %v3489_v57 = vpop.eup %3488  ;;  %v2100_v4 = vadd.f32 1.0, %v3487_v51  ;;  %v1851_v6 = vmul.f32 0.70710677, %v4978_v8  ;;  %v1453_v0 = vpop.f32.mrb[56].mxu0  ;;  %v1723_v17 = vmul.f32 0.5, %v4978_v8 }
 0x2b3   :  { %v2101_v31 = vadd.f32 1.0, %v3489_v57  ;;  %3498 = verf.f32 %v1850_v23  ;;  %v4984_v39 = vadd.f32 %v1453_v0, %v4669_v47  ;;  %v1455_v5 = vpop.f32.mrb[57].mxu0  ;;  %2583 = vmatprep.mubr.f32.mxu1 %v2227_v32 }
 0x2b4   :  { %3500 = verf.f32 %v1851_v6  ;;  %v4988_v2 = vadd.f32 %v1455_v5, %v4663_v62  ;;  %2584 = vmatmul.mubr.f32.gmra.mrb[38].mxu1 %v2226_v52  ;;  %v2228_v7 = vmul.f32 %v2100_v4, %v1716_v41 }
 0x2b5   :  { %v3491_v15 = vpop.eup %3490  ;;  %v1852_v33 = vmul.f32 0.70710677, %v4984_v39  ;;  %v2229_v36 = vmul.f32 %v2101_v31, %v1717_v37  ;;  %v1724_v0 = vmul.f32 0.5, %v4984_v39 }
 0x2b6   :  { %v3493_v9 = vpop.eup %3492  ;;  %v2102_v27 = vadd.f32 1.0, %v3491_v15  ;;  %v1853_v61 = vmul.f32 0.70710677, %v4988_v2  ;;  %v1459_v19 = vpop.f32.mrb[58].mxu0  ;;  %v1725_v57 = vmul.f32 0.5, %v4988_v2 }
 0x2b7   :  { %v2103_v28 = vadd.f32 1.0, %v3493_v9  ;;  %3502 = verf.f32 %v1852_v33  ;;  %v4994_v45 = vadd.f32 %v1459_v19, %v4669_v47  ;;  %v1461_v24 = vpop.f32.mrb[59].mxu0  ;;  %2588 = vmatprep.mubr.f32.mxu1 %v2229_v36 }
 0x2b8   :  { %3504 = verf.f32 %v1853_v61  ;;  %v4998_v22 = vadd.f32 %v1461_v24, %v4663_v62  ;;  %2589 = vmatmul.mubr.f32.gmra.mrb[40].mxu1 %v2228_v7  ;;  %v2230_v60 = vmul.f32 %v2102_v27, %v1718_v34 }
 0x2b9   :  { %v3495_v12 = vpop.eup %3494  ;;  %v1854_v18 = vmul.f32 0.70710677, %v4994_v45  ;;  %v2231_v16 = vmul.f32 %v2103_v28, %v1719_v38  ;;  %v1726_v19 = vmul.f32 0.5, %v4994_v45 }
 0x2ba   :  { %v3497_v53 = vpop.eup %3496  ;;  %v2104_v29 = vadd.f32 1.0, %v3495_v12  ;;  %v1855_v20 = vmul.f32 0.70710677, %v4998_v22  ;;  %v1465_v10 = vpop.f32.mrb[60].mxu0  ;;  %v1727_v9 = vmul.f32 0.5, %v4998_v22 }
 0x2bb   :  { %v2105_v50 = vadd.f32 1.0, %v3497_v53  ;;  %3506 = verf.f32 %v1854_v18  ;;  %v5004_v30 = vadd.f32 %v1465_v10, %v4669_v47  ;;  %v1467_v3 = vpop.f32.mrb[61].mxu0  ;;  %2593 = vmatprep.mubr.f32.mxu1 %v2231_v16 }
 0x2bc   :  { %3508 = verf.f32 %v1855_v20  ;;  %v5008_v1 = vadd.f32 %v1467_v3, %v4663_v62  ;;  %2594 = vmatmul.mubr.f32.gmra.mrb[42].mxu1 %v2230_v60  ;;  %v2232_v49 = vmul.f32 %v2104_v29, %v1720_v40 }
 0x2bd   :  { %v3499_v43 = vpop.eup %3498  ;;  %v1856_v13 = vmul.f32 0.70710677, %v5004_v30  ;;  %v2233_v14 = vmul.f32 %v2105_v50, %v1721_v35  ;;  %v1728_v10 = vmul.f32 0.5, %v5004_v30 }
 0x2be   :  { %v3501_v11 = vpop.eup %3500  ;;  %v2106_v46 = vadd.f32 1.0, %v3499_v43  ;;  %v1857_v59 = vmul.f32 0.70710677, %v5008_v1  ;;  %v1471_v25 = vpop.f32.mrb[62].mxu0  ;;  %v1729_v53 = vmul.f32 0.5, %v5008_v1 }
 0x2bf   :  { %v2107_v58 = vadd.f32 1.0, %v3501_v11  ;;  %3510 = verf.f32 %v1856_v13  ;;  %v5014_v42 = vadd.f32 %v1471_v25, %v4669_v47  ;;  %v1473_v44 = vpop.f32.mrb[63].mxu0  ;;  %2598 = vmatprep.mubr.f32.mxu1 %v2233_v14 }
 0x2c0   :  { %3512 = verf.f32 %v1857_v59  ;;  %v5018_v55 = vadd.f32 %v1473_v44, %v4663_v62  ;;  %2599 = vmatmul.mubr.f32.gmra.mrb[44].mxu1 %v2232_v49  ;;  %v2234_v32 = vmul.f32 %v2106_v46, %v1722_v63 }
 0x2c1   :  { %v3503_v21 = vpop.eup %3502  ;;  %v1858_v54 = vmul.f32 0.70710677, %v5014_v42  ;;  %v2235_v26 = vmul.f32 %v2107_v58, %v1723_v17  ;;  %v1730_v30 = vmul.f32 0.5, %v5014_v42 }
 0x2c2   :  { %v3505_v48 = vpop.eup %3504  ;;  %v2108_v8 = vadd.f32 1.0, %v3503_v21  ;;  %v1859_v51 = vmul.f32 0.70710677, %v5018_v55  ;;  %v1477_v23 = vpop.f32.mrb[64].mxu0  ;;  %v1731_v14 = vmul.f32 0.5, %v5018_v55 }
 0x2c3   :  { %v2109_v4 = vadd.f32 1.0, %v3505_v48  ;;  %3514 = verf.f32 %v1858_v54  ;;  %v5024_v56 = vadd.f32 %v1477_v23, %v4669_v47  ;;  %v1479_v6 = vpop.f32.mrb[65].mxu0  ;;  %2603 = vmatprep.mubr.f32.mxu1 %v2235_v26 }
 0x2c4   :  { %3516 = verf.f32 %v1859_v51  ;;  %v1480_v52 = vadd.f32 %v1479_v6, %v4663_v62  ;;  %2604 = vmatmul.mubr.f32.gmra.mrb[46].mxu1 %v2234_v32  ;;  %v2236_v36 = vmul.f32 %v2108_v8, %v1724_v0 }
 0x2c5   :  { %v3507_v37 = vpop.eup %3506  ;;  %v1860_v31 = vmul.f32 0.70710677, %v5024_v56  ;;  %v2237_v5 = vmul.f32 %v2109_v4, %v1725_v57  ;;  %v1732_v42 = vmul.f32 0.5, %v5024_v56 }
 0x2c6   :  { %v3509_v41 = vpop.eup %3508  ;;  %v2110_v15 = vadd.f32 1.0, %v3507_v37  ;;  %v1861_v2 = vmul.f32 0.70710677, %v1480_v52  ;;  %v1483_v33 = vpop.f32.mrb[66].mxu0  ;;  %v1733_v54 = vmul.f32 0.5, %v1480_v52 }
 0x2c7   :  { %v2111_v27 = vadd.f32 1.0, %v3509_v41  ;;  %3518 = verf.f32 %v1860_v31  ;;  %v5031_v61 = vadd.f32 %v1483_v33, %v4669_v47  ;;  %v1485_v39 = vpop.f32.mrb[67].mxu0  ;;  %2608 = vmatprep.mubr.f32.mxu1 %v2237_v5 }
 0x2c8   :  { %3520 = verf.f32 %v1861_v2  ;;  %v1486_v7 = vadd.f32 %v1485_v39, %v4663_v62  ;;  %2609 = vmatmul.mubr.f32.gmra.mrb[48].mxu1 %v2236_v36  ;;  %v2238_v16 = vmul.f32 %v2110_v15, %v1726_v19 }
 0x2c9   :  { %v3511_v38 = vpop.eup %3510  ;;  %v1862_v28 = vmul.f32 0.70710677, %v5031_v61  ;;  %v2239_v24 = vmul.f32 %v2111_v27, %v1727_v9  ;;  %v1734_v15 = vmul.f32 0.5, %v5031_v61 }
 0x2ca   :  { %v3513_v34 = vpop.eup %3512  ;;  %v2112_v12 = vadd.f32 1.0, %v3511_v38  ;;  %v1863_v22 = vmul.f32 0.70710677, %v1486_v7  ;;  %v1489_v18 = vpop.f32.mrb[68].mxu0  ;;  %v1735_v31 = vmul.f32 0.5, %v1486_v7 }
 0x2cb   :  { %v2113_v29 = vadd.f32 1.0, %v3513_v34  ;;  %3522 = verf.f32 %v1862_v28  ;;  %v5038_v20 = vadd.f32 %v1489_v18, %v4669_v47  ;;  %v1491_v45 = vpop.f32.mrb[69].mxu0  ;;  %2613 = vmatprep.mubr.f32.mxu1 %v2239_v24 }
 0x2cc   :  { %3524 = verf.f32 %v1863_v22  ;;  %v1492_v60 = vadd.f32 %v1491_v45, %v4663_v62  ;;  %2614 = vmatmul.mubr.f32.gmra.mrb[50].mxu1 %v2238_v16  ;;  %v2240_v13 = vmul.f32 %v2112_v12, %v1728_v10 }
 0x2cd   :  { %v3515_v35 = vpop.eup %3514  ;;  %v1864_v50 = vmul.f32 0.70710677, %v5038_v20  ;;  %v2241_v3 = vmul.f32 %v2113_v29, %v1729_v53  ;;  %v1736_v12 = vmul.f32 0.5, %v5038_v20 }
 0x2ce   :  { %v3517_v40 = vpop.eup %3516  ;;  %v2114_v43 = vadd.f32 1.0, %v3515_v35  ;;  %v1865_v1 = vmul.f32 0.70710677, %v1492_v60  ;;  %v1495_v46 = vpop.f32.mrb[70].mxu0  ;;  %v1737_v28 = vmul.f32 0.5, %v1492_v60 }
 0x2cf   :  { %v2115_v11 = vadd.f32 1.0, %v3517_v40  ;;  %3526 = verf.f32 %v1864_v50  ;;  %2618 = vmatprep.mubr.f32.mxu1 %v2241_v3  ;;  %v5046_v59 = vadd.f32 %v1495_v46, %v4669_v47  ;;  %v1497_v25 = vpop.f32.mrb[71].mxu0 }
 0x2d0   :  { %3528 = verf.f32 %v1865_v1  ;;  %2619 = vmatmul.mubr.f32.gmra.mrb[52].mxu1 %v2240_v13  ;;  %v1498_v17 = vadd.f32 %v1497_v25, %v4663_v62  ;;  %v2242_v21 = vmul.f32 %v2114_v43, %v1730_v30 }
 0x2d1   :  { %v3519_v49 = vpop.eup %3518  ;;  %v2243_v58 = vmul.f32 %v2115_v11, %v1731_v14  ;;  %v1866_v55 = vmul.f32 0.70710677, %v5046_v59  ;;  %v1738_v13 = vmul.f32 0.5, %v5046_v59 }
 0x2d2   :  { %v3521_v44 = vpop.eup %3520  ;;  %v2116_v63 = vadd.f32 1.0, %v3519_v49  ;;  %v1867_v48 = vmul.f32 0.70710677, %v1498_v17  ;;  %v1501_v8 = vpop.f32.mrb[72].mxu0  ;;  %v1739_v3 = vmul.f32 0.5, %v1498_v17 }
 0x2d3   :  { %v2117_v26 = vadd.f32 1.0, %v3521_v44  ;;  %2623 = vmatprep.mubr.f32.mxu1 %v2243_v58  ;;  %3530 = verf.f32 %v1866_v55  ;;  %v5052_v51 = vadd.f32 %v1501_v8, %v4669_v47  ;;  %v1503_v23 = vpop.f32.mrb[73].mxu0 }
 0x2d4   :  { %2624 = vmatmul.mubr.f32.gmra.mrb[54].mxu1 %v2242_v21  ;;  %3532 = verf.f32 %v1867_v48  ;;  %v1504_v57 = vadd.f32 %v1503_v23, %v4663_v62  ;;  %v2244_v37 = vmul.f32 %v2116_v63, %v1732_v42 }
 0x2d5   :  { %v3523_v32 = vpop.eup %3522  ;;  %v2245_v4 = vmul.f32 %v2117_v26, %v1733_v54  ;;  %v1868_v52 = vmul.f32 0.70710677, %v5052_v51  ;;  %v1740_v54 = vmul.f32 0.5, %v5052_v51 }
 0x2d6   :  { %v3525_v6 = vpop.eup %3524  ;;  %v2118_v0 = vadd.f32 1.0, %v3523_v32  ;;  %v1869_v41 = vmul.f32 0.70710677, %v1504_v57  ;;  %v1507_v56 = vpop.f32.mrb[74].mxu0  ;;  %v1741_v63 = vmul.f32 0.5, %v1504_v57 }
 0x2d7   :  { %v2119_v5 = vadd.f32 1.0, %v3525_v6  ;;  %2628 = vmatprep.mubr.f32.mxu1 %v2245_v4  ;;  %3534 = verf.f32 %v1868_v52  ;;  %v5058_v2 = vadd.f32 %v1507_v56, %v4669_v47  ;;  %v1509_v33 = vpop.f32.mrb[75].mxu0 }
 0x2d8   :  { %2629 = vmatmul.mubr.f32.gmra.mrb[56].mxu1 %v2244_v37  ;;  %3536 = verf.f32 %v1869_v41  ;;  %v1510_v9 = vadd.f32 %v1509_v33, %v4663_v62  ;;  %v2246_v38 = vmul.f32 %v2118_v0, %v1734_v15 }
 0x2d9   :  { %v3527_v36 = vpop.eup %3526  ;;  %v2247_v27 = vmul.f32 %v2119_v5, %v1735_v31  ;;  %v1870_v7 = vmul.f32 0.70710677, %v5058_v2  ;;  %v1742_v31 = vmul.f32 0.5, %v5058_v2 }
 0x2da   :  { %v3529_v39 = vpop.eup %3528  ;;  %v2120_v19 = vadd.f32 1.0, %v3527_v36  ;;  %v1871_v34 = vmul.f32 0.70710677, %v1510_v9  ;;  %v1513_v61 = vpop.f32.mrb[76].mxu0  ;;  %v1743_v0 = vmul.f32 0.5, %v1510_v9 }
 0x2db   :  { %v2121_v24 = vadd.f32 1.0, %v3529_v39  ;;  %2633 = vmatprep.mubr.f32.mxu1 %v2247_v27  ;;  %3538 = verf.f32 %v1870_v7  ;;  %v5064_v22 = vadd.f32 %v1513_v61, %v4669_v47  ;;  %v1515_v18 = vpop.f32.mrb[77].mxu0 }
 0x2dc   :  { %2634 = vmatmul.mubr.f32.gmra.mrb[58].mxu1 %v2246_v38  ;;  %3540 = verf.f32 %v1871_v34  ;;  %v5067_v16 = vadd.f32 %v1515_v18, %v4663_v62  ;;  %v2248_v10 = vmul.f32 %v2120_v19, %v1736_v12 }
 0x2dd   :  { %v2249_v53 = vmul.f32 %v2121_v24, %v1737_v28  ;;  %v3531_v29 = vpop.eup %3530  ;;  %v1872_v45 = vmul.f32 0.70710677, %v5064_v22  ;;  %v1744_v28 = vmul.f32 0.5, %v5064_v22 }
 0x2de   :  { %v3533_v60 = vpop.eup %3532  ;;  %v2122_v35 = vadd.f32 1.0, %v3531_v29  ;;  %v1873_v50 = vmul.f32 0.70710677, %v5067_v16  ;;  %v1519_v20 = vpop.f32.mrb[78].mxu0  ;;  %v1745_v19 = vmul.f32 0.5, %v5067_v16 }
 0x2df   :  { %2638 = vmatprep.mubr.f32.mxu1 %v2249_v53  ;;  %v2123_v40 = vadd.f32 1.0, %v3533_v60  ;;  %3542 = verf.f32 %v1872_v45  ;;  %v5072_v43 = vadd.f32 %v1519_v20, %v4669_v47  ;;  %v1521_v1 = vpop.f32.mrb[79].mxu0 }
 0x2e0   :  { %2639 = vmatmul.mubr.f32.gmra.mrb[60].mxu1 %v2248_v10  ;;  %3544 = verf.f32 %v1873_v50  ;;  %v5076_v14 = vadd.f32 %v1521_v1, %v4663_v62  ;;  %v2250_v44 = vmul.f32 %v2122_v35, %v1738_v13 }
 0x2e1   :  { %v3535_v11 = vpop.eup %3534  ;;  %v1874_v46 = vmul.f32 0.70710677, %v5072_v43  ;;  %v2251_v30 = vmul.f32 %v2123_v40, %v1739_v3  ;;  %v1746_v50 = vmul.f32 0.5, %v5072_v43 }
 0x2e2   :  { %v3537_v25 = vpop.eup %3536  ;;  %v2124_v49 = vadd.f32 1.0, %v3535_v11  ;;  %v1875_v17 = vmul.f32 0.70710677, %v5076_v14  ;;  %v1525_v58 = vpop.f32.mrb[80].mxu0  ;;  %v1747_v10 = vmul.f32 0.5, %v5076_v14 }
 0x2e3   :  { %v2125_v55 = vadd.f32 1.0, %v3537_v25  ;;  %3546 = verf.f32 %v1874_v46  ;;  %v5081_v21 = vadd.f32 %v1525_v58, %v4669_v47  ;;  %v1527_v59 = vpop.f32.mrb[81].mxu0  ;;  %2643 = vmatprep.mubr.f32.mxu1 %v2251_v30 }
 0x2e4   :  { %3548 = verf.f32 %v1875_v17  ;;  %v5085_v26 = vadd.f32 %v1527_v59, %v4663_v62  ;;  %2644 = vmatmul.mubr.f32.gmra.mrb[62].mxu1 %v2250_v44  ;;  %v2252_v6 = vmul.f32 %v2124_v49, %v1740_v54 }
 0x2e5   :  { %v3539_v48 = vpop.eup %3538  ;;  %v1876_v8 = vmul.f32 0.70710677, %v5081_v21  ;;  %v2253_v42 = vmul.f32 %v2125_v55, %v1741_v63  ;;  %v1748_v58 = vmul.f32 0.5, %v5081_v21 }
 0x2e6   :  { %v3541_v23 = vpop.eup %3540  ;;  %v2126_v32 = vadd.f32 1.0, %v3539_v48  ;;  %v1877_v57 = vmul.f32 0.70710677, %v5085_v26  ;;  %v1531_v4 = vpop.f32.mrb[82].mxu0  ;;  %v1749_v25 = vmul.f32 0.5, %v5085_v26 }
 0x2e7   :  { %v2127_v52 = vadd.f32 1.0, %v3541_v23  ;;  %3550 = verf.f32 %v1876_v8  ;;  %v5090_v51 = vadd.f32 %v1531_v4, %v4669_v47  ;;  %v1533_v37 = vpop.f32.mrb[83].mxu0  ;;  %2648 = vmatprep.mubr.f32.mxu1 %v2253_v42 }
 0x2e8   :  { %3552 = verf.f32 %v1877_v57  ;;  %v5094_v5 = vadd.f32 %v1533_v37, %v4663_v62  ;;  %2649 = vmatmul.mubr.f32.gmra.mrb[64].mxu1 %v2252_v6  ;;  %v2254_v39 = vmul.f32 %v2126_v32, %v1742_v31 }
 0x2e9   :  { %v3543_v41 = vpop.eup %3542  ;;  %v1878_v56 = vmul.f32 0.70710677, %v5090_v51  ;;  %v2255_v15 = vmul.f32 %v2127_v52, %v1743_v0  ;;  %v1750_v4 = vmul.f32 0.5, %v5090_v51 }
 0x2ea   :  { %v3545_v33 = vpop.eup %3544  ;;  %v2128_v36 = vadd.f32 1.0, %v3543_v41  ;;  %v1879_v9 = vmul.f32 0.70710677, %v5094_v5  ;;  %v1537_v27 = vpop.f32.mrb[84].mxu0  ;;  %v1751_v23 = vmul.f32 0.5, %v5094_v5 }
 0x2eb   :  { %v2129_v7 = vadd.f32 1.0, %v3545_v33  ;;  %3554 = verf.f32 %v1878_v56  ;;  %v5100_v2 = vadd.f32 %v1537_v27, %v4669_v47  ;;  %v1539_v38 = vpop.f32.mrb[85].mxu0  ;;  %2653 = vmatprep.mubr.f32.mxu1 %v2255_v15 }
 0x2ec   :  { %3556 = verf.f32 %v1879_v9  ;;  %v5104_v24 = vadd.f32 %v1539_v38, %v4663_v62  ;;  %2654 = vmatmul.mubr.f32.gmra.mrb[66].mxu1 %v2254_v39  ;;  %v2256_v45 = vmul.f32 %v2128_v36, %v1744_v28 }
 0x2ed   :  { %v3547_v34 = vpop.eup %3546  ;;  %v1880_v61 = vmul.f32 0.70710677, %v5100_v2  ;;  %v2257_v12 = vmul.f32 %v2129_v7, %v1745_v19  ;;  %v1752_v27 = vmul.f32 0.5, %v5100_v2 }
 0x2ee   :  { %v3549_v18 = vpop.eup %3548  ;;  %v2130_v16 = vadd.f32 1.0, %v3547_v34  ;;  %v1881_v53 = vmul.f32 0.70710677, %v5104_v24  ;;  %v1543_v29 = vpop.f32.mrb[86].mxu0  ;;  %v1753_v33 = vmul.f32 0.5, %v5104_v24 }
 0x2ef   :  { %v2131_v60 = vadd.f32 1.0, %v3549_v18  ;;  %3558 = verf.f32 %v1880_v61  ;;  %v5110_v22 = vadd.f32 %v1543_v29, %v4669_v47  ;;  %v1545_v35 = vpop.f32.mrb[87].mxu0  ;;  %2658 = vmatprep.mubr.f32.mxu1 %v2257_v12 }
 0x2f0   :  { %3560 = verf.f32 %v1881_v53  ;;  %v5114_v20 = vadd.f32 %v1545_v35, %v4663_v62  ;;  %2659 = vmatmul.mubr.f32.gmra.mrb[68].mxu1 %v2256_v45  ;;  %v2258_v30 = vmul.f32 %v2130_v16, %v1746_v50 }
 0x2f1   :  { %v3551_v3 = vpop.eup %3550  ;;  %v1882_v40 = vmul.f32 0.70710677, %v5110_v22  ;;  %v2259_v1 = vmul.f32 %v2131_v60, %v1747_v10  ;;  %v1754_v29 = vmul.f32 0.5, %v5110_v22 }
 0x2f2   :  { %v3553_v13 = vpop.eup %3552  ;;  %v2132_v14 = vadd.f32 1.0, %v3551_v3  ;;  %v1883_v11 = vmul.f32 0.70710677, %v5114_v20  ;;  %v1549_v46 = vpop.f32.mrb[88].mxu0  ;;  %v1755_v18 = vmul.f32 0.5, %v5114_v20 }
 0x2f3   :  { %v2133_v49 = vadd.f32 1.0, %v3553_v13  ;;  %3562 = verf.f32 %v1882_v40  ;;  %v5120_v43 = vadd.f32 %v1549_v46, %v4669_v47  ;;  %v1551_v17 = vpop.f32.mrb[89].mxu0  ;;  %2663 = vmatprep.mubr.f32.mxu1 %v2259_v1 }
 0x2f4   :  { %3564 = verf.f32 %v1883_v11  ;;  %v5124_v44 = vadd.f32 %v1551_v17, %v4663_v62  ;;  %2664 = vmatmul.mubr.f32.gmra.mrb[70].mxu1 %v2258_v30  ;;  %v2260_v42 = vmul.f32 %v2132_v14, %v1748_v58 }
 0x2f5   :  { %v3555_v63 = vpop.eup %3554  ;;  %v1884_v55 = vmul.f32 0.70710677, %v5120_v43  ;;  %v2261_v59 = vmul.f32 %v2133_v49, %v1749_v25  ;;  %v1756_v46 = vmul.f32 0.5, %v5120_v43 }
 0x2f6   :  { %v3557_v54 = vpop.eup %3556  ;;  %v2134_v26 = vadd.f32 1.0, %v3555_v63  ;;  %v1885_v48 = vmul.f32 0.70710677, %v5124_v44  ;;  %v1555_v8 = vpop.f32.mrb[90].mxu0  ;;  %v1757_v13 = vmul.f32 0.5, %v5124_v44 }
 0x2f7   :  { %v2135_v32 = vadd.f32 1.0, %v3557_v54  ;;  %3566 = verf.f32 %v1884_v55  ;;  %v5130_v21 = vadd.f32 %v1555_v8, %v4669_v47  ;;  %v1557_v57 = vpop.f32.mrb[91].mxu0  ;;  %2668 = vmatprep.mubr.f32.mxu1 %v2261_v59 }
 0x2f8   :  { %3568 = verf.f32 %v1885_v48  ;;  %v5134_v6 = vadd.f32 %v1557_v57, %v4663_v62  ;;  %2669 = vmatmul.mubr.f32.gmra.mrb[72].mxu1 %v2260_v42  ;;  %v2262_v15 = vmul.f32 %v2134_v26, %v1750_v4 }
 0x2f9   :  { %v3559_v0 = vpop.eup %3558  ;;  %v1886_v52 = vmul.f32 0.70710677, %v5130_v21  ;;  %v2263_v37 = vmul.f32 %v2135_v32, %v1751_v23  ;;  %v1758_v8 = vmul.f32 0.5, %v5130_v21 }
 0x2fa   :  { %v3561_v31 = vpop.eup %3560  ;;  %v2136_v5 = vadd.f32 1.0, %v3559_v0  ;;  %v1887_v41 = vmul.f32 0.70710677, %v5134_v6  ;;  %v1561_v56 = vpop.f32.mrb[92].mxu0  ;;  %v1759_v54 = vmul.f32 0.5, %v5134_v6 }
 0x2fb   :  { %v2137_v36 = vadd.f32 1.0, %v3561_v31  ;;  %3570 = verf.f32 %v1886_v52  ;;  %v5140_v51 = vadd.f32 %v1561_v56, %v4669_v47  ;;  %v1563_v9 = vpop.f32.mrb[93].mxu0  ;;  %2673 = vmatprep.mubr.f32.mxu1 %v2263_v37 }
 0x2fc   :  { %3572 = verf.f32 %v1887_v41  ;;  %v5144_v39 = vadd.f32 %v1563_v9, %v4663_v62  ;;  %2674 = vmatmul.mubr.f32.gmra.mrb[74].mxu1 %v2262_v15  ;;  %v2264_v12 = vmul.f32 %v2136_v5, %v1752_v27 }
 0x2fd   :  { %v3563_v19 = vpop.eup %3562  ;;  %v1888_v7 = vmul.f32 0.70710677, %v5140_v51  ;;  %v2265_v38 = vmul.f32 %v2137_v36, %v1753_v33  ;;  %v1760_v56 = vmul.f32 0.5, %v5140_v51 }
 0x2fe   :  { %v3565_v28 = vpop.eup %3564  ;;  %v2138_v24 = vadd.f32 1.0, %v3563_v19  ;;  %v1889_v34 = vmul.f32 0.70710677, %v5144_v39  ;;  %v1567_v61 = vpop.f32.mrb[94].mxu0  ;;  %v1761_v31 = vmul.f32 0.5, %v5144_v39 }
 0x2ff   :  { %v2139_v16 = vadd.f32 1.0, %v3565_v28  ;;  %3574 = verf.f32 %v1888_v7  ;;  %v5150_v2 = vadd.f32 %v1567_v61, %v4669_v47  ;;  %v1569_v53 = vpop.f32.mrb[95].mxu0  ;;  %2678 = vmatprep.mubr.f32.mxu1 %v2265_v38 }
 0x300   :  { %3576 = verf.f32 %v1889_v34  ;;  %v5154_v45 = vadd.f32 %v1569_v53, %v4663_v62  ;;  %2679 = vmatmul.mubr.f32.gmra.mrb[76].mxu1 %v2264_v12  ;;  %v2266_v1 = vmul.f32 %v2138_v24, %v1754_v29 }
 0x301   :  { %v3567_v10 = vpop.eup %3566  ;;  %v1890_v60 = vmul.f32 0.70710677, %v5150_v2  ;;  %v2267_v35 = vmul.f32 %v2139_v16, %v1755_v18  ;;  %v1762_v61 = vmul.f32 0.5, %v5150_v2 }
 0x302   :  { %v3569_v50 = vpop.eup %3568  ;;  %v2140_v20 = vadd.f32 1.0, %v3567_v10  ;;  %v1891_v3 = vmul.f32 0.70710677, %v5154_v45  ;;  %v1573_v40 = vpop.f32.mrb[96].mxu0  ;;  %v1763_v28 = vmul.f32 0.5, %v5154_v45 }
 0x303   :  { %v2141_v14 = vadd.f32 1.0, %v3569_v50  ;;  %3578 = verf.f32 %v1890_v60  ;;  %v5160_v22 = vadd.f32 %v1573_v40, %v4669_v47  ;;  %v1575_v11 = vpop.f32.mrb[97].mxu0  ;;  %2683 = vmatprep.mubr.f32.mxu1 %v2267_v35 }
 0x304   :  { %3580 = verf.f32 %v1891_v3  ;;  %v5164_v30 = vadd.f32 %v1575_v11, %v4663_v62  ;;  %2684 = vmatmul.mubr.f32.gmra.mrb[78].mxu1 %v2266_v1  ;;  %v2268_v59 = vmul.f32 %v2140_v20, %v1756_v46 }
 0x305   :  { %v3571_v25 = vpop.eup %3570  ;;  %v1892_v49 = vmul.f32 0.70710677, %v5160_v22  ;;  %v2269_v17 = vmul.f32 %v2141_v14, %v1757_v13  ;;  %v1764_v40 = vmul.f32 0.5, %v5160_v22 }
 0x306   :  { %v3573_v58 = vpop.eup %3572  ;;  %v2142_v44 = vadd.f32 1.0, %v3571_v25  ;;  %v1893_v63 = vmul.f32 0.70710677, %v5164_v30  ;;  %v1579_v55 = vpop.f32.mrb[98].mxu0  ;;  %v1765_v50 = vmul.f32 0.5, %v5164_v30 }
 0x307   :  { %v2143_v26 = vadd.f32 1.0, %v3573_v58  ;;  %3582 = verf.f32 %v1892_v49  ;;  %v5170_v43 = vadd.f32 %v1579_v55, %v4669_v47  ;;  %v1581_v48 = vpop.f32.mrb[99].mxu0  ;;  %2688 = vmatprep.mubr.f32.mxu1 %v2269_v17 }
 0x308   :  { %3584 = verf.f32 %v1893_v63  ;;  %v5174_v42 = vadd.f32 %v1581_v48, %v4663_v62  ;;  %2689 = vmatmul.mubr.f32.gmra.mrb[80].mxu1 %v2268_v59  ;;  %v2270_v37 = vmul.f32 %v2142_v44, %v1758_v8 }
 0x309   :  { %v3575_v23 = vpop.eup %3574  ;;  %v1894_v32 = vmul.f32 0.70710677, %v5170_v43  ;;  %v2271_v57 = vmul.f32 %v2143_v26, %v1759_v54  ;;  %v1766_v55 = vmul.f32 0.5, %v5170_v43 }
 0x30a   :  { %v3577_v4 = vpop.eup %3576  ;;  %v2144_v6 = vadd.f32 1.0, %v3575_v23  ;;  %v1895_v0 = vmul.f32 0.70710677, %v5174_v42  ;;  %v1585_v52 = vpop.f32.mrb[100].mxu0  ;;  %v1767_v58 = vmul.f32 0.5, %v5174_v42 }
 0x30b   :  { %v2145_v5 = vadd.f32 1.0, %v3577_v4  ;;  %3586 = verf.f32 %v1894_v32  ;;  %v5180_v21 = vadd.f32 %v1585_v52, %v4669_v47  ;;  %v1587_v41 = vpop.f32.mrb[101].mxu0  ;;  %2693 = vmatprep.mubr.f32.mxu1 %v2271_v57 }
 0x30c   :  { %3588 = verf.f32 %v1895_v0  ;;  %v5184_v15 = vadd.f32 %v1587_v41, %v4663_v62  ;;  %2694 = vmatmul.mubr.f32.gmra.mrb[82].mxu1 %v2270_v37  ;;  %v2272_v38 = vmul.f32 %v2144_v6, %v1760_v56 }
 0x30d   :  { %v3579_v33 = vpop.eup %3578  ;;  %v1896_v36 = vmul.f32 0.70710677, %v5180_v21  ;;  %v2273_v9 = vmul.f32 %v2145_v5, %v1761_v31  ;;  %v1768_v52 = vmul.f32 0.5, %v5180_v21 }
 0x30e   :  { %v3581_v27 = vpop.eup %3580  ;;  %v2146_v39 = vadd.f32 1.0, %v3579_v33  ;;  %v1897_v19 = vmul.f32 0.70710677, %v5184_v15  ;;  %v1591_v7 = vpop.f32.mrb[102].mxu0  ;;  %v1769_v4 = vmul.f32 0.5, %v5184_v15 }
 0x30f   :  { %v2147_v24 = vadd.f32 1.0, %v3581_v27  ;;  %3590 = verf.f32 %v1896_v36  ;;  %v5190_v51 = vadd.f32 %v1591_v7, %v4669_v47  ;;  %v1593_v34 = vpop.f32.mrb[103].mxu0  ;;  %2698 = vmatprep.mubr.f32.mxu1 %v2273_v9 }
 0x310   :  { %3592 = verf.f32 %v1897_v19  ;;  %v5194_v12 = vadd.f32 %v1593_v34, %v4663_v62  ;;  %2699 = vmatmul.mubr.f32.gmra.mrb[84].mxu1 %v2272_v38  ;;  %v2274_v35 = vmul.f32 %v2146_v39, %v1762_v61 }
 0x311   :  { %v3583_v18 = vpop.eup %3582  ;;  %v1898_v16 = vmul.f32 0.70710677, %v5190_v51  ;;  %v2275_v53 = vmul.f32 %v2147_v24, %v1763_v28  ;;  %v1770_v7 = vmul.f32 0.5, %v5190_v51 }
 0x312   :  { %v3585_v29 = vpop.eup %3584  ;;  %v2148_v45 = vadd.f32 1.0, %v3583_v18  ;;  %v1899_v10 = vmul.f32 0.70710677, %v5194_v12  ;;  %v1597_v60 = vpop.f32.mrb[104].mxu0  ;;  %v1771_v27 = vmul.f32 0.5, %v5194_v12 }
 0x313   :  { %v2149_v20 = vadd.f32 1.0, %v3585_v29  ;;  %3594 = verf.f32 %v1898_v16  ;;  %v5200_v2 = vadd.f32 %v1597_v60, %v4669_v47  ;;  %v1599_v3 = vpop.f32.mrb[105].mxu0  ;;  %2703 = vmatprep.mubr.f32.mxu1 %v2275_v53 }
 0x314   :  { %3596 = verf.f32 %v1899_v10  ;;  %v5204_v1 = vadd.f32 %v1599_v3, %v4663_v62  ;;  %2704 = vmatmul.mubr.f32.gmra.mrb[86].mxu1 %v2274_v35  ;;  %v2276_v17 = vmul.f32 %v2148_v45, %v1764_v40 }
 0x315   :  { %v3587_v13 = vpop.eup %3586  ;;  %v1900_v14 = vmul.f32 0.70710677, %v5200_v2  ;;  %v2277_v11 = vmul.f32 %v2149_v20, %v1765_v50  ;;  %v1772_v60 = vmul.f32 0.5, %v5200_v2 }
 0x316   :  { %v3589_v46 = vpop.eup %3588  ;;  %v2150_v30 = vadd.f32 1.0, %v3587_v13  ;;  %v1901_v25 = vmul.f32 0.70710677, %v5204_v1  ;;  %v1603_v49 = vpop.f32.mrb[106].mxu0  ;;  %v1773_v29 = vmul.f32 0.5, %v5204_v1 }
 0x317   :  { %v2151_v44 = vadd.f32 1.0, %v3589_v46  ;;  %3598 = verf.f32 %v1900_v14  ;;  %v5210_v22 = vadd.f32 %v1603_v49, %v4669_v47  ;;  %v1605_v63 = vpop.f32.mrb[107].mxu0  ;;  %2708 = vmatprep.mubr.f32.mxu1 %v2277_v11 }
 0x318   :  { %3600 = verf.f32 %v1901_v25  ;;  %v5214_v59 = vadd.f32 %v1605_v63, %v4663_v62  ;;  %2709 = vmatmul.mubr.f32.gmra.mrb[88].mxu1 %v2276_v17  ;;  %v2278_v57 = vmul.f32 %v2150_v30, %v1766_v55 }
 0x319   :  { %v3591_v54 = vpop.eup %3590  ;;  %v1902_v26 = vmul.f32 0.70710677, %v5210_v22  ;;  %v2279_v48 = vmul.f32 %v2151_v44, %v1767_v58  ;;  %v1774_v49 = vmul.f32 0.5, %v5210_v22 }
 0x31a   :  { %v3593_v8 = vpop.eup %3592  ;;  %v2152_v42 = vadd.f32 1.0, %v3591_v54  ;;  %v1903_v23 = vmul.f32 0.70710677, %v5214_v59  ;;  %v1609_v32 = vpop.f32.mrb[108].mxu0  ;;  %v1775_v46 = vmul.f32 0.5, %v5214_v59 }
 0x31b   :  { %v2153_v6 = vadd.f32 1.0, %v3593_v8  ;;  %3602 = verf.f32 %v1902_v26  ;;  %v5220_v43 = vadd.f32 %v1609_v32, %v4669_v47  ;;  %v1611_v0 = vpop.f32.mrb[109].mxu0  ;;  %2713 = vmatprep.mubr.f32.mxu1 %v2279_v48 }
 0x31c   :  { %3604 = verf.f32 %v1903_v23  ;;  %v5224_v37 = vadd.f32 %v1611_v0, %v4663_v62  ;;  %2714 = vmatmul.mubr.f32.gmra.mrb[90].mxu1 %v2278_v57  ;;  %v2280_v9 = vmul.f32 %v2152_v42, %v1768_v52 }
 0x31d   :  { %v3595_v31 = vpop.eup %3594  ;;  %v1904_v5 = vmul.f32 0.70710677, %v5220_v43  ;;  %v2281_v41 = vmul.f32 %v2153_v6, %v1769_v4  ;;  %v1776_v32 = vmul.f32 0.5, %v5220_v43 }
 0x31e   :  { %v3597_v56 = vpop.eup %3596  ;;  %v2154_v15 = vadd.f32 1.0, %v3595_v31  ;;  %v1905_v33 = vmul.f32 0.70710677, %v5224_v37  ;;  %v1615_v36 = vpop.f32.mrb[110].mxu0  ;;  %v1777_v8 = vmul.f32 0.5, %v5224_v37 }
 0x31f   :  { %v2155_v39 = vadd.f32 1.0, %v3597_v56  ;;  %3606 = verf.f32 %v1904_v5  ;;  %v5230_v21 = vadd.f32 %v1615_v36, %v4669_v47  ;;  %v1617_v19 = vpop.f32.mrb[111].mxu0  ;;  %2718 = vmatprep.mubr.f32.mxu1 %v2281_v41 }
 0x320   :  { %3608 = verf.f32 %v1905_v33  ;;  %v5234_v38 = vadd.f32 %v1617_v19, %v4663_v62  ;;  %2719 = vmatmul.mubr.f32.gmra.mrb[92].mxu1 %v2280_v9  ;;  %v2282_v53 = vmul.f32 %v2154_v15, %v1770_v7 }
 0x321   :  { %v3599_v28 = vpop.eup %3598  ;;  %v1906_v24 = vmul.f32 0.70710677, %v5230_v21  ;;  %v2283_v34 = vmul.f32 %v2155_v39, %v1771_v27  ;;  %v1778_v36 = vmul.f32 0.5, %v5230_v21 }
 0x322   :  { %v3601_v61 = vpop.eup %3600  ;;  %v2156_v12 = vadd.f32 1.0, %v3599_v28  ;;  %v1907_v18 = vmul.f32 0.70710677, %v5234_v38  ;;  %v1621_v16 = vpop.f32.mrb[112].mxu0  ;;  %v1779_v56 = vmul.f32 0.5, %v5234_v38 }
 0x323   :  { %v2157_v45 = vadd.f32 1.0, %v3601_v61  ;;  %3610 = verf.f32 %v1906_v24  ;;  %v5240_v51 = vadd.f32 %v1621_v16, %v4669_v47  ;;  %v1623_v10 = vpop.f32.mrb[113].mxu0  ;;  %2723 = vmatprep.mubr.f32.mxu1 %v2283_v34 }
 0x324   :  { %3612 = verf.f32 %v1907_v18  ;;  %v5244_v35 = vadd.f32 %v1623_v10, %v4663_v62  ;;  %2724 = vmatmul.mubr.f32.gmra.mrb[94].mxu1 %v2282_v53  ;;  %v2284_v11 = vmul.f32 %v2156_v12, %v1772_v60 }
 0x325   :  { %v3603_v50 = vpop.eup %3602  ;;  %v1908_v20 = vmul.f32 0.70710677, %v5240_v51  ;;  %v2285_v3 = vmul.f32 %v2157_v45, %v1773_v29  ;;  %v1780_v16 = vmul.f32 0.5, %v5240_v51 }
 0x326   :  { %v3605_v40 = vpop.eup %3604  ;;  %v2158_v1 = vadd.f32 1.0, %v3603_v50  ;;  %v1909_v13 = vmul.f32 0.70710677, %v5244_v35  ;;  %v1627_v14 = vpop.f32.mrb[114].mxu0  ;;  %v1781_v61 = vmul.f32 0.5, %v5244_v35 }
 0x327   :  { %v2159_v30 = vadd.f32 1.0, %v3605_v40  ;;  %3614 = verf.f32 %v1908_v20  ;;  %v5250_v2 = vadd.f32 %v1627_v14, %v4669_v47  ;;  %v1629_v25 = vpop.f32.mrb[115].mxu0  ;;  %2728 = vmatprep.mubr.f32.mxu1 %v2285_v3 }
 0x328   :  { %3616 = verf.f32 %v1909_v13  ;;  %v5254_v17 = vadd.f32 %v1629_v25, %v4663_v62  ;;  %2729 = vmatmul.mubr.f32.gmra.mrb[96].mxu1 %v2284_v11  ;;  %v2286_v48 = vmul.f32 %v2158_v1, %v1774_v49  ;;  %v5297_v25 = vld [vmem:[%s5412_s6] ss:$0 sm:$0xff]  ;;  %s3751_s6 = smov [#allocation9]  }
 0x329   :  { %v3607_v58 = vpop.eup %3606  ;;  %v1910_v44 = vmul.f32 0.70710677, %v5250_v2  ;;  %v2287_v63 = vmul.f32 %v2159_v30, %v1775_v46  ;;  %v1782_v14 = vmul.f32 0.5, %v5250_v2  ;;  %s3124_s24 = sshll.u32 %s3751_s6, 4  ;;  %s3125_s24 = int_to_ptr.vmem [resolvable:$true] %s3124_s24 }
 0x32a   :  { %v3609_v55 = vpop.eup %3608  ;;  %v2160_v59 = vadd.f32 1.0, %v3607_v58  ;;  %v1911_v54 = vmul.f32 0.70710677, %v5254_v17  ;;  %v1633_v26 = vpop.f32.mrb[116].mxu0  ;;  %v1783_v40 = vmul.f32 0.5, %v5254_v17  ;;  %s3714_s26 = scalar_lea.vmem %s3125_s24, 8192  ;;  %p3719_p11 = scmp.lt.s32.totalorder %s3125_s24, %s3125_s24 }
 0x32b   :  { %v2161_v42 = vadd.f32 1.0, %v3609_v55  ;;  %3618 = verf.f32 %v1910_v44  ;;  %v5260_v22 = vadd.f32 %v1633_v26, %v4669_v47  ;;  %v1635_v23 = vpop.f32.mrb[117].mxu0  ;;  %2733 = vmatprep.mubr.f32.mxu1 %v2287_v63  ;;  %p3715_p10 = scmp.ne.s32.totalorder %s3125_s24, %s3714_s26  ;;  %p3720_p12 = scmp.lt.s32.totalorder %s3714_s26, %s3714_s26 }
 0x32c   :  { %3620 = verf.f32 %v1911_v54  ;;  %v1636_v57 = vadd.f32 %v1635_v23, %v4663_v62  ;;  %2734 = vmatmul.mubr.f32.gmra.mrb[98].mxu1 %v2286_v48  ;;  %v2288_v41 = vmul.f32 %v2160_v59, %v1776_v32 }
 0x32d   :  { %v3611_v4 = vpop.eup %3610  ;;  %v1912_v6 = vmul.f32 0.70710677, %v5260_v22  ;;  %v2289_v0 = vmul.f32 %v2161_v42, %v1777_v8  ;;  %v1784_v42 = vmul.f32 0.5, %v5260_v22  ;;  %p3721_p13 = por %p3720_p12, %p3719_p11 }
 0x32e   :  { %v3613_v52 = vpop.eup %3612  ;;  %v2162_v31 = vadd.f32 1.0, %v3611_v4  ;;  %v1913_v37 = vmul.f32 0.70710677, %v1636_v57  ;;  %v1639_v5 = vpop.f32.mrb[118].mxu0  ;;  %v1785_v44 = vmul.f32 0.5, %v1636_v57 }
 0x32f   :  { %v2163_v15 = vadd.f32 1.0, %v3613_v52  ;;  %3622 = verf.f32 %v1912_v6  ;;  %v5267_v33 = vadd.f32 %v1639_v5, %v4669_v47  ;;  %v1641_v43 = vpop.f32.mrb[119].mxu0  ;;  %2738 = vmatprep.mubr.f32.mxu1 %v2289_v0  ;;  %p3722_p0 = pnand %p3721_p13, %p3715_p10 }
 0x330   :  { %3624 = verf.f32 %v1913_v37  ;;  %v5271_v9 = vadd.f32 %v1641_v43, %v4663_v62  ;;  %2739 = vmatmul.mubr.f32.gmra.mrb[100].mxu1 %v2288_v41  ;;  %v2290_v34 = vmul.f32 %v2162_v31, %v1778_v36 }
 0x331   :  { %v3615_v27 = vpop.eup %3614  ;;  %v1914_v39 = vmul.f32 0.70710677, %v5267_v33  ;;  %v2291_v19 = vmul.f32 %v2163_v15, %v1779_v56 }
 0x332   :  { %v3617_v7 = vpop.eup %3616  ;;  %v2164_v38 = vadd.f32 1.0, %v3615_v27  ;;  %v1915_v28 = vmul.f32 0.70710677, %v5271_v9  ;;  %v1645_v24 = vpop.f32.mrb[120].mxu0  ;;  %v1787_v31 = vmul.f32 0.5, %v5271_v9  ;;  %v1786_v27 = vmul.f32 0.5, %v5267_v33 }
 0x333   :  { %v2165_v12 = vadd.f32 1.0, %v3617_v7  ;;  %3626 = verf.f32 %v1914_v39  ;;  %v5277_v21 = vadd.f32 %v1645_v24, %v4669_v47  ;;  %v1647_v18 = vpop.f32.mrb[121].mxu0  ;;  %2743 = vmatprep.mubr.f32.mxu1 %v2291_v19 }
 0x334   :  { %3628 = verf.f32 %v1915_v28  ;;  %v5281_v53 = vadd.f32 %v1647_v18, %v4663_v62  ;;  %2744 = vmatmul.mubr.f32.gmra.mrb[102].mxu1 %v2290_v34  ;;  %v2292_v3 = vmul.f32 %v2164_v38, %v1780_v16 }
 0x335   :  { %v3619_v29 = vpop.eup %3618  ;;  %v1916_v45 = vmul.f32 0.70710677, %v5277_v21  ;;  %v2293_v10 = vmul.f32 %v2165_v12, %v1781_v61 }
 0x336   :  { %v3621_v60 = vpop.eup %3620  ;;  %v2166_v35 = vadd.f32 1.0, %v3619_v29  ;;  %v1917_v50 = vmul.f32 0.70710677, %v5281_v53  ;;  %v1651_v20 = vpop.f32.mrb[122].mxu0  ;;  %v1788_v29 = vmul.f32 0.5, %v5277_v21 }
 0x337   :  { %v2167_v1 = vadd.f32 1.0, %v3621_v60  ;;  %3630 = verf.f32 %v1916_v45  ;;  %v5287_v51 = vadd.f32 %v1651_v20, %v4669_v47  ;;  %v1653_v13 = vpop.f32.mrb[123].mxu0  ;;  %2748 = vmatprep.mubr.f32.mxu1 %v2293_v10 }
 0x338   :  { %3632 = verf.f32 %v1917_v50  ;;  %v5291_v11 = vadd.f32 %v1653_v13, %v4663_v62  ;;  %2749 = vmatmul.mubr.f32.gmra.mrb[104].mxu1 %v2292_v3  ;;  %v2294_v59 = vmul.f32 %v2166_v35, %v1782_v14 }
 0x339   :  { %v3623_v46 = vpop.eup %3622  ;;  %v1918_v30 = vmul.f32 0.70710677, %v5287_v51  ;;  %v2295_v49 = vmul.f32 %v2167_v1, %v1783_v40 }
 0x33a   :  { %v3625_v17 = vpop.eup %3624  ;;  %v2168_v58 = vadd.f32 1.0, %v3623_v46  ;;  %v1919_v63 = vmul.f32 0.70710677, %v5291_v11  ;;  %v1657_v2 = vpop.f32.mrb[124].mxu0  ;;  %v1791_v1 = vmul.f32 0.5, %v5291_v11  ;;  %v1790_v46 = vmul.f32 0.5, %v5287_v51 }
 0x33b   :  { %v2490_v55 = vpop.f32.mrb[0].mxu1  ;;  %v2169_v54 = vadd.f32 1.0, %v3625_v17  ;;  %3634 = verf.f32 %v1918_v30  ;;  %v5301_v26 = vadd.f32 %v1657_v2, %v4669_v47  ;;  %v1659_v48 = vpop.f32.mrb[125].mxu0  ;;  %2753 = vmatprep.mubr.f32.mxu1 %v2295_v49 }
 0x33c   :  { %v2492_v8 = vpop.f32.mrb[1].mxu1  ;;  %3636 = verf.f32 %v1919_v63  ;;  %v5305_v23 = vadd.f32 %v1659_v48, %v4663_v62  ;;  %2754 = vmatmul.mubr.f32.gmra.mrb[106].mxu1 %v2294_v59  ;;  %v2995_v4 = vadd.f32 %v5297_v25, %v2490_v55  ;;  %v2296_v22 = vmul.f32 %v2168_v58, %v1784_v42 }
 0x33d   :  { %v3627_v32 = vpop.eup %3626  ;;  %v1920_v57 = vmul.f32 0.70710677, %v5301_v26  ;;  %v2297_v6 = vmul.f32 %v2169_v54, %v1785_v44  ;;  %v1792_v8 = vmul.f32 0.5, %v5301_v26 }
 0x33e   :  { %v3629_v0 = vpop.eup %3628  ;;  %v2170_v52 = vadd.f32 1.0, %v3627_v32  ;;  %v1921_v37 = vmul.f32 0.70710677, %v5305_v23  ;;  %v1663_v5 = vpop.f32.mrb[126].mxu0  ;;  %3059 = vst [vmem:[#allocation9 + $0x20] sm:$0xff] %v2995_v4  ;;  %v1793_v59 = vmul.f32 0.5, %v5305_v23 }
 0x33f   :  { %v2495_v41 = vpop.f32.mrb[2].mxu1  ;;  %v2171_v56 = vadd.f32 1.0, %v3629_v0  ;;  %3638 = verf.f32 %v1920_v57  ;;  %v5312_v15 = vadd.f32 %v1663_v5, %v4669_v47  ;;  %v1665_v43 = vpop.f32.mrb[127].mxu0  ;;  %2758 = vmatprep.mubr.f32.mxu1 %v2297_v6  ;;  %v1789_v47 = vmul.f32 0.5, %v5281_v53 }
 0x340   :  { %v2497_v36 = vpop.f32.mrb[3].mxu1  ;;  %3640 = verf.f32 %v1921_v37  ;;  %v5316_v39 = vadd.f32 %v1665_v43, %v4663_v62  ;;  %2759 = vmatmul.mubr.f32.gmra.mrb[108].mxu1 %v2296_v22  ;;  %v2996_v7 = vadd.f32 %v5297_v25, %v2495_v41  ;;  %v2298_v33 = vmul.f32 %v2170_v52, %v1786_v27 }
 0x341   :  { %v3631_v9 = vpop.eup %3630  ;;  %v1922_v19 = vmul.f32 0.70710677, %v5312_v15  ;;  %v2299_v38 = vmul.f32 %v2171_v56, %v1787_v31  ;;  %v1794_v22 = vmul.f32 0.5, %v5312_v15 }
 0x342   :  { %v3633_v28 = vpop.eup %3632  ;;  %v2172_v24 = vadd.f32 1.0, %v3631_v9  ;;  %v1923_v34 = vmul.f32 0.70710677, %v5316_v39  ;;  %v2470_v61 = vpop.f32.mrb[128].mxu0  ;;  %3060 = vst [vmem:[#allocation9 + $0x28] sm:$0xff] %v2996_v7  ;;  %v1795_v37 = vmul.f32 0.5, %v5316_v39 }
 0x343   :  { %v2500_v12 = vpop.f32.mrb[4].mxu1  ;;  %v2173_v18 = vadd.f32 1.0, %v3633_v28  ;;  %3642 = verf.f32 %v1922_v19  ;;  %v2472_v62 = vpop.f32.mrb[129].mxu0  ;;  %2763 = vmatprep.mubr.f32.mxu1 %v2299_v38  ;;  %v2991_v10 = vadd.f32 %v5297_v25, %v2470_v61 }
 0x344   :  { %v2502_v16 = vpop.f32.mrb[5].mxu1  ;;  %3644 = verf.f32 %v1923_v34  ;;  %2764 = vmatmul.mubr.f32.gmra.mrb[110].mxu1 %v2298_v33  ;;  %v2997_v53 = vadd.f32 %v5297_v25, %v2500_v12  ;;  %v2300_v40 = vmul.f32 %v2172_v24, %v1788_v29 }
 0x345   :  { %v3635_v45 = vpop.eup %3634  ;;  %v2301_v60 = vmul.f32 %v2173_v18, %v1789_v47  ;;  %3055 = vst [vmem:[#allocation9] sm:$0xff] %v2991_v10 }
 0x346   :  { %v3637_v35 = vpop.eup %3636  ;;  %v2174_v50 = vadd.f32 1.0, %v3635_v45  ;;  %v2475_v20 = vpop.f32.mrb[130].mxu0  ;;  %3061 = vst [vmem:[#allocation9 + $0x30] sm:$0xff] %v2997_v53 }
 0x347   :  { %v2505_v3 = vpop.f32.mrb[6].mxu1  ;;  %v2175_v13 = vadd.f32 1.0, %v3637_v35  ;;  %v2477_v14 = vpop.f32.mrb[131].mxu0  ;;  %2768 = vmatprep.mubr.f32.mxu1 %v2301_v60  ;;  %v2992_v49 = vadd.f32 %v5297_v25, %v2475_v20 }
 0x348   :  { %v2507_v21 = vpop.f32.mrb[7].mxu1  ;;  %2769 = vmatmul.mubr.f32.gmra.mrb[112].mxu1 %v2300_v40  ;;  %v2998_v17 = vadd.f32 %v5297_v25, %v2505_v3  ;;  %v2302_v11 = vmul.f32 %v2174_v50, %v1790_v46 }
 0x349   :  { %v3639_v30 = vpop.eup %3638  ;;  %v2303_v58 = vmul.f32 %v2175_v13, %v1791_v1  ;;  %3056 = vst [vmem:[#allocation9 + $0x8] sm:$0xff] %v2992_v49 }
 0x34a   :  { %v3641_v44 = vpop.eup %3640  ;;  %v2176_v63 = vadd.f32 1.0, %v3639_v30  ;;  %v2480_v2 = vpop.f32.mrb[132].mxu0  ;;  %3062 = vst [vmem:[#allocation9 + $0x38] sm:$0xff] %v2998_v17 }
 0x34b   :  { %v2510_v55 = vpop.f32.mrb[8].mxu1  ;;  %v2177_v54 = vadd.f32 1.0, %v3641_v44  ;;  %v2482_v48 = vpop.f32.mrb[133].mxu0  ;;  %2773 = vmatprep.mubr.f32.mxu1 %v2303_v58  ;;  %v2993_v32 = vadd.f32 %v5297_v25, %v2480_v2 }
 0x34c   :  { %v2512_v51 = vpop.f32.mrb[9].mxu1  ;;  %2774 = vmatmul.mubr.f32.gmra.mrb[114].mxu1 %v2302_v11  ;;  %v2999_v57 = vadd.f32 %v5297_v25, %v2510_v55  ;;  %v2304_v23 = vmul.f32 %v2176_v63, %v1792_v8 }
 0x34d   :  { %v3643_v42 = vpop.eup %3642  ;;  %v2305_v4 = vmul.f32 %v2177_v54, %v1793_v59  ;;  %3057 = vst [vmem:[#allocation9 + $0x10] sm:$0xff] %v2993_v32 }
 0x34e   :  { %v3645_v6 = vpop.eup %3644  ;;  %v2178_v0 = vadd.f32 1.0, %v3643_v42  ;;  %v2485_v52 = vpop.f32.mrb[134].mxu0  ;;  %3063 = vst [vmem:[#allocation9 + $0x40] sm:$0xff] %v2999_v57 }
 0x34f   :  { %v2515_v31 = vpop.f32.mrb[10].mxu1  ;;  %v2179_v5 = vadd.f32 1.0, %v3645_v6  ;;  %v2487_v41 = vpop.f32.mrb[135].mxu0  ;;  %2778 = vmatprep.mubr.f32.mxu1 %v2305_v4  ;;  %v2994_v56 = vadd.f32 %v5297_v25, %v2485_v52 }
 0x350   :  { %v2517_v26 = vpop.f32.mrb[11].mxu1  ;;  %2779 = vmatmul.mubr.f32.gmra.mrb[116].mxu1 %v2304_v23  ;;  %v3000_v43 = vadd.f32 %v5297_v25, %v2515_v31  ;;  %v2306_v9 = vmul.f32 %v2178_v0, %v1794_v22 }
 0x351   :  { %v2307_v36 = vmul.f32 %v2179_v5, %v1795_v37  ;;  %3058 = vst [vmem:[#allocation9 + $0x18] sm:$0xff] %v2994_v56 }
 0x352   :  { %3064 = vst [vmem:[#allocation9 + $0x48] sm:$0xff] %v3000_v43 }
 0x353   :  { %v2520_v27 = vpop.f32.mrb[12].mxu1  ;;  %2783 = vmatprep.mubr.f32.mxu1 %v2307_v36 }
 0x354   :  { %v2522_v39 = vpop.f32.mrb[13].mxu1  ;;  %2784 = vmatmul.mubr.f32.gmra.mrb[118].mxu1 %v2306_v9  ;;  %v3001_v19 = vadd.f32 %v5297_v25, %v2520_v27 }
 0x356   :  { %3065 = vst [vmem:[#allocation9 + $0x50] sm:$0xff] %v3001_v19 }
 0x357   :  { %v2525_v7 = vpop.f32.mrb[14].mxu1 }
 0x358   :  { %v2527_v38 = vpop.f32.mrb[15].mxu1  ;;  %v3002_v15 = vadd.f32 %v5297_v25, %v2525_v7 }
 0x35a   :  { %3066 = vst [vmem:[#allocation9 + $0x58] sm:$0xff] %v3002_v15 }
 0x35b   :  { %v2530_v28 = vpop.f32.mrb[16].mxu1 }
 0x35c   :  { %v2532_v24 = vpop.f32.mrb[17].mxu1  ;;  %v3003_v47 = vadd.f32 %v5297_v25, %v2530_v28 }
 0x35e   :  { %3067 = vst [vmem:[#allocation9 + $0x60] sm:$0xff] %v3003_v47 }
 0x35f   :  { %v2535_v34 = vpop.f32.mrb[18].mxu1 }
 0x360   :  { %v2537_v61 = vpop.f32.mrb[19].mxu1  ;;  %v3004_v12 = vadd.f32 %v5297_v25, %v2535_v34 }
 0x362   :  { %3068 = vst [vmem:[#allocation9 + $0x68] sm:$0xff] %v3004_v12 }
 0x363   :  { %v2540_v33 = vpop.f32.mrb[20].mxu1 }
 0x364   :  { %v2542_v18 = vpop.f32.mrb[21].mxu1  ;;  %v3005_v62 = vadd.f32 %v5297_v25, %v2540_v33 }
 0x366   :  { %3069 = vst [vmem:[#allocation9 + $0x70] sm:$0xff] %v3005_v62 }
 0x367   :  { %v2545_v16 = vpop.f32.mrb[22].mxu1 }
 0x368   :  { %v2547_v29 = vpop.f32.mrb[23].mxu1  ;;  %v3006_v45 = vadd.f32 %v5297_v25, %v2545_v16 }
 0x36a   :  { %3070 = vst [vmem:[#allocation9 + $0x78] sm:$0xff] %v3006_v45 }
 0x36b   :  { %v2550_v10 = vpop.f32.mrb[24].mxu1 }
 0x36c   :  { %v2552_v53 = vpop.f32.mrb[25].mxu1  ;;  %v3007_v60 = vadd.f32 %v5297_v25, %v2550_v10 }
 0x36e   :  { %3071 = vst [vmem:[#allocation9 + $0x80] sm:$0xff] %v3007_v60 }
 0x36f   :  { %v2555_v35 = vpop.f32.mrb[26].mxu1 }
 0x370   :  { %v2557_v50 = vpop.f32.mrb[27].mxu1  ;;  %v3008_v20 = vadd.f32 %v5297_v25, %v2555_v35 }
 0x372   :  { %3072 = vst [vmem:[#allocation9 + $0x88] sm:$0xff] %v3008_v20 }
 0x373   :  { %v2560_v3 = vpop.f32.mrb[28].mxu1 }
 0x374   :  { %v2562_v40 = vpop.f32.mrb[29].mxu1  ;;  %v3009_v1 = vadd.f32 %v5297_v25, %v2560_v3 }
 0x376   :  { %3073 = vst [vmem:[#allocation9 + $0x90] sm:$0xff] %v3009_v1 }
 0x377   :  { %v2565_v13 = vpop.f32.mrb[30].mxu1 }
 0x378   :  { %v2567_v14 = vpop.f32.mrb[31].mxu1  ;;  %v3010_v21 = vadd.f32 %v5297_v25, %v2565_v13 }
 0x37a   :  { %3074 = vst [vmem:[#allocation9 + $0x98] sm:$0xff] %v3010_v21 }
 0x37b   :  { %v2570_v46 = vpop.f32.mrb[32].mxu1 }
 0x37c   :  { %v2572_v30 = vpop.f32.mrb[33].mxu1  ;;  %v3011_v49 = vadd.f32 %v5297_v25, %v2570_v46 }
 0x37e   :  { %3075 = vst [vmem:[#allocation9 + $0xa0] sm:$0xff] %v3011_v49 }
 0x37f   :  { %v2575_v17 = vpop.f32.mrb[34].mxu1 }
 0x380   :  { %v2577_v58 = vpop.f32.mrb[35].mxu1  ;;  %v3012_v44 = vadd.f32 %v5297_v25, %v2575_v17 }
 0x382   :  { %3076 = vst [vmem:[#allocation9 + $0xa8] sm:$0xff] %v3012_v44 }
 0x383   :  { %v2580_v63 = vpop.f32.mrb[36].mxu1 }
 0x384   :  { %v2582_v2 = vpop.f32.mrb[37].mxu1  ;;  %v3013_v55 = vadd.f32 %v5297_v25, %v2580_v63 }
 0x386   :  { %3077 = vst [vmem:[#allocation9 + $0xb0] sm:$0xff] %v3013_v55 }
 0x387   :  { %v2585_v11 = vpop.f32.mrb[38].mxu1 }
 0x388   :  { %v2587_v59 = vpop.f32.mrb[39].mxu1  ;;  %v3014_v54 = vadd.f32 %v5297_v25, %v2585_v11 }
 0x38a   :  { %3078 = vst [vmem:[#allocation9 + $0xb8] sm:$0xff] %v3014_v54 }
 0x38b   :  { %v2590_v48 = vpop.f32.mrb[40].mxu1 }
 0x38c   :  { %v2592_v51 = vpop.f32.mrb[41].mxu1  ;;  %v3015_v8 = vadd.f32 %v5297_v25, %v2590_v48 }
 0x38e   :  { %3079 = vst [vmem:[#allocation9 + $0xc0] sm:$0xff] %v3015_v8 }
 0x38f   :  { %v2595_v42 = vpop.f32.mrb[42].mxu1 }
 0x390   :  { %v2597_v32 = vpop.f32.mrb[43].mxu1  ;;  %v3016_v57 = vadd.f32 %v5297_v25, %v2595_v42 }
 0x392   :  { %3080 = vst [vmem:[#allocation9 + $0xc8] sm:$0xff] %v3016_v57 }
 0x393   :  { %v2600_v4 = vpop.f32.mrb[44].mxu1 }
 0x394   :  { %v2602_v6 = vpop.f32.mrb[45].mxu1  ;;  %v3017_v0 = vadd.f32 %v5297_v25, %v2600_v4 }
 0x396   :  { %3081 = vst [vmem:[#allocation9 + $0xd0] sm:$0xff] %v3017_v0 }
 0x397   :  { %v2605_v52 = vpop.f32.mrb[46].mxu1 }
 0x398   :  { %v2607_v31 = vpop.f32.mrb[47].mxu1  ;;  %v3018_v23 = vadd.f32 %v5297_v25, %v2605_v52 }
 0x39a   :  { %3082 = vst [vmem:[#allocation9 + $0xd8] sm:$0xff] %v3018_v23 }
 0x39b   :  { %v2610_v37 = vpop.f32.mrb[48].mxu1 }
 0x39c   :  { %v2612_v5 = vpop.f32.mrb[49].mxu1  ;;  %v3019_v41 = vadd.f32 %v5297_v25, %v2610_v37 }
 0x39e   :  { %3083 = vst [vmem:[#allocation9 + $0xe0] sm:$0xff] %v3019_v41 }
 0x39f   :  { %v2615_v26 = vpop.f32.mrb[50].mxu1 }
 0x3a0   :  { %v2617_v22 = vpop.f32.mrb[51].mxu1  ;;  %v3020_v56 = vadd.f32 %v5297_v25, %v2615_v26 }
 0x3a2   :  { %3084 = vst [vmem:[#allocation9 + $0xe8] sm:$0xff] %v3020_v56 }
 0x3a3   :  { %v2620_v43 = vpop.f32.mrb[52].mxu1 }
 0x3a4   :  { %v2622_v36 = vpop.f32.mrb[53].mxu1  ;;  %v3021_v27 = vadd.f32 %v5297_v25, %v2620_v43 }
 0x3a6   :  { %3085 = vst [vmem:[#allocation9 + $0xf0] sm:$0xff] %v3021_v27 }
 0x3a7   :  { %v2625_v9 = vpop.f32.mrb[54].mxu1 }
 0x3a8   :  { %v2627_v39 = vpop.f32.mrb[55].mxu1  ;;  %v3022_v19 = vadd.f32 %v5297_v25, %v2625_v9 }
 0x3aa   :  { %3086 = vst [vmem:[#allocation9 + $0xf8] sm:$0xff] %v3022_v19 }
 0x3ab   :  { %v2630_v7 = vpop.f32.mrb[56].mxu1 }
 0x3ac   :  { %v2632_v38 = vpop.f32.mrb[57].mxu1  ;;  %v3023_v15 = vadd.f32 %v5297_v25, %v2630_v7 }
 0x3ae   :  { %3087 = vst [vmem:[#allocation9 + $0x100] sm:$0xff] %v3023_v15 }
 0x3af   :  { %v2635_v28 = vpop.f32.mrb[58].mxu1 }
 0x3b0   :  { %v2637_v24 = vpop.f32.mrb[59].mxu1  ;;  %v3024_v47 = vadd.f32 %v5297_v25, %v2635_v28 }
 0x3b2   :  { %3088 = vst [vmem:[#allocation9 + $0x108] sm:$0xff] %v3024_v47 }
 0x3b3   :  { %v2640_v34 = vpop.f32.mrb[60].mxu1 }
 0x3b4   :  { %v2642_v61 = vpop.f32.mrb[61].mxu1  ;;  %v3025_v12 = vadd.f32 %v5297_v25, %v2640_v34 }
 0x3b6   :  { %3089 = vst [vmem:[#allocation9 + $0x110] sm:$0xff] %v3025_v12 }
 0x3b7   :  { %v2645_v33 = vpop.f32.mrb[62].mxu1 }
 0x3b8   :  { %v2647_v18 = vpop.f32.mrb[63].mxu1  ;;  %v3026_v62 = vadd.f32 %v5297_v25, %v2645_v33 }
 0x3ba   :  { %3090 = vst [vmem:[#allocation9 + $0x118] sm:$0xff] %v3026_v62 }
 0x3bb   :  { %v2650_v16 = vpop.f32.mrb[64].mxu1 }
 0x3bc   :  { %v2652_v29 = vpop.f32.mrb[65].mxu1  ;;  %v3027_v45 = vadd.f32 %v5297_v25, %v2650_v16 }
 0x3be   :  { %3091 = vst [vmem:[#allocation9 + $0x120] sm:$0xff] %v3027_v45 }
 0x3bf   :  { %v2655_v10 = vpop.f32.mrb[66].mxu1 }
 0x3c0   :  { %v2657_v53 = vpop.f32.mrb[67].mxu1  ;;  %v3028_v60 = vadd.f32 %v5297_v25, %v2655_v10 }
 0x3c2   :  { %3092 = vst [vmem:[#allocation9 + $0x128] sm:$0xff] %v3028_v60 }
 0x3c3   :  { %v2660_v35 = vpop.f32.mrb[68].mxu1 }
 0x3c4   :  { %v2662_v50 = vpop.f32.mrb[69].mxu1  ;;  %v3029_v20 = vadd.f32 %v5297_v25, %v2660_v35 }
 0x3c6   :  { %3093 = vst [vmem:[#allocation9 + $0x130] sm:$0xff] %v3029_v20 }
 0x3c7   :  { %v2665_v3 = vpop.f32.mrb[70].mxu1 }
 0x3c8   :  { %v2667_v40 = vpop.f32.mrb[71].mxu1  ;;  %v3030_v1 = vadd.f32 %v5297_v25, %v2665_v3 }
 0x3ca   :  { %3094 = vst [vmem:[#allocation9 + $0x138] sm:$0xff] %v3030_v1 }
 0x3cb   :  { %v2670_v13 = vpop.f32.mrb[72].mxu1 }
 0x3cc   :  { %v2672_v14 = vpop.f32.mrb[73].mxu1  ;;  %v3031_v21 = vadd.f32 %v5297_v25, %v2670_v13 }
 0x3ce   :  { %3095 = vst [vmem:[#allocation9 + $0x140] sm:$0xff] %v3031_v21 }
 0x3cf   :  { %v2675_v46 = vpop.f32.mrb[74].mxu1 }
 0x3d0   :  { %v2677_v30 = vpop.f32.mrb[75].mxu1  ;;  %v3032_v49 = vadd.f32 %v5297_v25, %v2675_v46 }
 0x3d2   :  { %3096 = vst [vmem:[#allocation9 + $0x148] sm:$0xff] %v3032_v49 }
 0x3d3   :  { %v2680_v17 = vpop.f32.mrb[76].mxu1 }
 0x3d4   :  { %v2682_v58 = vpop.f32.mrb[77].mxu1  ;;  %v3033_v44 = vadd.f32 %v5297_v25, %v2680_v17 }
 0x3d6   :  { %3097 = vst [vmem:[#allocation9 + $0x150] sm:$0xff] %v3033_v44 }
 0x3d7   :  { %v2685_v63 = vpop.f32.mrb[78].mxu1 }
 0x3d8   :  { %v2687_v2 = vpop.f32.mrb[79].mxu1  ;;  %v3034_v55 = vadd.f32 %v5297_v25, %v2685_v63 }
 0x3da   :  { %3098 = vst [vmem:[#allocation9 + $0x158] sm:$0xff] %v3034_v55 }
 0x3db   :  { %v2690_v11 = vpop.f32.mrb[80].mxu1 }
 0x3dc   :  { %v2692_v59 = vpop.f32.mrb[81].mxu1  ;;  %v3035_v54 = vadd.f32 %v5297_v25, %v2690_v11 }
 0x3de   :  { %3099 = vst [vmem:[#allocation9 + $0x160] sm:$0xff] %v3035_v54 }
 0x3df   :  { %v2695_v48 = vpop.f32.mrb[82].mxu1 }
 0x3e0   :  { %v2697_v51 = vpop.f32.mrb[83].mxu1  ;;  %v3036_v8 = vadd.f32 %v5297_v25, %v2695_v48 }
 0x3e2   :  { %3100 = vst [vmem:[#allocation9 + $0x168] sm:$0xff] %v3036_v8 }
 0x3e3   :  { %v2700_v42 = vpop.f32.mrb[84].mxu1 }
 0x3e4   :  { %v2702_v32 = vpop.f32.mrb[85].mxu1  ;;  %v3037_v57 = vadd.f32 %v5297_v25, %v2700_v42 }
 0x3e6   :  { %3101 = vst [vmem:[#allocation9 + $0x170] sm:$0xff] %v3037_v57 }
 0x3e7   :  { %v2705_v4 = vpop.f32.mrb[86].mxu1 }
 0x3e8   :  { %v2707_v6 = vpop.f32.mrb[87].mxu1  ;;  %v3038_v0 = vadd.f32 %v5297_v25, %v2705_v4 }
 0x3ea   :  { %3102 = vst [vmem:[#allocation9 + $0x178] sm:$0xff] %v3038_v0 }
 0x3eb   :  { %v2710_v52 = vpop.f32.mrb[88].mxu1 }
 0x3ec   :  { %v2712_v31 = vpop.f32.mrb[89].mxu1  ;;  %v3039_v23 = vadd.f32 %v5297_v25, %v2710_v52 }
 0x3ee   :  { %3103 = vst [vmem:[#allocation9 + $0x180] sm:$0xff] %v3039_v23 }
 0x3ef   :  { %v2715_v37 = vpop.f32.mrb[90].mxu1 }
 0x3f0   :  { %v2717_v5 = vpop.f32.mrb[91].mxu1  ;;  %v3040_v41 = vadd.f32 %v5297_v25, %v2715_v37 }
 0x3f2   :  { %3104 = vst [vmem:[#allocation9 + $0x188] sm:$0xff] %v3040_v41 }
 0x3f3   :  { %v2720_v26 = vpop.f32.mrb[92].mxu1 }
 0x3f4   :  { %v2722_v22 = vpop.f32.mrb[93].mxu1  ;;  %v3041_v56 = vadd.f32 %v5297_v25, %v2720_v26 }
 0x3f6   :  { %3105 = vst [vmem:[#allocation9 + $0x190] sm:$0xff] %v3041_v56 }
 0x3f7   :  { %v2725_v43 = vpop.f32.mrb[94].mxu1 }
 0x3f8   :  { %v2727_v36 = vpop.f32.mrb[95].mxu1  ;;  %v3042_v27 = vadd.f32 %v5297_v25, %v2725_v43 }
 0x3fa   :  { %3106 = vst [vmem:[#allocation9 + $0x198] sm:$0xff] %v3042_v27 }
 0x3fb   :  { %v2730_v9 = vpop.f32.mrb[96].mxu1 }
 0x3fc   :  { %v2732_v39 = vpop.f32.mrb[97].mxu1  ;;  %v3043_v19 = vadd.f32 %v5297_v25, %v2730_v9 }
 0x3fe   :  { %3107 = vst [vmem:[#allocation9 + $0x1a0] sm:$0xff] %v3043_v19 }
 0x3ff   :  { %v2735_v7 = vpop.f32.mrb[98].mxu1 }
 0x400   :  { %v2737_v38 = vpop.f32.mrb[99].mxu1  ;;  %v3044_v15 = vadd.f32 %v5297_v25, %v2735_v7 }
 0x402   :  { %3108 = vst [vmem:[#allocation9 + $0x1a8] sm:$0xff] %v3044_v15 }
 0x403   :  { %v2740_v28 = vpop.f32.mrb[100].mxu1 }
 0x404   :  { %v2742_v24 = vpop.f32.mrb[101].mxu1  ;;  %v3045_v47 = vadd.f32 %v5297_v25, %v2740_v28 }
 0x406   :  { %3109 = vst [vmem:[#allocation9 + $0x1b0] sm:$0xff] %v3045_v47 }
 0x407   :  { %v2745_v34 = vpop.f32.mrb[102].mxu1 }
 0x408   :  { %v2747_v61 = vpop.f32.mrb[103].mxu1  ;;  %v3046_v12 = vadd.f32 %v5297_v25, %v2745_v34 }
 0x40a   :  { %3110 = vst [vmem:[#allocation9 + $0x1b8] sm:$0xff] %v3046_v12 }
 0x40b   :  { %v2750_v33 = vpop.f32.mrb[104].mxu1 }
 0x40c   :  { %v2752_v18 = vpop.f32.mrb[105].mxu1  ;;  %v3047_v62 = vadd.f32 %v5297_v25, %v2750_v33 }
 0x40e   :  { %3111 = vst [vmem:[#allocation9 + $0x1c0] sm:$0xff] %v3047_v62 }
 0x40f   :  { %v2755_v16 = vpop.f32.mrb[106].mxu1 }
 0x410   :  { %v2757_v29 = vpop.f32.mrb[107].mxu1  ;;  %v3048_v45 = vadd.f32 %v5297_v25, %v2755_v16 }
 0x412   :  { %3112 = vst [vmem:[#allocation9 + $0x1c8] sm:$0xff] %v3048_v45 }
 0x413   :  { %v2760_v10 = vpop.f32.mrb[108].mxu1 }
 0x414   :  { %v2762_v53 = vpop.f32.mrb[109].mxu1  ;;  %v3049_v60 = vadd.f32 %v5297_v25, %v2760_v10 }
 0x416   :  { %3113 = vst [vmem:[#allocation9 + $0x1d0] sm:$0xff] %v3049_v60 }
 0x417   :  { %v2765_v35 = vpop.f32.mrb[110].mxu1 }
 0x418   :  { %v2767_v50 = vpop.f32.mrb[111].mxu1  ;;  %v3050_v20 = vadd.f32 %v5297_v25, %v2765_v35 }
 0x41a   :  { %3114 = vst [vmem:[#allocation9 + $0x1d8] sm:$0xff] %v3050_v20 }
 0x41b   :  { %v2770_v3 = vpop.f32.mrb[112].mxu1 }
 0x41c   :  { %v2772_v40 = vpop.f32.mrb[113].mxu1  ;;  %v3051_v1 = vadd.f32 %v5297_v25, %v2770_v3 }
 0x41e   :  { %3115 = vst [vmem:[#allocation9 + $0x1e0] sm:$0xff] %v3051_v1 }
 0x41f   :  { %v2775_v13 = vpop.f32.mrb[114].mxu1 }
 0x420   :  { %v2777_v14 = vpop.f32.mrb[115].mxu1  ;;  %v3052_v21 = vadd.f32 %v5297_v25, %v2775_v13 }
 0x422   :  { %3116 = vst [vmem:[#allocation9 + $0x1e8] sm:$0xff] %v3052_v21 }
 0x423   :  { %v2780_v46 = vpop.f32.mrb[116].mxu1 }
 0x424   :  { %v2782_v30 = vpop.f32.mrb[117].mxu1  ;;  %v3053_v49 = vadd.f32 %v5297_v25, %v2780_v46 }
 0x426   :  { %3117 = vst [vmem:[#allocation9 + $0x1f0] sm:$0xff] %v3053_v49 }
 0x427   :  { %v2785_v17 = vpop.f32.mrb[118].mxu1 }
 0x428   :  { %v2787_v58 = vpop.f32.mrb[119].mxu1  ;;  %v3054_v44 = vadd.f32 %v5297_v25, %v2785_v17 }
 0x42a   :  { %3118 = vst [vmem:[#allocation9 + $0x1f8] sm:$0xff] %v3054_v44 }
 0x42b   :  { %3725 = shalt.err (!%p3722_p0)
}
 0x42c   :  { %s3726_s29 = scalar_lea.hbm %s5413_s7, 8192 }
 0x42d   :  { %p3727_p1 = scmp.ne.s32.totalorder %s5413_s7, %s3726_s29  ;;  %p3730_p2 = scmp.lt.u32.totalorder %s3726_s29, %s5413_s7 }
 0x42f   :  { %p3732_p3 = pnand %p3730_p2, %p3727_p1 }
 0x431   :  { %3735 = shalt.err (!%p3732_p3)
}
 0x432   :  { %3130 = dma.vmem_to_hbm [thread:$0]  %s3125_s24, 8192, %s5413_s7, [#allocation5], %s3746_s3, %s3746_s3, %s3747_s25  }
 0x433   :  { %3740 = dma.done.wait [#allocation5], 8192  }
 0x434   :  { %3741 = vsyncadd [#allocation5], 4294959104 }
 0x435   :  { %3134 = vsyncpa [#allocation4], 1 }
 0x436   :  { %3135 = vsyncpa [#allocation7], 1 }
 0x437   :  { %3136 = vsyncpa [#allocation5], 1 }

</bundles_post_ra>
